<compile_context>
chip_gen: v7x
topology: tpu7x:2x2x1
jax: 0.10.0
libtpu: 0.0.40
codegen_flags: <defaults>
</compile_context>

<pallas_src>
import jax
import jax.numpy as jnp
from jax.experimental import pallas as pl
from jax.experimental.pallas import tpu as pltpu

KSIZE = 5          # HashConvSpCh kernel size (fixed to 5 in the module)
TM_MAX = 512       # row-tile cap: fits double-buffered pipeline in VMEM on v5e/v6e/v7x
LANE = 128


def _round_up(x, m):
    return ((x + m - 1) // m) * m


def _pad_rows(a, target):
    pad = target - a.shape[0]
    if pad == 0:
        return a
    return jnp.pad(a, [(0, pad)] + [(0, 0)] * (a.ndim - 1))


def _pad_cols(a, target):
    pad = target - a.shape[-1]
    if pad == 0:
        return a
    return jnp.pad(a, [(0, 0)] * (a.ndim - 1) + [(0, pad)])


# ----------------------------- Pallas kernels ------------------------------ #
def _hash_mm_kernel(xa_ref, xb_ref, cos_ref, sin_ref, w_ref, b_ref,
                    oa_ref, ob_ref):
    # complex-superposition rotation in f32 (VPU), then one stacked bf16 MXU dot.
    xa = xa_ref[...].astype(jnp.float32)        # (TM, Din)
    xb = xb_ref[...].astype(jnp.float32)
    c = cos_ref[...]                            # (1, Din) broadcast over rows
    s = sin_ref[...]
    za = xa * c - xb * s
    zb = xa * s + xb * c
    z = jnp.concatenate([za, zb], axis=0).astype(jnp.bfloat16)   # (2*TM, Din)
    y = jnp.dot(z, w_ref[...], preferred_element_type=jnp.float32)
    b = b_ref[...]                              # (1, Dout_p)
    tm = xa_ref.shape[0]
    oa_ref[...] = y[:tm] + b
    ob_ref[...] = y[tm:] + b


def _hash_mm_kernel_zero_b(xa_ref, cos_ref, sin_ref, w_ref, b_ref,
                           oa_ref, ob_ref):
    # Layer-0 special case: the b-stream input is exactly zero.
    xa = xa_ref[...].astype(jnp.float32)
    c = cos_ref[...]
    s = sin_ref[...]
    za = xa * c
    zb = xa * s
    z = jnp.concatenate([za, zb], axis=0).astype(jnp.bfloat16)
    y = jnp.dot(z, w_ref[...], preferred_element_type=jnp.float32)
    b = b_ref[...]
    tm = xa_ref.shape[0]
    oa_ref[...] = y[:tm] + b
    ob_ref[...] = y[tm:] + b


# ------------------------------ Pallas wrapper ----------------------------- #
def _hash_mm_call(kernel, xs, cos, sin, w, b):
    rows, din = xs[0].shape
    dout = w.shape[1]
    dout_p = _round_up(dout, LANE)              # lane-dense output stores
    tm = min(TM_MAX, _round_up(rows, 8))        # multiple of 8 (sublane)
    rows_p = _round_up(rows, tm)
    grid = (rows_p // tm,)

    xs_p = [_pad_rows(x.astype(jnp.bfloat16), rows_p) for x in xs]
    cos2 = cos.reshape(1, din).astype(jnp.float32)
    sin2 = sin.reshape(1, din).astype(jnp.float32)
    w_p = _pad_cols(w.astype(jnp.bfloat16), dout_p)
    b_p = _pad_cols(b.reshape(1, dout).astype(jnp.float32), dout_p)

    x_spec = pl.BlockSpec((tm, din), lambda i: (i, 0))            # row-tiled, pipelined
    bcast = lambda shape: pl.BlockSpec(shape, lambda i: (0, 0))   # resident across grid
    o_spec = pl.BlockSpec((tm, dout_p), lambda i: (i, 0))

    n_streams = len(xs)
    flops = 4 * rows_p * din * dout_p                             # stacked 2-stream dot
    bytes_accessed = (n_streams * rows_p * din * 2                # bf16 inputs
                      + din * dout_p * 2                          # bf16 weights
                      + 2 * rows_p * dout_p * 4                   # f32 outputs
                      + 2 * din * 4 + dout_p * 4)                 # cos/sin/bias

    oa, ob = pl.pallas_call(
        kernel,
        grid=grid,
        in_specs=[x_spec] * n_streams
                 + [bcast((1, din)), bcast((1, din)),
                    bcast((din, dout_p)), bcast((1, dout_p))],
        out_specs=(o_spec, o_spec),
        out_shape=(jax.ShapeDtypeStruct((rows_p, dout_p), jnp.float32),
                   jax.ShapeDtypeStruct((rows_p, dout_p), jnp.float32)),
        compiler_params=pltpu.CompilerParams(
            dimension_semantics=("parallel",),          # megacore shard on v7x
            vmem_limit_bytes=32 * 1024 * 1024),
        cost_estimate=pl.CostEstimate(flops=flops, transcendentals=0,
                                      bytes_accessed=bytes_accessed),
    )(*xs_p, cos2, sin2, w_p, b_p)
    return oa[:rows, :dout], ob[:rows, :dout]


def hash_mm(xa, xb, cos, sin, w, b):
    """Fused phase-rotate + matmul + bias for both streams."""
    return _hash_mm_call(_hash_mm_kernel, [xa, xb], cos, sin, w, b)


def hash_mm_zero_b(xa, cos, sin, w, b):
    """Same, but the b-stream input is identically zero (layer 0)."""
    return _hash_mm_call(_hash_mm_kernel_zero_b, [xa], cos, sin, w, b)


# ------------------------------- JAX glue --------------------------------- #
def im2col_nhwc(x):
    """x: [B, H, W, C] -> patches [B*OH*OW, C*K*K] (c, kh, kw feature order)."""
    B, H, W, C = x.shape
    OH, OW = H - KSIZE + 1, W - KSIZE + 1
    slices = [x[:, kh:kh + OH, kw:kw + OW, :]
              for kh in range(KSIZE) for kw in range(KSIZE)]
    patches = jnp.stack(slices, axis=4)            # [B, OH, OW, C, K*K]
    return patches.reshape(B * OH * OW, C * KSIZE * KSIZE), OH, OW


def init_params(key, input_dim, n_units, n_layers, period,
                n_classes=10, fc_hidden=1000):
    C, H, W = input_dim
    if H != W:
        raise Exception("Only square inputs are supported")
    params = {"conv": []}
    linear_layer = H
    in_ch = C
    for _ in range(n_layers):
        key, kw_, kb_, kp_ = jax.random.split(key, 4)
        fan_in = in_ch * KSIZE * KSIZE
        w = (jax.random.normal(kw_, (n_units, in_ch, KSIZE, KSIZE),
                               jnp.float32) / jnp.sqrt(fan_in))
        w_mat = w.reshape(n_units, fan_in).T       # [Din, Dout], torch flatten order
        b = jax.random.normal(kb_, (n_units,), jnp.float32) * 0.01
        phases = jax.random.uniform(kp_, (period, fan_in), jnp.float32,
                                    minval=0.0, maxval=2.0 * jnp.pi)
        params["conv"].append({"w": w_mat, "b": b, "phases": phases})
        linear_layer -= (KSIZE - 1)
        in_ch = n_units
    d1 = n_units * linear_layer * linear_layer
    for name, din, dout in (("lfc1", d1, fc_hidden), ("lfc2", fc_hidden, n_classes)):
        key, kw_, kb_, kp_ = jax.random.split(key, 4)
        w = jax.random.normal(kw_, (din, dout), jnp.float32) / jnp.sqrt(din)
        b = jax.random.normal(kb_, (dout,), jnp.float32) * 0.01
        phases = jax.random.uniform(kp_, (period, din), jnp.float32,
                                    minval=0.0, maxval=2.0 * jnp.pi)
        params[name] = {"w": w, "b": b, "phases": phases}
    return params


def cifar_hash_convnet_forward(params, x_a, time, activation=jax.nn.relu):
    # NOTE: int(time) requires a concrete (non-traced) time; phases cycle time % period.
    preactivations = []
    ra = jnp.transpose(x_a.astype(jnp.float32), (0, 2, 3, 1))  # NCHW -> NHWC internal
    rb = None                       # input_layer(x_a, zeros_like(x_a), time): b-stream is 0
    B = ra.shape[0]
    for li, p in enumerate(params["conv"]):
        kidx = int(time) % p["phases"].shape[0]
        cos = jnp.cos(p["phases"][kidx])
        sin = jnp.sin(p["phases"][kidx])
        pa, OH, OW = im2col_nhwc(ra)
        n_out = p["w"].shape[1]
        if rb is None:
            ya, yb = hash_mm_zero_b(pa, cos, sin, p["w"], p["b"])
        else:
            pb, _, _ = im2col_nhwc(rb)
            ya, yb = hash_mm(pa, pb, cos, sin, p["w"], p["b"])
        ra = ya.reshape(B, OH, OW, n_out)           # stays NHWC (no round-trip transposes)
        rb = yb.reshape(B, OH, OW, n_out)
        if li > 0:                                  # hidden layers record pre-activations
            preactivations.append(jnp.transpose(ra, (0, 3, 1, 2)))   # NCHW for caller
        ra = activation(ra)
        rb = activation(rb)
    # torch flattens NCHW (.view(B, -1)); convert only at this boundary.
    ra = jnp.transpose(ra, (0, 3, 1, 2)).reshape(B, -1)
    rb = jnp.transpose(rb, (0, 3, 1, 2)).reshape(B, -1)
    for name in ("lfc1", "lfc2"):
        p = params[name]
        kidx = int(time) % p["phases"].shape[0]
        ra, rb = hash_mm(ra, rb, jnp.cos(p["phases"][kidx]),
                         jnp.sin(p["phases"][kidx]), p["w"], p["b"])
        if name == "lfc1":
            ra = activation(ra)
            rb = activation(rb)
    # TODO(synk): bias added to both streams is an assumption without `cl` source.
    return ra, rb, preactivations


# --------------------------------- main ------------------------------------ #
if __name__ == "__main__":
    key = jax.random.PRNGKey(0)
    input_dim = (4, 16, 16)     # (C, H, W), square input as required
    n_units, n_layers, period = 8, 2, 3
    batch = 2

    kp, kx = jax.random.split(key)
    params = init_params(kp, input_dim, n_units, n_layers, period)
    x_a = jax.random.normal(kx, (batch,) + input_dim, jnp.float32)
    time = 5

    fwd = jax.jit(lambda p, x: cifar_hash_convnet_forward(p, x, time))
    r_a, r_b, preacts = fwd(params, x_a)
    jax.block_until_ready((r_a, r_b, preacts))

    assert r_a.shape == (batch, 10) and r_b.shape == (batch, 10)
    assert len(preacts) == n_layers - 1
    assert preacts[0].shape == (batch, n_units, 8, 8)
    assert bool(jnp.all(jnp.isfinite(r_a))) and bool(jnp.all(jnp.isfinite(r_b)))
    print("KERNEL_OK")
</pallas_src>

<mosaic_0001>
module attributes {stable_mosaic.version = 11 : i64} {
  func.func @_hash_mm_kernel_zero_b(%arg0: i32, %arg1: memref<288x100xbf16, #tpu.memory_space<vmem>>, %arg2: memref<1x100xf32, #tpu.memory_space<vmem>>, %arg3: memref<1x100xf32, #tpu.memory_space<vmem>>, %arg4: memref<100x128xbf16, #tpu.memory_space<vmem>>, %arg5: memref<1x128xf32, #tpu.memory_space<vmem>>, %arg6: memref<288x128xf32, #tpu.memory_space<vmem>>, %arg7: memref<288x128xf32, #tpu.memory_space<vmem>>) attributes {dimension_semantics = [#tpu.dimension_semantics<parallel>], iteration_bounds = array<i64: 1>, scalar_prefetch = 0 : i64, scratch_operands = 0 : i64, tpu.core_type = #tpu.core_type<tc>, window_params = [{transform_indices = @transform_0, window_bounds = array<i64: 288, 100>}, {pipeline_mode = #tpu.pipeline_mode<synchronous>, transform_indices = @transform_1, window_bounds = array<i64: 1, 100>}, {pipeline_mode = #tpu.pipeline_mode<synchronous>, transform_indices = @transform_2, window_bounds = array<i64: 1, 100>}, {pipeline_mode = #tpu.pipeline_mode<synchronous>, transform_indices = @transform_3, window_bounds = array<i64: 100, 128>}, {pipeline_mode = #tpu.pipeline_mode<synchronous>, transform_indices = @transform_4, window_bounds = array<i64: 1, 128>}, {transform_indices = @transform_5, window_bounds = array<i64: 288, 128>}, {transform_indices = @transform_6, window_bounds = array<i64: 288, 128>}]} {
    %c0 = arith.constant 0 : index
    %c0_0 = arith.constant 0 : index
    %0 = vector.load %arg1[%c0, %c0_0] : memref<288x100xbf16, #tpu.memory_space<vmem>>, vector<288x100xbf16>
    %1 = arith.extf %0 : vector<288x100xbf16> to vector<288x100xf32>
    %c0_1 = arith.constant 0 : index
    %c0_2 = arith.constant 0 : index
    %2 = vector.load %arg2[%c0_1, %c0_2] : memref<1x100xf32, #tpu.memory_space<vmem>>, vector<1x100xf32>
    %c0_3 = arith.constant 0 : index
    %c0_4 = arith.constant 0 : index
    %3 = vector.load %arg3[%c0_3, %c0_4] : memref<1x100xf32, #tpu.memory_space<vmem>>, vector<1x100xf32>
    %4 = vector.broadcast %2 : vector<1x100xf32> to vector<288x100xf32>
    %5 = arith.mulf %1, %4 : vector<288x100xf32>
    %6 = vector.broadcast %3 : vector<1x100xf32> to vector<288x100xf32>
    %7 = arith.mulf %1, %6 : vector<288x100xf32>
    %8 = tpu.concatenate %5, %7 in 0 : vector<288x100xf32>, vector<288x100xf32> -> vector<576x100xf32>
    %9 = arith.truncf %8 : vector<576x100xf32> to vector<576x100xbf16>
    %c0_5 = arith.constant 0 : index
    %c0_6 = arith.constant 0 : index
    %10 = vector.load %arg4[%c0_5, %c0_6] : memref<100x128xbf16, #tpu.memory_space<vmem>>, vector<100x128xbf16>
    %cst = arith.constant dense<0.000000e+00> : vector<576x128xf32>
    %11 = tpu.matmul %9, %10, %cst {dimension_numbers = #tpu.dot_dimension_numbers<[1], [0], [0], [1], [0, 0, 1, 1], [], []>} : vector<576x100xbf16>, vector<100x128xbf16>, vector<576x128xf32> -> vector<576x128xf32>
    %c0_7 = arith.constant 0 : index
    %c0_8 = arith.constant 0 : index
    %12 = vector.load %arg5[%c0_7, %c0_8] : memref<1x128xf32, #tpu.memory_space<vmem>>, vector<1x128xf32>
    %13 = vector.extract_strided_slice %11 {offsets = [0, 0], sizes = [288, 128], strides = [1, 1]} : vector<576x128xf32> to vector<288x128xf32>
    %14 = vector.broadcast %12 : vector<1x128xf32> to vector<288x128xf32>
    %15 = arith.addf %13, %14 : vector<288x128xf32>
    %c0_9 = arith.constant 0 : index
    %c0_10 = arith.constant 0 : index
    %16 = vector.load %arg6[%c0_9, %c0_10] : memref<288x128xf32, #tpu.memory_space<vmem>>, vector<288x128xf32>
    tpu.vector_store %arg6[%c0_9, %c0_10], %15 {strides = array<i32>} : memref<288x128xf32, #tpu.memory_space<vmem>>, vector<288x128xf32>,
    %17 = vector.extract_strided_slice %11 {offsets = [288, 0], sizes = [288, 128], strides = [1, 1]} : vector<576x128xf32> to vector<288x128xf32>
    %18 = vector.broadcast %12 : vector<1x128xf32> to vector<288x128xf32>
    %19 = arith.addf %17, %18 : vector<288x128xf32>
    %c0_11 = arith.constant 0 : index
    %c0_12 = arith.constant 0 : index
    %20 = vector.load %arg7[%c0_11, %c0_12] : memref<288x128xf32, #tpu.memory_space<vmem>>, vector<288x128xf32>
    tpu.vector_store %arg7[%c0_11, %c0_12], %19 {strides = array<i32>} : memref<288x128xf32, #tpu.memory_space<vmem>>, vector<288x128xf32>,
    return
  }
  func.func @transform_0(%arg0: i32) -> (i32, i32) {
    %c0_i32 = arith.constant 0 : i32
    %c0_i32_0 = arith.constant 0 : i32
    return %arg0, %c0_i32 : i32, i32
  }
  func.func @transform_1(%arg0: i32) -> (i32, i32) {
    %c0_i32 = arith.constant 0 : i32
    %c0_i32_0 = arith.constant 0 : i32
    %c0_i32_1 = arith.constant 0 : i32
    return %c0_i32, %c0_i32_0 : i32, i32
  }
  func.func @transform_2(%arg0: i32) -> (i32, i32) {
    %c0_i32 = arith.constant 0 : i32
    %c0_i32_0 = arith.constant 0 : i32
    %c0_i32_1 = arith.constant 0 : i32
    return %c0_i32, %c0_i32_0 : i32, i32
  }
  func.func @transform_3(%arg0: i32) -> (i32, i32) {
    %c0_i32 = arith.constant 0 : i32
    %c0_i32_0 = arith.constant 0 : i32
    %c0_i32_1 = arith.constant 0 : i32
    return %c0_i32, %c0_i32_0 : i32, i32
  }
  func.func @transform_4(%arg0: i32) -> (i32, i32) {
    %c0_i32 = arith.constant 0 : i32
    %c0_i32_0 = arith.constant 0 : i32
    %c0_i32_1 = arith.constant 0 : i32
    return %c0_i32, %c0_i32_0 : i32, i32
  }
  func.func @transform_5(%arg0: i32) -> (i32, i32) {
    %c0_i32 = arith.constant 0 : i32
    %c0_i32_0 = arith.constant 0 : i32
    return %arg0, %c0_i32 : i32, i32
  }
  func.func @transform_6(%arg0: i32) -> (i32, i32) {
    %c0_i32 = arith.constant 0 : i32
    %c0_i32_0 = arith.constant 0 : i32
    return %arg0, %c0_i32 : i32, i32
  }
}

module attributes {stable_mosaic.version = 11 : i64} {
  func.func @_hash_mm_kernel(%arg0: i32, %arg1: memref<128x200xbf16, #tpu.memory_space<vmem>>, %arg2: memref<128x200xbf16, #tpu.memory_space<vmem>>, %arg3: memref<1x200xf32, #tpu.memory_space<vmem>>, %arg4: memref<1x200xf32, #tpu.memory_space<vmem>>, %arg5: memref<200x128xbf16, #tpu.memory_space<vmem>>, %arg6: memref<1x128xf32, #tpu.memory_space<vmem>>, %arg7: memref<128x128xf32, #tpu.memory_space<vmem>>, %arg8: memref<128x128xf32, #tpu.memory_space<vmem>>) attributes {dimension_semantics = [#tpu.dimension_semantics<parallel>], iteration_bounds = array<i64: 1>, scalar_prefetch = 0 : i64, scratch_operands = 0 : i64, tpu.core_type = #tpu.core_type<tc>, window_params = [{transform_indices = @transform_0, window_bounds = array<i64: 128, 200>}, {transform_indices = @transform_1, window_bounds = array<i64: 128, 200>}, {pipeline_mode = #tpu.pipeline_mode<synchronous>, transform_indices = @transform_2, window_bounds = array<i64: 1, 200>}, {pipeline_mode = #tpu.pipeline_mode<synchronous>, transform_indices = @transform_3, window_bounds = array<i64: 1, 200>}, {pipeline_mode = #tpu.pipeline_mode<synchronous>, transform_indices = @transform_4, window_bounds = array<i64: 200, 128>}, {pipeline_mode = #tpu.pipeline_mode<synchronous>, transform_indices = @transform_5, window_bounds = array<i64: 1, 128>}, {transform_indices = @transform_6, window_bounds = array<i64: 128, 128>}, {transform_indices = @transform_7, window_bounds = array<i64: 128, 128>}]} {
    %c0 = arith.constant 0 : index
    %c0_0 = arith.constant 0 : index
    %0 = vector.load %arg1[%c0, %c0_0] : memref<128x200xbf16, #tpu.memory_space<vmem>>, vector<128x200xbf16>
    %1 = arith.extf %0 : vector<128x200xbf16> to vector<128x200xf32>
    %c0_1 = arith.constant 0 : index
    %c0_2 = arith.constant 0 : index
    %2 = vector.load %arg2[%c0_1, %c0_2] : memref<128x200xbf16, #tpu.memory_space<vmem>>, vector<128x200xbf16>
    %3 = arith.extf %2 : vector<128x200xbf16> to vector<128x200xf32>
    %c0_3 = arith.constant 0 : index
    %c0_4 = arith.constant 0 : index
    %4 = vector.load %arg3[%c0_3, %c0_4] : memref<1x200xf32, #tpu.memory_space<vmem>>, vector<1x200xf32>
    %c0_5 = arith.constant 0 : index
    %c0_6 = arith.constant 0 : index
    %5 = vector.load %arg4[%c0_5, %c0_6] : memref<1x200xf32, #tpu.memory_space<vmem>>, vector<1x200xf32>
    %6 = vector.broadcast %4 : vector<1x200xf32> to vector<128x200xf32>
    %7 = arith.mulf %1, %6 : vector<128x200xf32>
    %8 = vector.broadcast %5 : vector<1x200xf32> to vector<128x200xf32>
    %9 = arith.mulf %3, %8 : vector<128x200xf32>
    %10 = arith.subf %7, %9 : vector<128x200xf32>
    %11 = vector.broadcast %5 : vector<1x200xf32> to vector<128x200xf32>
    %12 = arith.mulf %1, %11 : vector<128x200xf32>
    %13 = vector.broadcast %4 : vector<1x200xf32> to vector<128x200xf32>
    %14 = arith.mulf %3, %13 : vector<128x200xf32>
    %15 = arith.addf %12, %14 : vector<128x200xf32>
    %16 = tpu.concatenate %10, %15 in 0 : vector<128x200xf32>, vector<128x200xf32> -> vector<256x200xf32>
    %17 = arith.truncf %16 : vector<256x200xf32> to vector<256x200xbf16>
    %c0_7 = arith.constant 0 : index
    %c0_8 = arith.constant 0 : index
    %18 = vector.load %arg5[%c0_7, %c0_8] : memref<200x128xbf16, #tpu.memory_space<vmem>>, vector<200x128xbf16>
    %cst = arith.constant dense<0.000000e+00> : vector<256x128xf32>
    %19 = tpu.matmul %17, %18, %cst {dimension_numbers = #tpu.dot_dimension_numbers<[1], [0], [0], [1], [0, 0, 1, 1], [], []>} : vector<256x200xbf16>, vector<200x128xbf16>, vector<256x128xf32> -> vector<256x128xf32>
    %c0_9 = arith.constant 0 : index
    %c0_10 = arith.constant 0 : index
    %20 = vector.load %arg6[%c0_9, %c0_10] : memref<1x128xf32, #tpu.memory_space<vmem>>, vector<1x128xf32>
    %21 = vector.extract_strided_slice %19 {offsets = [0, 0], sizes = [128, 128], strides = [1, 1]} : vector<256x128xf32> to vector<128x128xf32>
    %22 = vector.broadcast %20 : vector<1x128xf32> to vector<128x128xf32>
    %23 = arith.addf %21, %22 : vector<128x128xf32>
    %c0_11 = arith.constant 0 : index
    %c0_12 = arith.constant 0 : index
    %24 = vector.load %arg7[%c0_11, %c0_12] : memref<128x128xf32, #tpu.memory_space<vmem>>, vector<128x128xf32>
    tpu.vector_store %arg7[%c0_11, %c0_12], %23 {strides = array<i32>} : memref<128x128xf32, #tpu.memory_space<vmem>>, vector<128x128xf32>,
    %25 = vector.extract_strided_slice %19 {offsets = [128, 0], sizes = [128, 128], strides = [1, 1]} : vector<256x128xf32> to vector<128x128xf32>
    %26 = vector.broadcast %20 : vector<1x128xf32> to vector<128x128xf32>
    %27 = arith.addf %25, %26 : vector<128x128xf32>
    %c0_13 = arith.constant 0 : index
    %c0_14 = arith.constant 0 : index
    %28 = vector.load %arg8[%c0_13, %c0_14] : memref<128x128xf32, #tpu.memory_space<vmem>>, vector<128x128xf32>
    tpu.vector_store %arg8[%c0_13, %c0_14], %27 {strides = array<i32>} : memref<128x128xf32, #tpu.memory_space<vmem>>, vector<128x128xf32>,
    return
  }
  func.func @transform_0(%arg0: i32) -> (i32, i32) {
    %c0_i32 = arith.constant 0 : i32
    %c0_i32_0 = arith.constant 0 : i32
    return %arg0, %c0_i32 : i32, i32
  }
  func.func @transform_1(%arg0: i32) -> (i32, i32) {
    %c0_i32 = arith.constant 0 : i32
    %c0_i32_0 = arith.constant 0 : i32
    return %arg0, %c0_i32 : i32, i32
  }
  func.func @transform_2(%arg0: i32) -> (i32, i32) {
    %c0_i32 = arith.constant 0 : i32
    %c0_i32_0 = arith.constant 0 : i32
    %c0_i32_1 = arith.constant 0 : i32
    return %c0_i32, %c0_i32_0 : i32, i32
  }
  func.func @transform_3(%arg0: i32) -> (i32, i32) {
    %c0_i32 = arith.constant 0 : i32
    %c0_i32_0 = arith.constant 0 : i32
    %c0_i32_1 = arith.constant 0 : i32
    return %c0_i32, %c0_i32_0 : i32, i32
  }
  func.func @transform_4(%arg0: i32) -> (i32, i32) {
    %c0_i32 = arith.constant 0 : i32
    %c0_i32_0 = arith.constant 0 : i32
    %c0_i32_1 = arith.constant 0 : i32
    return %c0_i32, %c0_i32_0 : i32, i32
  }
  func.func @transform_5(%arg0: i32) -> (i32, i32) {
    %c0_i32 = arith.constant 0 : i32
    %c0_i32_0 = arith.constant 0 : i32
    %c0_i32_1 = arith.constant 0 : i32
    return %c0_i32, %c0_i32_0 : i32, i32
  }
  func.func @transform_6(%arg0: i32) -> (i32, i32) {
    %c0_i32 = arith.constant 0 : i32
    %c0_i32_0 = arith.constant 0 : i32
    return %arg0, %c0_i32 : i32, i32
  }
  func.func @transform_7(%arg0: i32) -> (i32, i32) {
    %c0_i32 = arith.constant 0 : i32
    %c0_i32_0 = arith.constant 0 : i32
    return %arg0, %c0_i32 : i32, i32
  }
}

module attributes {stable_mosaic.version = 11 : i64} {
  func.func @_hash_mm_kernel(%arg0: i32, %arg1: memref<8x512xbf16, #tpu.memory_space<vmem>>, %arg2: memref<8x512xbf16, #tpu.memory_space<vmem>>, %arg3: memref<1x512xf32, #tpu.memory_space<vmem>>, %arg4: memref<1x512xf32, #tpu.memory_space<vmem>>, %arg5: memref<512x1024xbf16, #tpu.memory_space<vmem>>, %arg6: memref<1x1024xf32, #tpu.memory_space<vmem>>, %arg7: memref<8x1024xf32, #tpu.memory_space<vmem>>, %arg8: memref<8x1024xf32, #tpu.memory_space<vmem>>) attributes {dimension_semantics = [#tpu.dimension_semantics<parallel>], iteration_bounds = array<i64: 1>, scalar_prefetch = 0 : i64, scratch_operands = 0 : i64, tpu.core_type = #tpu.core_type<tc>, window_params = [{transform_indices = @transform_0, window_bounds = array<i64: 8, 512>}, {transform_indices = @transform_1, window_bounds = array<i64: 8, 512>}, {pipeline_mode = #tpu.pipeline_mode<synchronous>, transform_indices = @transform_2, window_bounds = array<i64: 1, 512>}, {pipeline_mode = #tpu.pipeline_mode<synchronous>, transform_indices = @transform_3, window_bounds = array<i64: 1, 512>}, {pipeline_mode = #tpu.pipeline_mode<synchronous>, transform_indices = @transform_4, window_bounds = array<i64: 512, 1024>}, {pipeline_mode = #tpu.pipeline_mode<synchronous>, transform_indices = @transform_5, window_bounds = array<i64: 1, 1024>}, {transform_indices = @transform_6, window_bounds = array<i64: 8, 1024>}, {transform_indices = @transform_7, window_bounds = array<i64: 8, 1024>}]} {
    %c0 = arith.constant 0 : index
    %c0_0 = arith.constant 0 : index
    %0 = vector.load %arg1[%c0, %c0_0] : memref<8x512xbf16, #tpu.memory_space<vmem>>, vector<8x512xbf16>
    %1 = arith.extf %0 : vector<8x512xbf16> to vector<8x512xf32>
    %c0_1 = arith.constant 0 : index
    %c0_2 = arith.constant 0 : index
    %2 = vector.load %arg2[%c0_1, %c0_2] : memref<8x512xbf16, #tpu.memory_space<vmem>>, vector<8x512xbf16>
    %3 = arith.extf %2 : vector<8x512xbf16> to vector<8x512xf32>
    %c0_3 = arith.constant 0 : index
    %c0_4 = arith.constant 0 : index
    %4 = vector.load %arg3[%c0_3, %c0_4] : memref<1x512xf32, #tpu.memory_space<vmem>>, vector<1x512xf32>
    %c0_5 = arith.constant 0 : index
    %c0_6 = arith.constant 0 : index
    %5 = vector.load %arg4[%c0_5, %c0_6] : memref<1x512xf32, #tpu.memory_space<vmem>>, vector<1x512xf32>
    %6 = vector.broadcast %4 : vector<1x512xf32> to vector<8x512xf32>
    %7 = arith.mulf %1, %6 : vector<8x512xf32>
    %8 = vector.broadcast %5 : vector<1x512xf32> to vector<8x512xf32>
    %9 = arith.mulf %3, %8 : vector<8x512xf32>
    %10 = arith.subf %7, %9 : vector<8x512xf32>
    %11 = vector.broadcast %5 : vector<1x512xf32> to vector<8x512xf32>
    %12 = arith.mulf %1, %11 : vector<8x512xf32>
    %13 = vector.broadcast %4 : vector<1x512xf32> to vector<8x512xf32>
    %14 = arith.mulf %3, %13 : vector<8x512xf32>
    %15 = arith.addf %12, %14 : vector<8x512xf32>
    %16 = tpu.concatenate %10, %15 in 0 : vector<8x512xf32>, vector<8x512xf32> -> vector<16x512xf32>
    %17 = arith.truncf %16 : vector<16x512xf32> to vector<16x512xbf16>
    %c0_7 = arith.constant 0 : index
    %c0_8 = arith.constant 0 : index
    %18 = vector.load %arg5[%c0_7, %c0_8] : memref<512x1024xbf16, #tpu.memory_space<vmem>>, vector<512x1024xbf16>
    %cst = arith.constant dense<0.000000e+00> : vector<16x1024xf32>
    %19 = tpu.matmul %17, %18, %cst {dimension_numbers = #tpu.dot_dimension_numbers<[1], [0], [0], [1], [0, 0, 1, 1], [], []>} : vector<16x512xbf16>, vector<512x1024xbf16>, vector<16x1024xf32> -> vector<16x1024xf32>
    %c0_9 = arith.constant 0 : index
    %c0_10 = arith.constant 0 : index
    %20 = vector.load %arg6[%c0_9, %c0_10] : memref<1x1024xf32, #tpu.memory_space<vmem>>, vector<1x1024xf32>
    %21 = vector.extract_strided_slice %19 {offsets = [0, 0], sizes = [8, 1024], strides = [1, 1]} : vector<16x1024xf32> to vector<8x1024xf32>
    %22 = vector.broadcast %20 : vector<1x1024xf32> to vector<8x1024xf32>
    %23 = arith.addf %21, %22 : vector<8x1024xf32>
    %c0_11 = arith.constant 0 : index
    %c0_12 = arith.constant 0 : index
    %24 = vector.load %arg7[%c0_11, %c0_12] : memref<8x1024xf32, #tpu.memory_space<vmem>>, vector<8x1024xf32>
    tpu.vector_store %arg7[%c0_11, %c0_12], %23 {strides = array<i32>} : memref<8x1024xf32, #tpu.memory_space<vmem>>, vector<8x1024xf32>,
    %25 = vector.extract_strided_slice %19 {offsets = [8, 0], sizes = [8, 1024], strides = [1, 1]} : vector<16x1024xf32> to vector<8x1024xf32>
    %26 = vector.broadcast %20 : vector<1x1024xf32> to vector<8x1024xf32>
    %27 = arith.addf %25, %26 : vector<8x1024xf32>
    %c0_13 = arith.constant 0 : index
    %c0_14 = arith.constant 0 : index
    %28 = vector.load %arg8[%c0_13, %c0_14] : memref<8x1024xf32, #tpu.memory_space<vmem>>, vector<8x1024xf32>
    tpu.vector_store %arg8[%c0_13, %c0_14], %27 {strides = array<i32>} : memref<8x1024xf32, #tpu.memory_space<vmem>>, vector<8x1024xf32>,
    return
  }
  func.func @transform_0(%arg0: i32) -> (i32, i32) {
    %c0_i32 = arith.constant 0 : i32
    %c0_i32_0 = arith.constant 0 : i32
    return %arg0, %c0_i32 : i32, i32
  }
  func.func @transform_1(%arg0: i32) -> (i32, i32) {
    %c0_i32 = arith.constant 0 : i32
    %c0_i32_0 = arith.constant 0 : i32
    return %arg0, %c0_i32 : i32, i32
  }
  func.func @transform_2(%arg0: i32) -> (i32, i32) {
    %c0_i32 = arith.constant 0 : i32
    %c0_i32_0 = arith.constant 0 : i32
    %c0_i32_1 = arith.constant 0 : i32
    return %c0_i32, %c0_i32_0 : i32, i32
  }
  func.func @transform_3(%arg0: i32) -> (i32, i32) {
    %c0_i32 = arith.constant 0 : i32
    %c0_i32_0 = arith.constant 0 : i32
    %c0_i32_1 = arith.constant 0 : i32
    return %c0_i32, %c0_i32_0 : i32, i32
  }
  func.func @transform_4(%arg0: i32) -> (i32, i32) {
    %c0_i32 = arith.constant 0 : i32
    %c0_i32_0 = arith.constant 0 : i32
    %c0_i32_1 = arith.constant 0 : i32
    return %c0_i32, %c0_i32_0 : i32, i32
  }
  func.func @transform_5(%arg0: i32) -> (i32, i32) {
    %c0_i32 = arith.constant 0 : i32
    %c0_i32_0 = arith.constant 0 : i32
    %c0_i32_1 = arith.constant 0 : i32
    return %c0_i32, %c0_i32_0 : i32, i32
  }
  func.func @transform_6(%arg0: i32) -> (i32, i32) {
    %c0_i32 = arith.constant 0 : i32
    %c0_i32_0 = arith.constant 0 : i32
    return %arg0, %c0_i32 : i32, i32
  }
  func.func @transform_7(%arg0: i32) -> (i32, i32) {
    %c0_i32 = arith.constant 0 : i32
    %c0_i32_0 = arith.constant 0 : i32
    return %arg0, %c0_i32 : i32, i32
  }
}

module attributes {stable_mosaic.version = 11 : i64} {
  func.func @_hash_mm_kernel(%arg0: i32, %arg1: memref<8x1000xbf16, #tpu.memory_space<vmem>>, %arg2: memref<8x1000xbf16, #tpu.memory_space<vmem>>, %arg3: memref<1x1000xf32, #tpu.memory_space<vmem>>, %arg4: memref<1x1000xf32, #tpu.memory_space<vmem>>, %arg5: memref<1000x128xbf16, #tpu.memory_space<vmem>>, %arg6: memref<1x128xf32, #tpu.memory_space<vmem>>, %arg7: memref<8x128xf32, #tpu.memory_space<vmem>>, %arg8: memref<8x128xf32, #tpu.memory_space<vmem>>) attributes {dimension_semantics = [#tpu.dimension_semantics<parallel>], iteration_bounds = array<i64: 1>, scalar_prefetch = 0 : i64, scratch_operands = 0 : i64, tpu.core_type = #tpu.core_type<tc>, window_params = [{transform_indices = @transform_0, window_bounds = array<i64: 8, 1000>}, {transform_indices = @transform_1, window_bounds = array<i64: 8, 1000>}, {pipeline_mode = #tpu.pipeline_mode<synchronous>, transform_indices = @transform_2, window_bounds = array<i64: 1, 1000>}, {pipeline_mode = #tpu.pipeline_mode<synchronous>, transform_indices = @transform_3, window_bounds = array<i64: 1, 1000>}, {pipeline_mode = #tpu.pipeline_mode<synchronous>, transform_indices = @transform_4, window_bounds = array<i64: 1000, 128>}, {pipeline_mode = #tpu.pipeline_mode<synchronous>, transform_indices = @transform_5, window_bounds = array<i64: 1, 128>}, {transform_indices = @transform_6, window_bounds = array<i64: 8, 128>}, {transform_indices = @transform_7, window_bounds = array<i64: 8, 128>}]} {
    %c0 = arith.constant 0 : index
    %c0_0 = arith.constant 0 : index
    %0 = vector.load %arg1[%c0, %c0_0] : memref<8x1000xbf16, #tpu.memory_space<vmem>>, vector<8x1000xbf16>
    %1 = arith.extf %0 : vector<8x1000xbf16> to vector<8x1000xf32>
    %c0_1 = arith.constant 0 : index
    %c0_2 = arith.constant 0 : index
    %2 = vector.load %arg2[%c0_1, %c0_2] : memref<8x1000xbf16, #tpu.memory_space<vmem>>, vector<8x1000xbf16>
    %3 = arith.extf %2 : vector<8x1000xbf16> to vector<8x1000xf32>
    %c0_3 = arith.constant 0 : index
    %c0_4 = arith.constant 0 : index
    %4 = vector.load %arg3[%c0_3, %c0_4] : memref<1x1000xf32, #tpu.memory_space<vmem>>, vector<1x1000xf32>
    %c0_5 = arith.constant 0 : index
    %c0_6 = arith.constant 0 : index
    %5 = vector.load %arg4[%c0_5, %c0_6] : memref<1x1000xf32, #tpu.memory_space<vmem>>, vector<1x1000xf32>
    %6 = vector.broadcast %4 : vector<1x1000xf32> to vector<8x1000xf32>
    %7 = arith.mulf %1, %6 : vector<8x1000xf32>
    %8 = vector.broadcast %5 : vector<1x1000xf32> to vector<8x1000xf32>
    %9 = arith.mulf %3, %8 : vector<8x1000xf32>
    %10 = arith.subf %7, %9 : vector<8x1000xf32>
    %11 = vector.broadcast %5 : vector<1x1000xf32> to vector<8x1000xf32>
    %12 = arith.mulf %1, %11 : vector<8x1000xf32>
    %13 = vector.broadcast %4 : vector<1x1000xf32> to vector<8x1000xf32>
    %14 = arith.mulf %3, %13 : vector<8x1000xf32>
    %15 = arith.addf %12, %14 : vector<8x1000xf32>
    %16 = tpu.concatenate %10, %15 in 0 : vector<8x1000xf32>, vector<8x1000xf32> -> vector<16x1000xf32>
    %17 = arith.truncf %16 : vector<16x1000xf32> to vector<16x1000xbf16>
    %c0_7 = arith.constant 0 : index
    %c0_8 = arith.constant 0 : index
    %18 = vector.load %arg5[%c0_7, %c0_8] : memref<1000x128xbf16, #tpu.memory_space<vmem>>, vector<1000x128xbf16>
    %cst = arith.constant dense<0.000000e+00> : vector<16x128xf32>
    %19 = tpu.matmul %17, %18, %cst {dimension_numbers = #tpu.dot_dimension_numbers<[1], [0], [0], [1], [0, 0, 1, 1], [], []>} : vector<16x1000xbf16>, vector<1000x128xbf16>, vector<16x128xf32> -> vector<16x128xf32>
    %c0_9 = arith.constant 0 : index
    %c0_10 = arith.constant 0 : index
    %20 = vector.load %arg6[%c0_9, %c0_10] : memref<1x128xf32, #tpu.memory_space<vmem>>, vector<1x128xf32>
    %21 = vector.extract_strided_slice %19 {offsets = [0, 0], sizes = [8, 128], strides = [1, 1]} : vector<16x128xf32> to vector<8x128xf32>
    %22 = vector.broadcast %20 : vector<1x128xf32> to vector<8x128xf32>
    %23 = arith.addf %21, %22 : vector<8x128xf32>
    %c0_11 = arith.constant 0 : index
    %c0_12 = arith.constant 0 : index
    %24 = vector.load %arg7[%c0_11, %c0_12] : memref<8x128xf32, #tpu.memory_space<vmem>>, vector<8x128xf32>
    tpu.vector_store %arg7[%c0_11, %c0_12], %23 {strides = array<i32>} : memref<8x128xf32, #tpu.memory_space<vmem>>, vector<8x128xf32>,
    %25 = vector.extract_strided_slice %19 {offsets = [8, 0], sizes = [8, 128], strides = [1, 1]} : vector<16x128xf32> to vector<8x128xf32>
    %26 = vector.broadcast %20 : vector<1x128xf32> to vector<8x128xf32>
    %27 = arith.addf %25, %26 : vector<8x128xf32>
    %c0_13 = arith.constant 0 : index
    %c0_14 = arith.constant 0 : index
    %28 = vector.load %arg8[%c0_13, %c0_14] : memref<8x128xf32, #tpu.memory_space<vmem>>, vector<8x128xf32>
    tpu.vector_store %arg8[%c0_13, %c0_14], %27 {strides = array<i32>} : memref<8x128xf32, #tpu.memory_space<vmem>>, vector<8x128xf32>,
    return
  }
  func.func @transform_0(%arg0: i32) -> (i32, i32) {
    %c0_i32 = arith.constant 0 : i32
    %c0_i32_0 = arith.constant 0 : i32
    return %arg0, %c0_i32 : i32, i32
  }
  func.func @transform_1(%arg0: i32) -> (i32, i32) {
    %c0_i32 = arith.constant 0 : i32
    %c0_i32_0 = arith.constant 0 : i32
    return %arg0, %c0_i32 : i32, i32
  }
  func.func @transform_2(%arg0: i32) -> (i32, i32) {
    %c0_i32 = arith.constant 0 : i32
    %c0_i32_0 = arith.constant 0 : i32
    %c0_i32_1 = arith.constant 0 : i32
    return %c0_i32, %c0_i32_0 : i32, i32
  }
  func.func @transform_3(%arg0: i32) -> (i32, i32) {
    %c0_i32 = arith.constant 0 : i32
    %c0_i32_0 = arith.constant 0 : i32
    %c0_i32_1 = arith.constant 0 : i32
    return %c0_i32, %c0_i32_0 : i32, i32
  }
  func.func @transform_4(%arg0: i32) -> (i32, i32) {
    %c0_i32 = arith.constant 0 : i32
    %c0_i32_0 = arith.constant 0 : i32
    %c0_i32_1 = arith.constant 0 : i32
    return %c0_i32, %c0_i32_0 : i32, i32
  }
  func.func @transform_5(%arg0: i32) -> (i32, i32) {
    %c0_i32 = arith.constant 0 : i32
    %c0_i32_0 = arith.constant 0 : i32
    %c0_i32_1 = arith.constant 0 : i32
    return %c0_i32, %c0_i32_0 : i32, i32
  }
  func.func @transform_6(%arg0: i32) -> (i32, i32) {
    %c0_i32 = arith.constant 0 : i32
    %c0_i32_0 = arith.constant 0 : i32
    return %arg0, %c0_i32 : i32, i32
  }
  func.func @transform_7(%arg0: i32) -> (i32, i32) {
    %c0_i32 = arith.constant 0 : i32
    %c0_i32_0 = arith.constant 0 : i32
    return %arg0, %c0_i32 : i32, i32
  }
}

</mosaic_0001>

<bundles_post_ra>
// kernel: _lambda_.4
= control target key start
LH: loop header
LB: loop body
LE: loop exit
PB: predicated region body
PF: predicated region fallthrough
CT: control target
= control target key end

     0   :  { %vm269_vm0 = vcmask 818176   ;;  %vm378_vm1 = vcmask 1041408   ;;  %s1791_s3 = inlined_call_operand.vmem [shape: bf16[100,128], index: 3, kind: input, shape index: {}]   ;;  %s1792_s0 = inlined_call_operand.vmem [shape: bf16[288,100], index: 0, kind: input, shape index: {}]   ;;  %s1793_s1 = inlined_call_operand.vmem [shape: f32[1,100], index: 1, kind: input, shape index: {}]   ;;  %s1794_s2 = inlined_call_operand.vmem [shape: f32[1,100], index: 2, kind: input, shape index: {}]   ;;  %s1795_s4 = inlined_call_operand.vmem [shape: f32[1,128], index: 4, kind: input, shape index: {}]   ;;  %s1796_s5 = inlined_call_operand.vmem [shape: f32[288,128], index: 5, kind: output, shape index: {0}]   ;;  %s1797_s6 = inlined_call_operand.vmem [shape: f32[288,128], index: 6, kind: output, shape index: {1}]  }
   0x1   :  { %v1142_v0 = vld [vmem:[%s1791_s3] sm:$0xff]   ;;  %v1143_v1 = vld [vmem:[%s1791_s3 + $0x8] sm:$0xff]   ;;  %v1144_v2 = vld [vmem:[%s1791_s3 + $0x10] sm:$0xff]  }
   0x2   :  { %1040 = vmatprep.subr.bf16.mxu0 %v1142_v0  ;;  %1126 = vmatprep.subr.bf16.mxu1 %v1142_v0  ;;  %v909_v3 = vld [vmem:[%s1792_s0] sm:$0xff]   ;;  %v1145_v8 = vld [vmem:[%s1791_s3 + $0x18] sm:$0xff]   ;;  %v980_v16 = vld [vmem:[%s1792_s0 + $0x8] sm:$0xff]  }
   0x3   :  { %1041 = vmatpush3.bf16.msra.mxu0 %v1142_v0  ;;  %1133 = vmatpush3.bf16.msra.mxu1 %v1142_v0  ;;  %v910_v4 = vunpack.c.l.bf16 %v909_v3  ;;  %v911_v5 = vunpack.c.h.bf16 %v909_v3  ;;  %v1199_v6 = vld [vmem:[%s1793_s1] ss:$0 sm:$0xff]  ;;  %v981_v17 = vld [vmem:[%s1792_s0 + $0x10] sm:$0xff]   ;;  %v1147_v18 = vld [vmem:[%s1791_s3 + $0x28] sm:$0xff]   ;;  %v914_v19 = vunpack.c.l.bf16 %v980_v16  ;;  %v915_v20 = vunpack.c.h.bf16 %v980_v16 }
   0x4   :  { %1042 = vmatprep.subr.bf16.mxu0 %v1143_v1  ;;  %1127 = vmatprep.subr.bf16.mxu1 %v1143_v1  ;;  %v1204_v7 = vld [vmem:[%s1794_s2] ss:$0 sm:$0xff]  ;;  %v918_v21 = vunpack.c.l.bf16 %v981_v17  ;;  %v982_v22 = vld [vmem:[%s1792_s0 + $0x18] sm:$0xff]   ;;  %v919_v23 = vunpack.c.h.bf16 %v981_v17  ;;  %v1148_v24 = vld [vmem:[%s1791_s3 + $0x30] ss:$0 sps:$4 sm:$0x33]  }
   0x5   :  { %v103_v9 = vmul.f32 %v910_v4, %v1199_v6  ;;  %v104_v10 = vmul.f32 %v911_v5, %v1199_v6  ;;  %v145_v11 = vmul.f32 %v910_v4, %v1204_v7  ;;  %v146_v12 = vmul.f32 %v911_v5, %v1204_v7  ;;  %v1146_v15 = vld [vmem:[%s1791_s3 + $0x20] sm:$0xff]   ;;  %v984_v33 = vld [vmem:[%s1792_s0 + $0x28] sm:$0xff]   ;;  %v985_v37 = vld [vmem:[%s1792_s0 + $0x30] sm:$0xff]  }
   0x6   :  { %v105_v25 = vmul.f32 %v914_v19, %v1199_v6  ;;  %v106_v26 = vmul.f32 %v915_v20, %v1199_v6  ;;  %v147_v27 = vmul.f32 %v914_v19, %v1204_v7  ;;  %v148_v28 = vmul.f32 %v915_v20, %v1204_v7  ;;  %v983_v30 = vld [vmem:[%s1792_s0 + $0x20] sm:$0xff]   ;;  %v992_v57 = vld [vmem:[%s1792_s0 + $0x68] sm:$0xff]   ;;  %v1276_v61 = vld [vmem:[%s1792_s0 + $0x38] sm:$0xff]  }
   0x7   :  { %1043 = vmatpush3.bf16.msra.mxu0 %v1143_v1  ;;  %1134 = vmatpush3.bf16.msra.mxu1 %v1143_v1  ;;  %v181_v13 = vpack.c.bf16 %v104_v10, %v103_v9  ;;  %v199_v14 = vpack.c.bf16 %v146_v12, %v145_v11  ;;  %v922_v29 = vunpack.c.l.bf16 %v982_v22  ;;  %v107_v31 = vmul.f32 %v918_v21, %v1199_v6  ;;  %v993_v5 = vld [vmem:[%s1792_s0 + $0x70] sm:$0xff]   ;;  %v994_v16 = vld [vmem:[%s1792_s0 + $0x78] sm:$0xff]  }
   0x8   :  { %1044 = vmatprep.subr.bf16.mxu0 %v1144_v2  ;;  %1128 = vmatprep.subr.bf16.mxu1 %v1144_v2  ;;  %v923_v32 = vunpack.c.h.bf16 %v982_v22  ;;  %v108_v34 = vmul.f32 %v919_v23, %v1199_v6  ;;  %v149_v35 = vmul.f32 %v918_v21, %v1204_v7  ;;  %v150_v36 = vmul.f32 %v919_v23, %v1204_v7 }
   0x9   :  { %1054 = vmatprep.mubr.msk.bf16.mxu0 %vm269_vm0, %v181_v13  ;;  %1090 = vmatprep.mubr.msk.bf16.mxu1 %vm269_vm0, %v199_v14  ;;  %v380_v38 = vsel %vm378_vm1, %v1148_v24, 0  ;;  %v182_v39 = vpack.c.bf16 %v106_v26, %v105_v25  ;;  %v926_v40 = vunpack.c.l.bf16 %v983_v30  ;;  %v927_v41 = vunpack.c.h.bf16 %v983_v30  ;;  %v995_v25 = vld [vmem:[%s1792_s0 + $0x80] sm:$0xff]  }
   0xa   :  { %v200_v42 = vpack.c.bf16 %v148_v28, %v147_v27  ;;  %v109_v43 = vmul.f32 %v922_v29, %v1199_v6  ;;  %v930_v44 = vunpack.c.l.bf16 %v984_v33  ;;  %v931_v45 = vunpack.c.h.bf16 %v984_v33 }
   0xb   :  { %1045 = vmatpush3.bf16.msra.mxu0 %v1144_v2  ;;  %1135 = vmatpush3.bf16.msra.mxu1 %v1144_v2  ;;  %v110_v46 = vmul.f32 %v923_v32, %v1199_v6  ;;  %v151_v47 = vmul.f32 %v922_v29, %v1204_v7  ;;  %v934_v48 = vunpack.c.l.bf16 %v985_v37  ;;  %v935_v49 = vunpack.c.h.bf16 %v985_v37 }
   0xc   :  { %1046 = vmatprep.subr.bf16.mxu0 %v1145_v8  ;;  %1129 = vmatprep.subr.bf16.mxu1 %v1145_v8  ;;  %v183_v50 = vpack.c.bf16 %v108_v34, %v107_v31  ;;  %v201_v51 = vpack.c.bf16 %v150_v36, %v149_v35  ;;  %v152_v52 = vmul.f32 %v923_v32, %v1204_v7  ;;  %v962_v4 = vunpack.c.l.bf16 %v992_v57  ;;  %v996_v34 = vld [vmem:[%s1792_s0 + $0x88] sm:$0xff]  }
   0xd   :  { %v111_v53 = vmul.f32 %v926_v40, %v1199_v6  ;;  %v112_v54 = vmul.f32 %v927_v41, %v1199_v6  ;;  %v153_v55 = vmul.f32 %v926_v40, %v1204_v7  ;;  %v154_v56 = vmul.f32 %v927_v41, %v1204_v7 }
   0xe   :  { %v1265_v58 = vmul.f32 %v930_v44, %v1199_v6  ;;  %v1268_v59 = vmul.f32 %v931_v45, %v1199_v6  ;;  %v1271_v60 = vmul.f32 %v930_v44, %v1204_v7  ;;  %v1281_v62 = vmul.f32 %v931_v45, %v1204_v7 }
   0xf   :  { %1047 = vmatpush3.bf16.msra.mxu0 %v1145_v8  ;;  %1136 = vmatpush3.bf16.msra.mxu1 %v1145_v8  ;;  %v1284_v63 = vmul.f32 %v934_v48, %v1199_v6  ;;  %v1287_v0 = vmul.f32 %v935_v49, %v1199_v6  ;;  %v184_v1 = vpack.c.bf16 %v110_v46, %v109_v43  ;;  %v938_v11 = vunpack.c.l.bf16 %v1276_v61 }
  0x10   :  { %1048 = vmatprep.subr.bf16.mxu0 %v1146_v15  ;;  %1130 = vmatprep.subr.bf16.mxu1 %v1146_v15  ;;  %v1292_v2 = vmul.f32 %v934_v48, %v1204_v7  ;;  %v1295_v3 = vmul.f32 %v935_v49, %v1204_v7  ;;  %v202_v8 = vpack.c.bf16 %v152_v52, %v151_v47  ;;  %v939_v13 = vunpack.c.h.bf16 %v1276_v61 }
  0x11   :  { %v185_v9 = vpack.c.bf16 %v112_v54, %v111_v53  ;;  %v203_v10 = vpack.c.bf16 %v154_v56, %v153_v55  ;;  %v186_v12 = vpack.c.bf16 %v1268_v59, %v1265_v58  ;;  %v963_v14 = vunpack.c.h.bf16 %v992_v57 }
  0x12   :  { %v204_v17 = vpack.c.bf16 %v1281_v62, %v1271_v60  ;;  %v1315_v19 = vmul.f32 %v962_v4, %v1204_v7  ;;  %v966_v20 = vunpack.c.l.bf16 %v993_v5  ;;  %v205_v21 = vpack.c.bf16 %v1295_v3, %v1292_v2  ;;  %v988_v3 = vld [vmem:[%s1792_s0 + $0x48] sm:$0xff]  }
  0x13   :  { %1049 = vmatpush3.bf16.msra.mxu0 %v1146_v15  ;;  %1137 = vmatpush3.bf16.msra.mxu1 %v1146_v15  ;;  %v1305_v15 = vmul.f32 %v962_v4, %v1199_v6  ;;  %v1320_v22 = vmul.f32 %v963_v14, %v1199_v6  ;;  %v1323_v23 = vmul.f32 %v963_v14, %v1204_v7  ;;  %v970_v28 = vunpack.c.l.bf16 %v994_v16 }
  0x14   :  { %1050 = vmatprep.subr.bf16.mxu0 %v1147_v18  ;;  %1131 = vmatprep.subr.bf16.mxu1 %v1147_v18  ;;  %v1329_v26 = vmul.f32 %v966_v20, %v1199_v6  ;;  %v1332_v27 = vmul.f32 %v966_v20, %v1204_v7  ;;  %v971_v29 = vunpack.c.h.bf16 %v994_v16  ;;  %v975_v43 = vunpack.c.h.bf16 %v995_v25 }
  0x15   :  { %v194_v30 = vpack.c.bf16 %v1320_v22, %v1305_v15  ;;  %v212_v31 = vpack.c.bf16 %v1323_v23, %v1315_v19  ;;  %v1350_v35 = vmul.f32 %v970_v28, %v1199_v6  ;;  %v1356_v37 = vmul.f32 %v970_v28, %v1204_v7 }
  0x16   :  { %v1353_v36 = vmul.f32 %v971_v29, %v1199_v6  ;;  %v978_v47 = vunpack.c.l.bf16 %v996_v34  ;;  %v1381_v49 = vmul.f32 %v975_v43, %v1199_v6  ;;  %v117_v60 = vmul.f32 %v938_v11, %v1199_v6 }
  0x17   :  { %1051 = vmatpush3.bf16.msra.mxu0 %v1147_v18  ;;  %1138 = vmatpush3.bf16.msra.mxu1 %v1147_v18  ;;  %v187_v18 = vpack.c.bf16 %v1287_v0, %v1284_v63  ;;  %v118_v61 = vmul.f32 %v939_v13, %v1199_v6  ;;  %v159_v0 = vmul.f32 %v938_v11, %v1204_v7  ;;  %v947_v11 = vunpack.c.h.bf16 %v988_v3 }
  0x18   :  { %1140 = vmatprep.subr.msk.bf16.mxu0 %vm378_vm1, %v1148_v24  ;;  %1141 = vmatprep.subr.msk.bf16.mxu1 %vm378_vm1, %v1148_v24  ;;  %v967_v24 = vunpack.c.h.bf16 %v993_v5  ;;  %v196_v44 = vpack.c.bf16 %v1353_v36, %v1350_v35  ;;  %v1387_v54 = vmul.f32 %v978_v47, %v1199_v6  ;;  %v1390_v55 = vmul.f32 %v978_v47, %v1204_v7 }
  0x1a   :  { %v1339_v32 = vmul.f32 %v967_v24, %v1199_v6  ;;  %v1342_v33 = vmul.f32 %v967_v24, %v1204_v7 }
  0x1b   :  { %1053 = vmatpush3.bf16.msra.mxu0 %v380_v38  ;;  %1139 = vmatpush3.bf16.msra.mxu1 %v380_v38  ;;  %v974_v38 = vunpack.c.l.bf16 %v995_v25  ;;  %v164_v25 = vmul.f32 %v947_v11, %v1204_v7 }
  0x1c   :  { %v195_v40 = vpack.c.bf16 %v1339_v32, %v1329_v26  ;;  %v213_v41 = vpack.c.bf16 %v1342_v33, %v1332_v27 }
  0x1d   :  { %v1373_v45 = vmul.f32 %v974_v38, %v1199_v6  ;;  %v1376_v46 = vmul.f32 %v974_v38, %v1204_v7 }
  0x1e   :  { %1055 = vmatmul.mubr.msk.bf16.vlgmr.msra.gmra.mrb[0].mxu0 %vm269_vm0, %v182_v39  ;;  %1091 = vmatmul.mubr.msk.bf16.vlgmr.msra.gmra.mrb[0].mxu1 %vm269_vm0, %v200_v42  ;;  %v987_v39 = vld [vmem:[%s1792_s0 + $0x40] sm:$0xff]   ;;  %v1368_v42 = vmul.f32 %v971_v29, %v1204_v7  ;;  %v990_v29 = vld [vmem:[%s1792_s0 + $0x58] sm:$0xff]  }
  0x1f   :  { %1058 = vmatprep.mubr.msk.bf16.mxu0 %vm269_vm0, %v183_v50  ;;  %1094 = vmatprep.mubr.msk.bf16.mxu1 %vm269_vm0, %v201_v51  ;;  %v1384_v50 = vmul.f32 %v975_v43, %v1204_v7  ;;  %v979_v51 = vunpack.c.h.bf16 %v996_v34  ;;  %v942_v52 = vunpack.c.l.bf16 %v987_v39  ;;  %v943_v53 = vunpack.c.h.bf16 %v987_v39  ;;  %v991_v43 = vld [vmem:[%s1792_s0 + $0x60] sm:$0xff]  }
  0x20   :  { %v214_v48 = vpack.c.bf16 %v1368_v42, %v1356_v37  ;;  %v197_v56 = vpack.c.bf16 %v1381_v49, %v1373_v45  ;;  %v954_v47 = vunpack.c.l.bf16 %v990_v29 }
  0x21   :  { %v215_v57 = vpack.c.bf16 %v1384_v50, %v1376_v46  ;;  %v1397_v58 = vmul.f32 %v979_v51, %v1199_v6  ;;  %v1400_v59 = vmul.f32 %v979_v51, %v1204_v7  ;;  %v119_v2 = vmul.f32 %v942_v52, %v1199_v6 }
  0x22   :  { %v120_v4 = vmul.f32 %v943_v53, %v1199_v6  ;;  %v161_v5 = vmul.f32 %v942_v52, %v1204_v7 }
  0x23   :  { %v198_v62 = vpack.c.bf16 %v1397_v58, %v1387_v54  ;;  %v216_v63 = vpack.c.bf16 %v1400_v59, %v1390_v55 }
  0x24   :  { %v189_v16 = vpack.c.bf16 %v120_v4, %v119_v2  ;;  %v125_v2 = vmul.f32 %v954_v47, %v1199_v6 }
  0x26   :  { %1059 = vmatmul.mubr.msk.bf16.gmra.mrb[4].mxu0 %vm269_vm0, %v184_v1  ;;  %1095 = vmatmul.mubr.msk.bf16.gmra.mrb[4].mxu1 %vm269_vm0, %v202_v8  ;;  %v160_v1 = vmul.f32 %v939_v13, %v1204_v7  ;;  %v162_v8 = vmul.f32 %v943_v53, %v1204_v7  ;;  %v955_v53 = vunpack.c.h.bf16 %v990_v29 }
  0x27   :  { %1062 = vmatprep.mubr.msk.bf16.mxu0 %vm269_vm0, %v185_v9  ;;  %1098 = vmatprep.mubr.msk.bf16.mxu1 %vm269_vm0, %v203_v10  ;;  %v989_v9 = vld [vmem:[%s1792_s0 + $0x50] sm:$0xff]   ;;  %v946_v10 = vunpack.c.l.bf16 %v988_v3  ;;  %v167_v3 = vmul.f32 %v954_v47, %v1204_v7 }
  0x28   :  { %v206_v13 = vpack.c.bf16 %v160_v1, %v159_v0  ;;  %v950_v14 = vunpack.c.l.bf16 %v989_v9  ;;  %v959_v1 = vunpack.c.h.bf16 %v991_v43  ;;  %v126_v4 = vmul.f32 %v955_v53, %v1199_v6 }
  0x29   :  { %v121_v20 = vmul.f32 %v946_v10, %v1199_v6  ;;  %v163_v24 = vmul.f32 %v946_v10, %v1204_v7 }
  0x2a   :  { %v123_v28 = vmul.f32 %v950_v14, %v1199_v6  ;;  %v165_v38 = vmul.f32 %v950_v14, %v1204_v7 }
  0x2b   :  { %v208_v52 = vpack.c.bf16 %v164_v25, %v163_v24 }
  0x2e   :  { %1063 = vmatmul.mubr.msk.bf16.gmra.mrb[8].mxu0 %vm269_vm0, %v186_v12  ;;  %1099 = vmatmul.mubr.msk.bf16.gmra.mrb[8].mxu1 %vm269_vm0, %v204_v17  ;;  %v188_v12 = vpack.c.bf16 %v118_v61, %v117_v60  ;;  %v207_v17 = vpack.c.bf16 %v162_v8, %v161_v5  ;;  %v958_v60 = vunpack.c.l.bf16 %v991_v43  ;;  %v168_v5 = vmul.f32 %v955_v53, %v1204_v7 }
  0x2f   :  { %1066 = vmatprep.mubr.msk.bf16.mxu0 %vm269_vm0, %v187_v18  ;;  %1102 = vmatprep.mubr.msk.bf16.mxu1 %vm269_vm0, %v205_v21  ;;  %v951_v18 = vunpack.c.h.bf16 %v989_v9  ;;  %v122_v21 = vmul.f32 %v947_v11, %v1199_v6  ;;  %v128_v9 = vmul.f32 %v959_v1, %v1199_v6  ;;  %v170_v11 = vmul.f32 %v959_v1, %v1204_v7 }
  0x30   :  { %v127_v8 = vmul.f32 %v958_v60, %v1199_v6  ;;  %v169_v10 = vmul.f32 %v958_v60, %v1204_v7 }
  0x31   :  { %v124_v34 = vmul.f32 %v951_v18, %v1199_v6  ;;  %v166_v39 = vmul.f32 %v951_v18, %v1204_v7  ;;  %v190_v51 = vpack.c.bf16 %v122_v21, %v121_v20  ;;  %v1501_v6 = vld [vmem:[%s1795_s4] ss:$0 sm:$0xff] }
  0x32   :  { %v193_v14 = vpack.c.bf16 %v128_v9, %v127_v8 }
  0x33   :  { %v191_v61 = vpack.c.bf16 %v124_v34, %v123_v28  ;;  %v209_v0 = vpack.c.bf16 %v166_v39, %v165_v38 }
  0x36   :  { %1067 = vmatmul.mubr.msk.bf16.gmra.mrb[12].mxu0 %vm269_vm0, %v188_v12  ;;  %1103 = vmatmul.mubr.msk.bf16.gmra.mrb[12].mxu1 %vm269_vm0, %v206_v13  ;;  %v192_v12 = vpack.c.bf16 %v126_v4, %v125_v2  ;;  %v210_v13 = vpack.c.bf16 %v168_v5, %v167_v3 }
  0x37   :  { %1070 = vmatprep.mubr.msk.bf16.mxu0 %vm269_vm0, %v189_v16  ;;  %1106 = vmatprep.mubr.msk.bf16.mxu1 %vm269_vm0, %v207_v17  ;;  %v211_v16 = vpack.c.bf16 %v170_v11, %v169_v10 }
  0x3e   :  { %1071 = vmatmul.mubr.msk.bf16.gmra.mrb[16].mxu0 %vm269_vm0, %v190_v51  ;;  %1107 = vmatmul.mubr.msk.bf16.gmra.mrb[16].mxu1 %vm269_vm0, %v208_v52 }
  0x3f   :  { %1074 = vmatprep.mubr.msk.bf16.mxu0 %vm269_vm0, %v191_v61  ;;  %1110 = vmatprep.mubr.msk.bf16.mxu1 %vm269_vm0, %v209_v0 }
  0x46   :  { %1075 = vmatmul.mubr.msk.bf16.gmra.mrb[20].mxu0 %vm269_vm0, %v192_v12  ;;  %1111 = vmatmul.mubr.msk.bf16.gmra.mrb[20].mxu1 %vm269_vm0, %v210_v13 }
  0x47   :  { %1078 = vmatprep.mubr.msk.bf16.mxu0 %vm269_vm0, %v193_v14  ;;  %1114 = vmatprep.mubr.msk.bf16.mxu1 %vm269_vm0, %v211_v16 }
  0x4e   :  { %1079 = vmatmul.mubr.msk.bf16.gmra.mrb[24].mxu0 %vm269_vm0, %v194_v30  ;;  %1115 = vmatmul.mubr.msk.bf16.gmra.mrb[24].mxu1 %vm269_vm0, %v212_v31 }
  0x4f   :  { %1082 = vmatprep.mubr.msk.bf16.mxu0 %vm269_vm0, %v195_v40  ;;  %1118 = vmatprep.mubr.msk.bf16.mxu1 %vm269_vm0, %v213_v41 }
  0x56   :  { %1083 = vmatmul.mubr.msk.bf16.gmra.mrb[28].mxu0 %vm269_vm0, %v196_v44  ;;  %1119 = vmatmul.mubr.msk.bf16.gmra.mrb[28].mxu1 %vm269_vm0, %v214_v48 }
  0x57   :  { %1086 = vmatprep.mubr.msk.bf16.mxu0 %vm269_vm0, %v197_v56  ;;  %1122 = vmatprep.mubr.msk.bf16.mxu1 %vm269_vm0, %v215_v57 }
  0x5e   :  { %1087 = vmatmul.mubr.msk.bf16.gmra.mrb[32].mxu0 %vm269_vm0, %v198_v62  ;;  %1123 = vmatmul.mubr.msk.bf16.gmra.mrb[32].mxu1 %vm269_vm0, %v216_v63 }
  0xf1   :  { %v1056_v7 = vpop.f32.mrb[0].mxu0  ;;  %v1092_v15 = vpop.f32.mrb[0].mxu1 }
  0xf2   :  { %v712_v19 = vadd.f32 %v1056_v7, %v1501_v6  ;;  %v784_v22 = vadd.f32 %v1092_v15, %v1501_v6  ;;  %v416_v23 = vpop.f32.mrb[1].mxu0  ;;  %v560_v26 = vpop.f32.mrb[1].mxu1 }
  0xf3   :  { %v710_v27 = vadd.f32 %v1501_v6, %v416_v23  ;;  %v782_v30 = vadd.f32 %v1501_v6, %v560_v26  ;;  %v1057_v31 = vpop.f32.mrb[2].mxu0  ;;  %v1093_v32 = vpop.f32.mrb[2].mxu1 }
  0xf4   :  { %748 = vst [vmem:[%s1796_s5 + $0x10] sm:$0xff] %v712_v19  ;;  %820 = vst [vmem:[%s1797_s6 + $0x10] sm:$0xff] %v784_v22  ;;  %v713_v33 = vadd.f32 %v1057_v31, %v1501_v6  ;;  %v785_v35 = vadd.f32 %v1093_v32, %v1501_v6  ;;  %v419_v36 = vpop.f32.mrb[3].mxu0  ;;  %v563_v37 = vpop.f32.mrb[3].mxu1 }
  0xf5   :  { %746 = vst [vmem:[%s1796_s5] sm:$0xff] %v710_v27  ;;  %818 = vst [vmem:[%s1797_s6] sm:$0xff] %v782_v30  ;;  %v711_v40 = vadd.f32 %v1501_v6, %v419_v36  ;;  %v783_v41 = vadd.f32 %v1501_v6, %v563_v37 }
  0xf6   :  { %749 = vst [vmem:[%s1796_s5 + $0x18] sm:$0xff] %v713_v33  ;;  %821 = vst [vmem:[%s1797_s6 + $0x18] sm:$0xff] %v785_v35 }
  0xf7   :  { %747 = vst [vmem:[%s1796_s5 + $0x8] sm:$0xff] %v711_v40  ;;  %819 = vst [vmem:[%s1797_s6 + $0x8] sm:$0xff] %v783_v41 }
  0xf9   :  { %v1060_v42 = vpop.f32.mrb[4].mxu0  ;;  %v1096_v44 = vpop.f32.mrb[4].mxu1 }
  0xfa   :  { %v716_v45 = vadd.f32 %v1060_v42, %v1501_v6  ;;  %v788_v46 = vadd.f32 %v1096_v44, %v1501_v6  ;;  %v432_v48 = vpop.f32.mrb[5].mxu0  ;;  %v576_v49 = vpop.f32.mrb[5].mxu1 }
  0xfb   :  { %v714_v50 = vadd.f32 %v1501_v6, %v432_v48  ;;  %v786_v54 = vadd.f32 %v1501_v6, %v576_v49  ;;  %v1061_v55 = vpop.f32.mrb[6].mxu0  ;;  %v1097_v56 = vpop.f32.mrb[6].mxu1 }
  0xfc   :  { %752 = vst [vmem:[%s1796_s5 + $0x30] sm:$0xff] %v716_v45  ;;  %824 = vst [vmem:[%s1797_s6 + $0x30] sm:$0xff] %v788_v46  ;;  %v717_v57 = vadd.f32 %v1061_v55, %v1501_v6  ;;  %v789_v58 = vadd.f32 %v1097_v56, %v1501_v6  ;;  %v435_v59 = vpop.f32.mrb[7].mxu0  ;;  %v579_v62 = vpop.f32.mrb[7].mxu1 }
  0xfd   :  { %750 = vst [vmem:[%s1796_s5 + $0x20] sm:$0xff] %v714_v50  ;;  %822 = vst [vmem:[%s1797_s6 + $0x20] sm:$0xff] %v786_v54  ;;  %v715_v63 = vadd.f32 %v1501_v6, %v435_v59  ;;  %v787_v17 = vadd.f32 %v1501_v6, %v579_v62 }
  0xfe   :  { %753 = vst [vmem:[%s1796_s5 + $0x38] sm:$0xff] %v717_v57  ;;  %825 = vst [vmem:[%s1797_s6 + $0x38] sm:$0xff] %v789_v58 }
  0xff   :  { %751 = vst [vmem:[%s1796_s5 + $0x28] sm:$0xff] %v715_v63  ;;  %823 = vst [vmem:[%s1797_s6 + $0x28] sm:$0xff] %v787_v17 }
 0x101   :  { %v1064_v18 = vpop.f32.mrb[8].mxu0  ;;  %v1100_v20 = vpop.f32.mrb[8].mxu1 }
 0x102   :  { %v720_v21 = vadd.f32 %v1064_v18, %v1501_v6  ;;  %v792_v24 = vadd.f32 %v1100_v20, %v1501_v6  ;;  %v448_v25 = vpop.f32.mrb[9].mxu0  ;;  %v592_v28 = vpop.f32.mrb[9].mxu1 }
 0x103   :  { %v718_v29 = vadd.f32 %v1501_v6, %v448_v25  ;;  %v790_v34 = vadd.f32 %v1501_v6, %v592_v28  ;;  %v1065_v38 = vpop.f32.mrb[10].mxu0  ;;  %v1101_v39 = vpop.f32.mrb[10].mxu1 }
 0x104   :  { %756 = vst [vmem:[%s1796_s5 + $0x50] sm:$0xff] %v720_v21  ;;  %828 = vst [vmem:[%s1797_s6 + $0x50] sm:$0xff] %v792_v24  ;;  %v721_v43 = vadd.f32 %v1065_v38, %v1501_v6  ;;  %v793_v47 = vadd.f32 %v1101_v39, %v1501_v6  ;;  %v451_v51 = vpop.f32.mrb[11].mxu0  ;;  %v595_v52 = vpop.f32.mrb[11].mxu1 }
 0x105   :  { %754 = vst [vmem:[%s1796_s5 + $0x40] sm:$0xff] %v718_v29  ;;  %826 = vst [vmem:[%s1797_s6 + $0x40] sm:$0xff] %v790_v34  ;;  %v719_v53 = vadd.f32 %v1501_v6, %v451_v51  ;;  %v791_v60 = vadd.f32 %v1501_v6, %v595_v52 }
 0x106   :  { %757 = vst [vmem:[%s1796_s5 + $0x58] sm:$0xff] %v721_v43  ;;  %829 = vst [vmem:[%s1797_s6 + $0x58] sm:$0xff] %v793_v47 }
 0x107   :  { %755 = vst [vmem:[%s1796_s5 + $0x48] sm:$0xff] %v719_v53  ;;  %827 = vst [vmem:[%s1797_s6 + $0x48] sm:$0xff] %v791_v60 }
 0x109   :  { %v1068_v61 = vpop.f32.mrb[12].mxu0  ;;  %v1104_v0 = vpop.f32.mrb[12].mxu1 }
 0x10a   :  { %v724_v1 = vadd.f32 %v1068_v61, %v1501_v6  ;;  %v796_v2 = vadd.f32 %v1104_v0, %v1501_v6  ;;  %v464_v3 = vpop.f32.mrb[13].mxu0  ;;  %v608_v4 = vpop.f32.mrb[13].mxu1 }
 0x10b   :  { %v722_v5 = vadd.f32 %v1501_v6, %v464_v3  ;;  %v794_v8 = vadd.f32 %v1501_v6, %v608_v4  ;;  %v1069_v9 = vpop.f32.mrb[14].mxu0  ;;  %v1105_v10 = vpop.f32.mrb[14].mxu1 }
 0x10c   :  { %760 = vst [vmem:[%s1796_s5 + $0x70] sm:$0xff] %v724_v1  ;;  %832 = vst [vmem:[%s1797_s6 + $0x70] sm:$0xff] %v796_v2  ;;  %v725_v11 = vadd.f32 %v1069_v9, %v1501_v6  ;;  %v797_v12 = vadd.f32 %v1105_v10, %v1501_v6  ;;  %v467_v13 = vpop.f32.mrb[15].mxu0  ;;  %v611_v14 = vpop.f32.mrb[15].mxu1 }
 0x10d   :  { %758 = vst [vmem:[%s1796_s5 + $0x60] sm:$0xff] %v722_v5  ;;  %830 = vst [vmem:[%s1797_s6 + $0x60] sm:$0xff] %v794_v8  ;;  %v723_v16 = vadd.f32 %v1501_v6, %v467_v13  ;;  %v795_v7 = vadd.f32 %v1501_v6, %v611_v14 }
 0x10e   :  { %761 = vst [vmem:[%s1796_s5 + $0x78] sm:$0xff] %v725_v11  ;;  %833 = vst [vmem:[%s1797_s6 + $0x78] sm:$0xff] %v797_v12 }
 0x10f   :  { %759 = vst [vmem:[%s1796_s5 + $0x68] sm:$0xff] %v723_v16  ;;  %831 = vst [vmem:[%s1797_s6 + $0x68] sm:$0xff] %v795_v7 }
 0x111   :  { %v1072_v15 = vpop.f32.mrb[16].mxu0  ;;  %v1108_v19 = vpop.f32.mrb[16].mxu1 }
 0x112   :  { %v728_v22 = vadd.f32 %v1072_v15, %v1501_v6  ;;  %v800_v23 = vadd.f32 %v1108_v19, %v1501_v6  ;;  %v480_v26 = vpop.f32.mrb[17].mxu0  ;;  %v624_v27 = vpop.f32.mrb[17].mxu1 }
 0x113   :  { %v726_v30 = vadd.f32 %v1501_v6, %v480_v26  ;;  %v798_v31 = vadd.f32 %v1501_v6, %v624_v27  ;;  %v1073_v32 = vpop.f32.mrb[18].mxu0  ;;  %v1109_v33 = vpop.f32.mrb[18].mxu1 }
 0x114   :  { %764 = vst [vmem:[%s1796_s5 + $0x90] sm:$0xff] %v728_v22  ;;  %836 = vst [vmem:[%s1797_s6 + $0x90] sm:$0xff] %v800_v23  ;;  %v729_v35 = vadd.f32 %v1073_v32, %v1501_v6  ;;  %v801_v36 = vadd.f32 %v1109_v33, %v1501_v6  ;;  %v483_v37 = vpop.f32.mrb[19].mxu0  ;;  %v627_v40 = vpop.f32.mrb[19].mxu1 }
 0x115   :  { %762 = vst [vmem:[%s1796_s5 + $0x80] sm:$0xff] %v726_v30  ;;  %834 = vst [vmem:[%s1797_s6 + $0x80] sm:$0xff] %v798_v31  ;;  %v727_v41 = vadd.f32 %v1501_v6, %v483_v37  ;;  %v799_v42 = vadd.f32 %v1501_v6, %v627_v40 }
 0x116   :  { %765 = vst [vmem:[%s1796_s5 + $0x98] sm:$0xff] %v729_v35  ;;  %837 = vst [vmem:[%s1797_s6 + $0x98] sm:$0xff] %v801_v36 }
 0x117   :  { %763 = vst [vmem:[%s1796_s5 + $0x88] sm:$0xff] %v727_v41  ;;  %835 = vst [vmem:[%s1797_s6 + $0x88] sm:$0xff] %v799_v42 }
 0x119   :  { %v1076_v44 = vpop.f32.mrb[20].mxu0  ;;  %v1112_v45 = vpop.f32.mrb[20].mxu1 }
 0x11a   :  { %v732_v46 = vadd.f32 %v1076_v44, %v1501_v6  ;;  %v804_v48 = vadd.f32 %v1112_v45, %v1501_v6  ;;  %v496_v49 = vpop.f32.mrb[21].mxu0  ;;  %v640_v50 = vpop.f32.mrb[21].mxu1 }
 0x11b   :  { %v730_v54 = vadd.f32 %v1501_v6, %v496_v49  ;;  %v802_v55 = vadd.f32 %v1501_v6, %v640_v50  ;;  %v1077_v56 = vpop.f32.mrb[22].mxu0  ;;  %v1113_v57 = vpop.f32.mrb[22].mxu1 }
 0x11c   :  { %768 = vst [vmem:[%s1796_s5 + $0xb0] sm:$0xff] %v732_v46  ;;  %840 = vst [vmem:[%s1797_s6 + $0xb0] sm:$0xff] %v804_v48  ;;  %v733_v58 = vadd.f32 %v1077_v56, %v1501_v6  ;;  %v805_v59 = vadd.f32 %v1113_v57, %v1501_v6  ;;  %v499_v62 = vpop.f32.mrb[23].mxu0  ;;  %v643_v63 = vpop.f32.mrb[23].mxu1 }
 0x11d   :  { %766 = vst [vmem:[%s1796_s5 + $0xa0] sm:$0xff] %v730_v54  ;;  %838 = vst [vmem:[%s1797_s6 + $0xa0] sm:$0xff] %v802_v55  ;;  %v731_v17 = vadd.f32 %v1501_v6, %v499_v62  ;;  %v803_v18 = vadd.f32 %v1501_v6, %v643_v63 }
 0x11e   :  { %769 = vst [vmem:[%s1796_s5 + $0xb8] sm:$0xff] %v733_v58  ;;  %841 = vst [vmem:[%s1797_s6 + $0xb8] sm:$0xff] %v805_v59 }
 0x11f   :  { %767 = vst [vmem:[%s1796_s5 + $0xa8] sm:$0xff] %v731_v17  ;;  %839 = vst [vmem:[%s1797_s6 + $0xa8] sm:$0xff] %v803_v18 }
 0x121   :  { %v1080_v20 = vpop.f32.mrb[24].mxu0  ;;  %v1116_v21 = vpop.f32.mrb[24].mxu1 }
 0x122   :  { %v736_v24 = vadd.f32 %v1080_v20, %v1501_v6  ;;  %v808_v25 = vadd.f32 %v1116_v21, %v1501_v6  ;;  %v512_v28 = vpop.f32.mrb[25].mxu0  ;;  %v656_v29 = vpop.f32.mrb[25].mxu1 }
 0x123   :  { %v734_v34 = vadd.f32 %v1501_v6, %v512_v28  ;;  %v806_v38 = vadd.f32 %v1501_v6, %v656_v29  ;;  %v1081_v39 = vpop.f32.mrb[26].mxu0  ;;  %v1117_v43 = vpop.f32.mrb[26].mxu1 }
 0x124   :  { %772 = vst [vmem:[%s1796_s5 + $0xd0] sm:$0xff] %v736_v24  ;;  %844 = vst [vmem:[%s1797_s6 + $0xd0] sm:$0xff] %v808_v25  ;;  %v737_v47 = vadd.f32 %v1081_v39, %v1501_v6  ;;  %v809_v51 = vadd.f32 %v1117_v43, %v1501_v6  ;;  %v515_v52 = vpop.f32.mrb[27].mxu0  ;;  %v659_v53 = vpop.f32.mrb[27].mxu1 }
 0x125   :  { %770 = vst [vmem:[%s1796_s5 + $0xc0] sm:$0xff] %v734_v34  ;;  %842 = vst [vmem:[%s1797_s6 + $0xc0] sm:$0xff] %v806_v38  ;;  %v735_v60 = vadd.f32 %v1501_v6, %v515_v52  ;;  %v807_v61 = vadd.f32 %v1501_v6, %v659_v53 }
 0x126   :  { %773 = vst [vmem:[%s1796_s5 + $0xd8] sm:$0xff] %v737_v47  ;;  %845 = vst [vmem:[%s1797_s6 + $0xd8] sm:$0xff] %v809_v51 }
 0x127   :  { %771 = vst [vmem:[%s1796_s5 + $0xc8] sm:$0xff] %v735_v60  ;;  %843 = vst [vmem:[%s1797_s6 + $0xc8] sm:$0xff] %v807_v61 }
 0x129   :  { %v1084_v0 = vpop.f32.mrb[28].mxu0  ;;  %v1120_v1 = vpop.f32.mrb[28].mxu1 }
 0x12a   :  { %v740_v2 = vadd.f32 %v1084_v0, %v1501_v6  ;;  %v812_v3 = vadd.f32 %v1120_v1, %v1501_v6  ;;  %v528_v4 = vpop.f32.mrb[29].mxu0  ;;  %v672_v5 = vpop.f32.mrb[29].mxu1 }
 0x12b   :  { %v738_v8 = vadd.f32 %v1501_v6, %v528_v4  ;;  %v810_v9 = vadd.f32 %v1501_v6, %v672_v5  ;;  %v1085_v10 = vpop.f32.mrb[30].mxu0  ;;  %v1121_v11 = vpop.f32.mrb[30].mxu1 }
 0x12c   :  { %776 = vst [vmem:[%s1796_s5 + $0xf0] sm:$0xff] %v740_v2  ;;  %848 = vst [vmem:[%s1797_s6 + $0xf0] sm:$0xff] %v812_v3  ;;  %v741_v12 = vadd.f32 %v1085_v10, %v1501_v6  ;;  %v813_v13 = vadd.f32 %v1121_v11, %v1501_v6  ;;  %v531_v14 = vpop.f32.mrb[31].mxu0  ;;  %v675_v16 = vpop.f32.mrb[31].mxu1 }
 0x12d   :  { %774 = vst [vmem:[%s1796_s5 + $0xe0] sm:$0xff] %v738_v8  ;;  %846 = vst [vmem:[%s1797_s6 + $0xe0] sm:$0xff] %v810_v9  ;;  %v739_v7 = vadd.f32 %v1501_v6, %v531_v14  ;;  %v811_v15 = vadd.f32 %v1501_v6, %v675_v16 }
 0x12e   :  { %777 = vst [vmem:[%s1796_s5 + $0xf8] sm:$0xff] %v741_v12  ;;  %849 = vst [vmem:[%s1797_s6 + $0xf8] sm:$0xff] %v813_v13 }
 0x12f   :  { %775 = vst [vmem:[%s1796_s5 + $0xe8] sm:$0xff] %v739_v7  ;;  %847 = vst [vmem:[%s1797_s6 + $0xe8] sm:$0xff] %v811_v15 }
 0x131   :  { %v1088_v19 = vpop.f32.mrb[32].mxu0  ;;  %v1124_v22 = vpop.f32.mrb[32].mxu1 }
 0x132   :  { %v744_v23 = vadd.f32 %v1088_v19, %v1501_v6  ;;  %v816_v26 = vadd.f32 %v1124_v22, %v1501_v6  ;;  %v544_v27 = vpop.f32.mrb[33].mxu0  ;;  %v688_v30 = vpop.f32.mrb[33].mxu1 }
 0x133   :  { %v742_v31 = vadd.f32 %v1501_v6, %v544_v27  ;;  %v814_v32 = vadd.f32 %v1501_v6, %v688_v30  ;;  %v1089_v33 = vpop.f32.mrb[34].mxu0  ;;  %v1125_v35 = vpop.f32.mrb[34].mxu1 }
 0x134   :  { %780 = vst [vmem:[%s1796_s5 + $0x110] sm:$0xff] %v744_v23  ;;  %852 = vst [vmem:[%s1797_s6 + $0x110] sm:$0xff] %v816_v26  ;;  %v745_v36 = vadd.f32 %v1089_v33, %v1501_v6  ;;  %v817_v37 = vadd.f32 %v1125_v35, %v1501_v6  ;;  %v547_v40 = vpop.f32.mrb[35].mxu0  ;;  %v691_v41 = vpop.f32.mrb[35].mxu1 }
 0x135   :  { %778 = vst [vmem:[%s1796_s5 + $0x100] sm:$0xff] %v742_v31  ;;  %850 = vst [vmem:[%s1797_s6 + $0x100] sm:$0xff] %v814_v32  ;;  %v743_v42 = vadd.f32 %v1501_v6, %v547_v40  ;;  %v815_v44 = vadd.f32 %v1501_v6, %v691_v41 }
 0x136   :  { %781 = vst [vmem:[%s1796_s5 + $0x118] sm:$0xff] %v745_v36  ;;  %853 = vst [vmem:[%s1797_s6 + $0x118] sm:$0xff] %v817_v37 }
 0x137   :  { %779 = vst [vmem:[%s1796_s5 + $0x108] sm:$0xff] %v743_v42  ;;  %851 = vst [vmem:[%s1797_s6 + $0x108] sm:$0xff] %v815_v44 }

// kernel: _lambda_.5
= control target key start
LH: loop header
LB: loop body
LE: loop exit
PB: predicated region body
PF: predicated region fallthrough
CT: control target
= control target key end

     0   :  { %v833_v0 = vmov 0   ;;  %v125_v3 = vlaneseq  ;;  %vm470_vm0 = vcmask 588800   ;;  %vm519_vm1 = vcmask 1043456   ;;  %s1528_s4 = inlined_call_operand.vmem [shape: bf16[200,128], index: 4, kind: input, shape index: {}]   ;;  %s1529_s0 = inlined_call_operand.vmem [shape: bf16[128,200], index: 0, kind: input, shape index: {}]   ;;  %s1530_s1 = inlined_call_operand.vmem [shape: bf16[128,200], index: 1, kind: input, shape index: {}]   ;;  %s1531_s2 = inlined_call_operand.vmem [shape: f32[1,200], index: 2, kind: input, shape index: {}]   ;;  %s1532_s3 = inlined_call_operand.vmem [shape: f32[1,200], index: 3, kind: input, shape index: {}]   ;;  %s1533_s5 = inlined_call_operand.vmem [shape: f32[1,128], index: 5, kind: input, shape index: {}]   ;;  %s1534_s6 = inlined_call_operand.vmem [shape: f32[128,128], index: 6, kind: output, shape index: {0}]   ;;  %s1535_s7 = inlined_call_operand.vmem [shape: f32[128,128], index: 7, kind: output, shape index: {1}]  }
   0x1   :  { %523 = vmatprep.subr.bf16.mxu0 %v833_v0  ;;  %793 = vmatprep.subr.bf16.mxu1 %v833_v0  ;;  %v820_v1 = vld [vmem:[%s1528_s4] sm:$0xff]   ;;  %v821_v2 = vld [vmem:[%s1528_s4 + $0x8] sm:$0xff]   ;;  %v822_v4 = vld [vmem:[%s1528_s4 + $0x10] sm:$0xff]  }
   0x2   :  { %524 = vmatpush1.bf16.msra.mxu0 %v820_v1  ;;  %806 = vmatpush1.bf16.msra.mxu1 %v820_v1  ;;  %v126_v5 = vshrl.u32 %v125_v3, 7  ;;  %v823_v6 = vld [vmem:[%s1528_s4 + $0x18] sm:$0xff]   ;;  %v824_v8 = vld [vmem:[%s1528_s4 + $0x20] sm:$0xff]   ;;  %v27_v11 = vld [vmem:[%s1529_s0 + $0x8] sm:$0xff] }
   0x3   :  { %525 = vmatprep.subr.bf16.mxu0 %v833_v0  ;;  %794 = vmatprep.subr.bf16.mxu1 %v833_v0  ;;  %v26_v9 = vld [vmem:[%s1529_s0] sm:$0xff]  ;;  %v75_v14 = vld [vmem:[%s1530_s1 + $0x8] sm:$0xff]  ;;  %v44_v16 = vunpack.c.l.bf16 %v27_v11  ;;  %v45_v17 = vunpack.c.h.bf16 %v27_v11  ;;  %v918_v21 = vld [vmem:[%s1529_s0 + $0x10] sm:$0xff] }
   0x4   :  { %v127_v7 = vsub.s32 0, %v126_v5  ;;  %v131_v10 = vsub.s32 1, %v126_v5  ;;  %v42_v12 = vunpack.c.l.bf16 %v26_v9  ;;  %v74_v13 = vld [vmem:[%s1530_s1] sm:$0xff]  ;;  %v43_v15 = vunpack.c.h.bf16 %v26_v9  ;;  %v927_v26 = vld [vmem:[%s1529_s0 + $0x18] sm:$0xff]  ;;  %v939_v31 = vld [vmem:[%s1530_s1 + $0x10] sm:$0xff] }
   0x5   :  { %v90_v18 = vunpack.c.l.bf16 %v74_v13  ;;  %v122_v19 = vld [vmem:[%s1531_s2] sm:$0x3]  ;;  %v91_v22 = vunpack.c.h.bf16 %v74_v13  ;;  %v92_v23 = vunpack.c.l.bf16 %v75_v14  ;;  %v93_v24 = vunpack.c.h.bf16 %v75_v14  ;;  %v825_v36 = vld [vmem:[%s1528_s4 + $0x28] sm:$0xff]   ;;  %v960_v44 = vld [vmem:[%s1530_s1 + $0x18] sm:$0xff] }
   0x6   :  { %526 = vmatpush1.bf16.msra.mxu0 %v821_v2  ;;  %807 = vmatpush1.bf16.msra.mxu1 %v821_v2  ;;  %v123_v20 = vld [vmem:[%s1532_s3] sm:$0x3]  ;;  %v922_v25 = vrot.slane %v122_v19, %v127_v7  ;;  %v929_v27 = vrot.slane %v122_v19, %v131_v10  ;;  %v47_v30 = vunpack.c.h.bf16 %v918_v21  ;;  %v49_v40 = vunpack.c.h.bf16 %v927_v26  ;;  %v826_v54 = vld [vmem:[%s1528_s4 + $0x30] sm:$0xff]  }
   0x7   :  { %527 = vmatprep.subr.bf16.mxu0 %v833_v0  ;;  %795 = vmatprep.subr.bf16.mxu1 %v833_v0  ;;  %v931_v28 = vrot.slane %v123_v20, %v127_v7  ;;  %v933_v29 = vrot.slane %v123_v20, %v131_v10  ;;  %v95_v45 = vunpack.c.h.bf16 %v939_v31  ;;  %v832_v55 = vld [vmem:[%s1528_s4 + $0x60] ss:$0 sps:$4 sm:$0xff]   ;;  %v97_v59 = vunpack.c.h.bf16 %v960_v44 }
   0x8   :  { %v135_v32 = vmul.f32 %v922_v25, %v42_v12  ;;  %v137_v33 = vmul.f32 %v922_v25, %v44_v16  ;;  %v274_v34 = vmul.f32 %v922_v25, %v90_v18  ;;  %v276_v35 = vmul.f32 %v922_v25, %v92_v23 }
   0x9   :  { %v136_v37 = vmul.f32 %v929_v27, %v43_v15  ;;  %v138_v38 = vmul.f32 %v929_v27, %v45_v17  ;;  %v179_v39 = vmul.f32 %v933_v29, %v91_v22  ;;  %v181_v41 = vmul.f32 %v933_v29, %v93_v24 }
   0xa   :  { %528 = vmatpush1.bf16.msra.mxu0 %v822_v4  ;;  %808 = vmatpush1.bf16.msra.mxu1 %v822_v4  ;;  %v243_v42 = vmul.f32 %v933_v29, %v43_v15  ;;  %v245_v43 = vmul.f32 %v933_v29, %v45_v17  ;;  %v275_v47 = vmul.f32 %v929_v27, %v91_v22  ;;  %v46_v3 = vunpack.c.l.bf16 %v918_v21  ;;  %v1015_v21 = vld [vmem:[%s1529_s0 + $0x28] sm:$0xff] }
   0xb   :  { %529 = vmatprep.subr.bf16.mxu0 %v833_v0  ;;  %796 = vmatprep.subr.bf16.mxu1 %v833_v0  ;;  %v211_v46 = vsub.f32 %v136_v37, %v179_v39  ;;  %v277_v48 = vmul.f32 %v929_v27, %v93_v24  ;;  %v178_v49 = vmul.f32 %v931_v28, %v90_v18  ;;  %v993_v9 = vsel %vm519_vm1, %v832_v55, 0 }
   0xc   :  { %v213_v50 = vsub.f32 %v138_v38, %v181_v41  ;;  %v180_v51 = vmul.f32 %v931_v28, %v92_v23  ;;  %v242_v52 = vmul.f32 %v931_v28, %v42_v12  ;;  %v244_v53 = vmul.f32 %v931_v28, %v44_v16  ;;  %v1005_v16 = vld [vmem:[%s1529_s0 + $0x20] sm:$0xff] }
   0xd   :  { %v307_v56 = vadd.f32 %v275_v47, %v243_v42  ;;  %v309_v57 = vadd.f32 %v277_v48, %v245_v43  ;;  %v210_v58 = vsub.f32 %v135_v32, %v178_v49  ;;  %v140_v1 = vmul.f32 %v929_v27, %v47_v30  ;;  %v828_v32 = vld [vmem:[%s1528_s4 + $0x40] sm:$0xff]   ;;  %v829_v49 = vld [vmem:[%s1528_s4 + $0x48] sm:$0xff]  }
   0xe   :  { %530 = vmatpush1.bf16.msra.mxu0 %v823_v6  ;;  %809 = vmatpush1.bf16.msra.mxu1 %v823_v6  ;;  %v339_v60 = vpack.c.bf16 %v213_v50, %v211_v46  ;;  %v212_v61 = vsub.f32 %v137_v33, %v180_v51  ;;  %v978_v62 = vadd.f32 %v274_v34, %v242_v52  ;;  %v48_v11 = vunpack.c.l.bf16 %v927_v26 }
   0xf   :  { %531 = vmatprep.subr.bf16.mxu0 %v833_v0  ;;  %797 = vmatprep.subr.bf16.mxu1 %v833_v0  ;;  %v355_v63 = vpack.c.bf16 %v309_v57, %v307_v56  ;;  %v142_v2 = vmul.f32 %v929_v27, %v49_v40  ;;  %v984_v4 = vadd.f32 %v276_v35, %v244_v53  ;;  %v94_v15 = vunpack.c.l.bf16 %v939_v31  ;;  %v1031_v31 = vld [vmem:[%s1530_s1 + $0x28] sm:$0xff] }
  0x10   :  { %776 = vmatprep.mubr.msk.bf16.mxu0 %vm470_vm0, %v339_v60  ;;  %v183_v5 = vmul.f32 %v933_v29, %v95_v45  ;;  %v185_v6 = vmul.f32 %v933_v29, %v97_v59  ;;  %v247_v7 = vmul.f32 %v933_v29, %v47_v30  ;;  %v279_v10 = vmul.f32 %v929_v27, %v95_v45  ;;  %v1026_v30 = vld [vmem:[%s1530_s1 + $0x20] sm:$0xff] }
  0x11   :  { %v999_v12 = vpack.c.bf16 %v212_v61, %v210_v58  ;;  %784 = vmatprep.mubr.msk.bf16.mxu1 %vm470_vm0, %v355_v63  ;;  %v249_v17 = vmul.f32 %v933_v29, %v49_v40  ;;  %v281_v18 = vmul.f32 %v929_v27, %v97_v59  ;;  %v96_v19 = vunpack.c.l.bf16 %v960_v44  ;;  %v1072_v58 = vld [vmem:[%s1529_s0 + $0x30] sm:$0xff] }
  0x12   :  { %532 = vmatpush1.bf16.msra.mxu0 %v824_v8  ;;  %810 = vmatpush1.bf16.msra.mxu1 %v824_v8  ;;  %v827_v8 = vld [vmem:[%s1528_s4 + $0x38] sm:$0xff]   ;;  %v215_v13 = vsub.f32 %v140_v1, %v183_v5  ;;  %v217_v14 = vsub.f32 %v142_v2, %v185_v6  ;;  %v139_v20 = vmul.f32 %v922_v25, %v46_v3  ;;  %v53_v40 = vunpack.c.h.bf16 %v1015_v21 }
  0x13   :  { %533 = vmatprep.subr.bf16.mxu0 %v833_v0  ;;  %798 = vmatprep.subr.bf16.mxu1 %v833_v0  ;;  %v354_v22 = vpack.c.bf16 %v984_v4, %v978_v62  ;;  %v1019_v23 = vadd.f32 %v279_v10, %v247_v7  ;;  %v141_v24 = vmul.f32 %v922_v25, %v48_v11  ;;  %v99_v43 = vunpack.c.h.bf16 %v1026_v30  ;;  %v1079_v1 = vld [vmem:[%s1529_s0 + $0x38] sm:$0xff]  ;;  %v830_v7 = vld [vmem:[%s1528_s4 + $0x50] sm:$0xff]  }
  0x14   :  { %v182_v26 = vmul.f32 %v931_v28, %v94_v15  ;;  %v184_v33 = vmul.f32 %v931_v28, %v96_v19  ;;  %v246_v34 = vmul.f32 %v931_v28, %v46_v3  ;;  %v278_v35 = vmul.f32 %v922_v25, %v94_v15  ;;  %v81_v15 = vld [vmem:[%s1530_s1 + $0x38] sm:$0xff] }
  0x15   :  { %v1042_v37 = vpack.c.bf16 %v217_v14, %v215_v13  ;;  %v248_v38 = vmul.f32 %v931_v28, %v48_v11  ;;  %v280_v39 = vmul.f32 %v922_v25, %v96_v19  ;;  %v1047_v41 = vadd.f32 %v281_v18, %v249_v17  ;;  %v80_v14 = vld [vmem:[%s1530_s1 + $0x30] sm:$0xff] }
  0x16   :  { %534 = vmatpush1.bf16.msra.mxu0 %v825_v36  ;;  %811 = vmatpush1.bf16.msra.mxu1 %v825_v36  ;;  %v51_v36 = vunpack.c.h.bf16 %v1005_v16  ;;  %v214_v42 = vsub.f32 %v139_v20, %v182_v26  ;;  %v101_v44 = vunpack.c.h.bf16 %v1031_v31  ;;  %v216_v45 = vsub.f32 %v141_v24, %v184_v33 }
  0x17   :  { %535 = vmatprep.subr.bf16.mxu0 %v833_v0  ;;  %799 = vmatprep.subr.bf16.mxu1 %v833_v0  ;;  %v146_v47 = vmul.f32 %v929_v27, %v53_v40  ;;  %v1057_v50 = vadd.f32 %v278_v35, %v246_v34  ;;  %v187_v51 = vmul.f32 %v933_v29, %v99_v43  ;;  %v50_v53 = vunpack.c.l.bf16 %v1005_v16  ;;  %v831_v34 = vld [vmem:[%s1528_s4 + $0x58] sm:$0xff]  }
  0x18   :  { %v144_v46 = vmul.f32 %v929_v27, %v51_v36  ;;  %v251_v48 = vmul.f32 %v933_v29, %v51_v36  ;;  %v189_v52 = vmul.f32 %v933_v29, %v101_v44  ;;  %v253_v55 = vmul.f32 %v933_v29, %v53_v40 }
  0x19   :  { %v283_v56 = vmul.f32 %v929_v27, %v99_v43  ;;  %v52_v57 = vunpack.c.l.bf16 %v1015_v21  ;;  %v285_v61 = vmul.f32 %v929_v27, %v101_v44  ;;  %v98_v63 = vunpack.c.l.bf16 %v1026_v30 }
  0x1a   :  { %536 = vmatpush1.bf16.msra.mxu0 %v826_v54  ;;  %812 = vmatpush1.bf16.msra.mxu1 %v826_v54  ;;  %v1064_v54 = vadd.f32 %v280_v39, %v248_v38  ;;  %v219_v59 = vsub.f32 %v144_v46, %v187_v51  ;;  %v221_v60 = vsub.f32 %v146_v47, %v189_v52  ;;  %v100_v6 = vunpack.c.l.bf16 %v1031_v31 }
  0x1b   :  { %537 = vmatprep.subr.bf16.mxu0 %v833_v0  ;;  %800 = vmatprep.subr.bf16.mxu1 %v833_v0  ;;  %v357_v2 = vpack.c.bf16 %v1047_v41, %v1019_v23  ;;  %v1083_v3 = vpack.c.bf16 %v216_v45, %v214_v42  ;;  %v1085_v5 = vadd.f32 %v283_v56, %v251_v48  ;;  %v55_v13 = vunpack.c.h.bf16 %v1072_v58  ;;  %v37_v23 = vld [vmem:[%s1529_s0 + $0x58] sm:$0xff] }
  0x1c   :  { %v143_v10 = vmul.f32 %v922_v25, %v50_v53  ;;  %v186_v11 = vmul.f32 %v931_v28, %v98_v63  ;;  %v356_v16 = vpack.c.bf16 %v1064_v54, %v1057_v50  ;;  %v145_v17 = vmul.f32 %v922_v25, %v52_v57 }
  0x1d   :  { %v188_v18 = vmul.f32 %v931_v28, %v100_v6  ;;  %v57_v19 = vunpack.c.h.bf16 %v1079_v1  ;;  %v1109_v20 = vpack.c.bf16 %v221_v60, %v219_v59  ;;  %v250_v21 = vmul.f32 %v931_v28, %v50_v53  ;;  %v35_v60 = vld [vmem:[%s1529_s0 + $0x48] sm:$0xff] }
  0x1e   :  { %538 = vmatpush1.bf16.msra.mxu0 %v827_v8  ;;  %813 = vmatpush1.bf16.msra.mxu1 %v827_v8  ;;  %v1091_v8 = vadd.f32 %v285_v61, %v253_v55  ;;  %v252_v24 = vmul.f32 %v931_v28, %v52_v57  ;;  %v282_v26 = vmul.f32 %v922_v25, %v98_v63  ;;  %v103_v31 = vunpack.c.h.bf16 %v80_v14 }
  0x1f   :  { %539 = vmatprep.subr.bf16.mxu0 %v833_v0  ;;  %801 = vmatprep.subr.bf16.mxu1 %v833_v0  ;;  %v284_v30 = vmul.f32 %v922_v25, %v100_v6  ;;  %v148_v33 = vmul.f32 %v929_v27, %v55_v13  ;;  %v218_v36 = vsub.f32 %v143_v10, %v186_v11  ;;  %v54_v39 = vunpack.c.l.bf16 %v1072_v58  ;;  %v83_v10 = vld [vmem:[%s1530_s1 + $0x48] sm:$0xff] }
  0x20   :  { %v359_v35 = vpack.c.bf16 %v1091_v8, %v1085_v5  ;;  %v150_v38 = vmul.f32 %v929_v27, %v57_v19  ;;  %v220_v40 = vsub.f32 %v145_v17, %v188_v18  ;;  %v191_v42 = vmul.f32 %v933_v29, %v103_v31 }
  0x21   :  { %v56_v44 = vunpack.c.l.bf16 %v1079_v1  ;;  %v1128_v45 = vadd.f32 %v282_v26, %v250_v21  ;;  %v255_v46 = vmul.f32 %v933_v29, %v55_v13  ;;  %v257_v47 = vmul.f32 %v933_v29, %v57_v19 }
  0x22   :  { %540 = vmatpush1.bf16.msra.mxu0 %v828_v32  ;;  %814 = vmatpush1.bf16.msra.mxu1 %v828_v32  ;;  %v105_v32 = vunpack.c.h.bf16 %v81_v15  ;;  %v287_v48 = vmul.f32 %v929_v27, %v103_v31  ;;  %v1138_v51 = vadd.f32 %v284_v30, %v252_v24  ;;  %v223_v52 = vsub.f32 %v148_v33, %v191_v42 }
  0x23   :  { %541 = vmatprep.subr.bf16.mxu0 %v833_v0  ;;  %802 = vmatprep.subr.bf16.mxu1 %v833_v0  ;;  %v102_v55 = vunpack.c.l.bf16 %v80_v14  ;;  %v104_v57 = vunpack.c.l.bf16 %v81_v15  ;;  %v147_v58 = vmul.f32 %v922_v25, %v54_v39  ;;  %v149_v59 = vmul.f32 %v922_v25, %v56_v44 }
  0x24   :  { %v193_v43 = vmul.f32 %v933_v29, %v105_v32  ;;  %v289_v53 = vmul.f32 %v929_v27, %v105_v32  ;;  %v1148_v61 = vadd.f32 %v287_v48, %v255_v46  ;;  %v256_v13 = vmul.f32 %v931_v28, %v56_v44 }
  0x25   :  { %v190_v1 = vmul.f32 %v931_v28, %v102_v55  ;;  %v192_v11 = vmul.f32 %v931_v28, %v104_v57  ;;  %v286_v14 = vmul.f32 %v922_v25, %v102_v55  ;;  %v1164_v15 = vpack.c.bf16 %v220_v40, %v218_v36  ;;  %v84_v55 = vld [vmem:[%s1530_s1 + $0x50] sm:$0xff] }
  0x26   :  { %542 = vmatpush1.bf16.msra.mxu0 %v829_v49  ;;  %815 = vmatpush1.bf16.msra.mxu1 %v829_v49  ;;  %v1136_v49 = vld [vmem:[%s1529_s0 + $0x40] sm:$0xff]  ;;  %v225_v56 = vsub.f32 %v150_v38, %v193_v43  ;;  %v1150_v63 = vadd.f32 %v289_v53, %v257_v47  ;;  %v288_v18 = vmul.f32 %v922_v25, %v104_v57  ;;  %v61_v19 = vunpack.c.h.bf16 %v35_v60 }
  0x27   :  { %543 = vmatprep.subr.bf16.mxu0 %v833_v0  ;;  %803 = vmatprep.subr.bf16.mxu1 %v833_v0  ;;  %v59_v6 = vunpack.c.h.bf16 %v1136_v49  ;;  %v222_v17 = vsub.f32 %v147_v58, %v190_v1  ;;  %v358_v21 = vpack.c.bf16 %v1138_v51, %v1128_v45  ;;  %v224_v24 = vsub.f32 %v149_v59, %v192_v11 }
  0x28   :  { %v109_v30 = vunpack.c.h.bf16 %v83_v10  ;;  %v1171_v31 = vpack.c.bf16 %v225_v56, %v223_v52  ;;  %v1175_v33 = vadd.f32 %v288_v18, %v256_v13  ;;  %v361_v36 = vpack.c.bf16 %v1150_v63, %v1148_v61  ;;  %v85_v56 = vld [vmem:[%s1530_s1 + $0x58] sm:$0xff] }
  0x29   :  { %v154_v38 = vmul.f32 %v929_v27, %v61_v19  ;;  %v1187_v40 = vpack.c.bf16 %v224_v24, %v222_v17  ;;  %v259_v42 = vmul.f32 %v933_v29, %v59_v6  ;;  %v58_v44 = vunpack.c.l.bf16 %v1136_v49 }
  0x2a   :  { %544 = vmatpush1.bf16.msra.mxu0 %v830_v7  ;;  %816 = vmatpush1.bf16.msra.mxu1 %v830_v7  ;;  %v82_v7 = vld [vmem:[%s1530_s1 + $0x40] sm:$0xff]  ;;  %v293_v62 = vmul.f32 %v929_v27, %v109_v30  ;;  %v60_v4 = vunpack.c.l.bf16 %v35_v60  ;;  %v108_v48 = vunpack.c.l.bf16 %v83_v10  ;;  %v65_v10 = vunpack.c.h.bf16 %v37_v23 }
  0x2b   :  { %545 = vmatprep.subr.bf16.mxu0 %v833_v0  ;;  %804 = vmatprep.subr.bf16.mxu1 %v833_v0  ;;  %v107_v26 = vunpack.c.h.bf16 %v82_v7  ;;  %v151_v49 = vmul.f32 %v922_v25, %v58_v44  ;;  %v258_v53 = vmul.f32 %v931_v28, %v58_v44  ;;  %v111_v13 = vunpack.c.h.bf16 %v84_v55 }
  0x2c   :  { %v196_v58 = vmul.f32 %v931_v28, %v108_v48  ;;  %v260_v59 = vmul.f32 %v931_v28, %v60_v4  ;;  %v265_v50 = vmul.f32 %v933_v29, %v65_v10  ;;  %v112_v5 = vunpack.c.l.bf16 %v85_v56 }
  0x2d   :  { %v291_v43 = vmul.f32 %v929_v27, %v107_v26  ;;  %v295_v54 = vmul.f32 %v929_v27, %v111_v13 }
  0x2e   :  { %546 = vmatpush1.bf16.msra.mxu0 %v831_v34  ;;  %817 = vmatpush1.bf16.msra.mxu1 %v831_v34  ;;  %v152_v34 = vmul.f32 %v929_v27, %v59_v6  ;;  %v292_v6 = vmul.f32 %v922_v25, %v108_v48  ;;  %v86_v48 = vld [vmem:[%s1530_s1 + $0x60] sm:$0xff] }
  0x2f   :  { %547 = vmatprep.subr.bf16.mxu0 %v833_v0  ;;  %805 = vmatprep.subr.bf16.mxu1 %v833_v0  ;;  %v254_v0 = vmul.f32 %v931_v28, %v54_v39  ;;  %v197_v39 = vmul.f32 %v933_v29, %v109_v30  ;;  %v1218_v57 = vadd.f32 %v291_v43, %v259_v42  ;;  %v110_v43 = vunpack.c.l.bf16 %v84_v55 }
  0x30   :  { %v199_v30 = vmul.f32 %v933_v29, %v111_v13  ;;  %v114_v63 = vunpack.c.l.bf16 %v86_v48 }
  0x31   :  { %v1173_v32 = vadd.f32 %v286_v14, %v254_v0  ;;  %v229_v41 = vsub.f32 %v154_v38, %v197_v39  ;;  %v113_v14 = vunpack.c.h.bf16 %v85_v56 }
  0x32   :  { %548 = vmatpush1.bf16.msra.mxu0 %v993_v9  ;;  %818 = vmatpush1.bf16.msra.mxu1 %v993_v9  ;;  %v195_v9 = vmul.f32 %v933_v29, %v107_v26  ;;  %v1235_v26 = vadd.f32 %v292_v6, %v260_v59  ;;  %v115_v6 = vunpack.c.h.bf16 %v86_v48 }
  0x33   :  { %v360_v46 = vpack.c.bf16 %v1175_v33, %v1173_v32  ;;  %v297_v42 = vmul.f32 %v929_v27, %v113_v14 }
  0x34   :  { %v227_v47 = vsub.f32 %v152_v34, %v195_v9  ;;  %v201_v34 = vmul.f32 %v933_v29, %v113_v14  ;;  %v203_v51 = vmul.f32 %v933_v29, %v115_v6 }
  0x35   :  { %556 = vmatmul.mubr.bf16.vlgmr.msra.gmra.mrb[0].mxu0 %v999_v12  ;;  %620 = vmatmul.mubr.bf16.vlgmr.msra.gmra.mrb[0].mxu1 %v354_v22  ;;  %v261_v12 = vmul.f32 %v933_v29, %v61_v19  ;;  %v106_v22 = vunpack.c.l.bf16 %v82_v7  ;;  %v158_v19 = vmul.f32 %v929_v27, %v65_v10 }
  0x36   :  { %777 = vmatprep.mubr.msk.bf16.mxu0 %vm470_vm0, %v1042_v37  ;;  %785 = vmatprep.mubr.msk.bf16.mxu1 %vm470_vm0, %v357_v2  ;;  %v36_v37 = vld [vmem:[%s1529_s0 + $0x50] sm:$0xff]  ;;  %v153_v2 = vmul.f32 %v922_v25, %v60_v4 }
  0x37   :  { %v194_v52 = vmul.f32 %v931_v28, %v106_v22  ;;  %v290_v60 = vmul.f32 %v922_v25, %v106_v22  ;;  %v1223_v1 = vadd.f32 %v293_v62, %v261_v12  ;;  %v63_v7 = vunpack.c.h.bf16 %v36_v37  ;;  %v39_v12 = vld [vmem:[%s1529_s0 + $0x68] sm:$0xff] }
  0x38   :  { %v228_v0 = vsub.f32 %v153_v2, %v196_v58  ;;  %v62_v38 = vunpack.c.l.bf16 %v36_v37  ;;  %v233_v39 = vsub.f32 %v158_v19, %v201_v34  ;;  %v1267_v22 = vadd.f32 %v297_v42, %v265_v50  ;;  %v87_v2 = vld [vmem:[%s1530_s1 + $0x68] sm:$0xff]  ;;  %v40_v50 = vld [vmem:[%s1529_s0 + $0x70] sm:$0xff]  ;;  %v41_v42 = vld [vmem:[%s1529_s0 + $0x78] sm:$0xff] }
  0x39   :  { %v226_v11 = vsub.f32 %v151_v49, %v194_v52  ;;  %v1226_v17 = vadd.f32 %v290_v60, %v258_v53  ;;  %v156_v18 = vmul.f32 %v929_v27, %v63_v7  ;;  %v263_v24 = vmul.f32 %v933_v29, %v63_v7 }
  0x3a   :  { %v1255_v8 = vmul.f32 %v922_v25, %v62_v38  ;;  %v1279_v37 = vmul.f32 %v931_v28, %v112_v5  ;;  %v69_v56 = vunpack.c.h.bf16 %v39_v12  ;;  %v1296_v60 = vmul.f32 %v922_v25, %v112_v5  ;;  %v89_v5 = vld [vmem:[%s1530_s1 + $0x78] sm:$0xff] }
  0x3b   :  { %v231_v9 = vsub.f32 %v156_v18, %v199_v30  ;;  %v1252_v44 = vadd.f32 %v295_v54, %v263_v24  ;;  %v1263_v62 = vpack.c.bf16 %v228_v0, %v226_v11  ;;  %v362_v4 = vpack.c.bf16 %v1235_v26, %v1226_v17 }
  0x3c   :  { %v117_v7 = vunpack.c.h.bf16 %v87_v2  ;;  %v162_v11 = vmul.f32 %v929_v27, %v69_v56  ;;  %v269_v14 = vmul.f32 %v933_v29, %v69_v56  ;;  %v299_v18 = vmul.f32 %v929_v27, %v115_v6 }
  0x3d   :  { %564 = vmatmul.mubr.bf16.gmra.mrb[4].mxu0 %v1083_v3  ;;  %628 = vmatmul.mubr.bf16.gmra.mrb[4].mxu1 %v356_v16  ;;  %v1245_v3 = vpack.c.bf16 %v229_v41, %v227_v47  ;;  %v64_v16 = vunpack.c.l.bf16 %v37_v23  ;;  %v1270_v47 = vmul.f32 %v931_v28, %v110_v43  ;;  %v262_v23 = vmul.f32 %v931_v28, %v62_v38 }
  0x3e   :  { %778 = vmatprep.mubr.msk.bf16.mxu0 %vm470_vm0, %v1109_v20  ;;  %786 = vmatprep.mubr.msk.bf16.mxu1 %vm470_vm0, %v359_v35  ;;  %v363_v20 = vpack.c.bf16 %v1223_v1, %v1218_v57  ;;  %v38_v35 = vld [vmem:[%s1529_s0 + $0x60] sm:$0xff]  ;;  %v294_v41 = vmul.f32 %v922_v25, %v110_v43  ;;  %v1286_v52 = vpack.c.bf16 %v233_v39, %v231_v9  ;;  %v68_v61 = vunpack.c.l.bf16 %v39_v12  ;;  %v88_v43 = vld [vmem:[%s1530_s1 + $0x70] sm:$0xff] }
  0x3f   :  { %v1276_v49 = vmul.f32 %v922_v25, %v64_v16  ;;  %v1289_v53 = vmul.f32 %v931_v28, %v64_v16  ;;  %v67_v55 = vunpack.c.h.bf16 %v38_v35  ;;  %v365_v58 = vpack.c.bf16 %v1267_v22, %v1252_v44  ;;  %v1398_v44 = vld [vmem:[%s1533_s5] ss:$0 sm:$0xff] }
  0x40   :  { %v230_v59 = vsub.f32 %v1255_v8, %v1270_v47  ;;  %v1313_v45 = vadd.f32 %v294_v41, %v262_v23  ;;  %v205_v13 = vmul.f32 %v933_v29, %v117_v7  ;;  %v161_v54 = vmul.f32 %v922_v25, %v68_v61 }
  0x41   :  { %v160_v10 = vmul.f32 %v929_v27, %v67_v55  ;;  %v267_v0 = vmul.f32 %v933_v29, %v67_v55  ;;  %v202_v16 = vmul.f32 %v931_v28, %v114_v63  ;;  %v268_v48 = vmul.f32 %v931_v28, %v68_v61 }
  0x42   :  { %v237_v24 = vsub.f32 %v162_v11, %v205_v13  ;;  %v298_v23 = vmul.f32 %v922_v25, %v114_v63  ;;  %v71_v56 = vunpack.c.h.bf16 %v40_v50  ;;  %v121_v11 = vunpack.c.h.bf16 %v89_v5 }
  0x43   :  { %v235_v19 = vsub.f32 %v160_v10, %v203_v51  ;;  %v1320_v30 = vadd.f32 %v299_v18, %v267_v0  ;;  %v119_v10 = vunpack.c.h.bf16 %v88_v43 }
  0x44   :  { %v271_v13 = vmul.f32 %v933_v29, %v71_v56  ;;  %v305_v1 = vmul.f32 %v929_v27, %v121_v11 }
  0x45   :  { %572 = vmatmul.mubr.bf16.gmra.mrb[8].mxu0 %v1164_v15  ;;  %636 = vmatmul.mubr.bf16.gmra.mrb[8].mxu1 %v358_v21  ;;  %v232_v15 = vsub.f32 %v1276_v49, %v1279_v37  ;;  %v66_v21 = vunpack.c.l.bf16 %v38_v35  ;;  %v351_v35 = vpack.c.bf16 %v237_v24, %v235_v19  ;;  %v207_v33 = vmul.f32 %v933_v29, %v119_v10 }
  0x46   :  { %779 = vmatprep.mubr.msk.bf16.mxu0 %vm470_vm0, %v1171_v31  ;;  %787 = vmatprep.mubr.msk.bf16.mxu1 %vm470_vm0, %v361_v36  ;;  %v301_v31 = vmul.f32 %v929_v27, %v117_v7  ;;  %v116_v36 = vunpack.c.l.bf16 %v87_v2  ;;  %v73_v7 = vunpack.c.h.bf16 %v41_v42  ;;  %v303_v57 = vmul.f32 %v929_v27, %v119_v10 }
  0x47   :  { %v159_v38 = vmul.f32 %v922_v25, %v66_v21  ;;  %v266_v39 = vmul.f32 %v931_v28, %v66_v21  ;;  %v70_v21 = vunpack.c.l.bf16 %v40_v50  ;;  %v118_v19 = vunpack.c.l.bf16 %v88_v43 }
  0x48   :  { %v1322_v34 = vadd.f32 %v301_v31, %v269_v14  ;;  %v204_v9 = vmul.f32 %v931_v28, %v116_v36  ;;  %v300_v55 = vmul.f32 %v922_v25, %v116_v36  ;;  %v166_v32 = vmul.f32 %v929_v27, %v73_v7 }
  0x49   :  { %v234_v41 = vsub.f32 %v159_v38, %v202_v16  ;;  %v330_v6 = vadd.f32 %v298_v23, %v266_v39  ;;  %v72_v31 = vunpack.c.l.bf16 %v41_v42  ;;  %v335_v61 = vadd.f32 %v303_v57, %v271_v13 }
  0x4a   :  { %v367_v12 = vpack.c.bf16 %v1322_v34, %v1320_v30  ;;  %v236_v2 = vsub.f32 %v161_v54, %v204_v9  ;;  %v332_v51 = vadd.f32 %v300_v55, %v268_v48  ;;  %v120_v36 = vunpack.c.l.bf16 %v89_v5 }
  0x4b   :  { %v163_v24 = vmul.f32 %v922_v25, %v70_v21  ;;  %v165_v34 = vmul.f32 %v922_v25, %v72_v31  ;;  %v206_v38 = vmul.f32 %v931_v28, %v118_v19  ;;  %v302_v16 = vmul.f32 %v922_v25, %v118_v19 }
  0x4c   :  { %v350_v0 = vpack.c.bf16 %v236_v2, %v234_v41  ;;  %v366_v14 = vpack.c.bf16 %v332_v51, %v330_v6  ;;  %v208_v54 = vmul.f32 %v931_v28, %v120_v36  ;;  %v328_v9 = vadd.f32 %v1296_v60, %v1289_v53 }
  0x4d   :  { %580 = vmatmul.mubr.bf16.gmra.mrb[12].mxu0 %v1187_v40  ;;  %644 = vmatmul.mubr.bf16.gmra.mrb[12].mxu1 %v360_v46  ;;  %v164_v40 = vmul.f32 %v929_v27, %v71_v56  ;;  %v209_v46 = vmul.f32 %v933_v29, %v121_v11  ;;  %v272_v27 = vmul.f32 %v931_v28, %v72_v31 }
  0x4e   :  { %780 = vmatprep.mubr.msk.bf16.mxu0 %vm470_vm0, %v1245_v3  ;;  %788 = vmatprep.mubr.msk.bf16.mxu1 %vm470_vm0, %v363_v20  ;;  %v273_v3 = vmul.f32 %v933_v29, %v73_v7  ;;  %v270_v29 = vmul.f32 %v931_v28, %v70_v21  ;;  %v238_v39 = vsub.f32 %v163_v24, %v206_v38 }
  0x4f   :  { %v239_v20 = vsub.f32 %v164_v40, %v207_v33  ;;  %v241_v18 = vsub.f32 %v166_v32, %v209_v46  ;;  %v304_v42 = vmul.f32 %v922_v25, %v120_v36  ;;  %v240_v28 = vsub.f32 %v165_v34, %v208_v54 }
  0x50   :  { %v337_v63 = vadd.f32 %v305_v1, %v273_v3  ;;  %v348_v17 = vpack.c.bf16 %v232_v15, %v230_v59  ;;  %v364_v25 = vpack.c.bf16 %v328_v9, %v1313_v45 }
  0x51   :  { %v353_v30 = vpack.c.bf16 %v241_v18, %v239_v20  ;;  %v336_v43 = vadd.f32 %v304_v42, %v272_v27  ;;  %v352_v5 = vpack.c.bf16 %v240_v28, %v238_v39 }
  0x52   :  { %v369_v50 = vpack.c.bf16 %v337_v63, %v335_v61 }
  0x55   :  { %588 = vmatmul.mubr.bf16.gmra.mrb[16].mxu0 %v1263_v62  ;;  %652 = vmatmul.mubr.bf16.gmra.mrb[16].mxu1 %v362_v4  ;;  %v334_v62 = vadd.f32 %v302_v16, %v270_v29 }
  0x56   :  { %781 = vmatprep.mubr.msk.bf16.mxu0 %vm470_vm0, %v1286_v52  ;;  %789 = vmatprep.mubr.msk.bf16.mxu1 %vm470_vm0, %v365_v58 }
  0x57   :  { %v368_v26 = vpack.c.bf16 %v336_v43, %v334_v62 }
  0x5d   :  { %596 = vmatmul.mubr.bf16.gmra.mrb[20].mxu0 %v348_v17  ;;  %660 = vmatmul.mubr.bf16.gmra.mrb[20].mxu1 %v364_v25 }
  0x5e   :  { %782 = vmatprep.mubr.msk.bf16.mxu0 %vm470_vm0, %v351_v35  ;;  %790 = vmatprep.mubr.msk.bf16.mxu1 %vm470_vm0, %v367_v12 }
  0x65   :  { %604 = vmatmul.mubr.bf16.gmra.mrb[24].mxu0 %v350_v0  ;;  %668 = vmatmul.mubr.bf16.gmra.mrb[24].mxu1 %v366_v14 }
  0x66   :  { %783 = vmatprep.mubr.msk.bf16.mxu0 %vm470_vm0, %v353_v30  ;;  %791 = vmatprep.mubr.msk.bf16.mxu1 %vm470_vm0, %v369_v50 }
  0x6d   :  { %612 = vmatmul.mubr.bf16.gmra.mrb[28].mxu0 %v352_v5  ;;  %676 = vmatmul.mubr.bf16.gmra.mrb[28].mxu1 %v368_v26 }
 0x108   :  { %v557_v8 = vpop.f32.mrb[0].mxu0  ;;  %v621_v4 = vpop.f32.mrb[0].mxu1 }
 0x109   :  { %v691_v22 = vadd.f32 %v1398_v44, %v557_v8  ;;  %v723_v47 = vadd.f32 %v1398_v44, %v621_v4  ;;  %v559_v49 = vpop.f32.mrb[1].mxu0  ;;  %v623_v37 = vpop.f32.mrb[1].mxu1 }
 0x10a   :  { %v560_v52 = vpop.f32.mrb[2].mxu0  ;;  %v624_v53 = vpop.f32.mrb[2].mxu1 }
 0x10b   :  { %707 = vst [vmem:[%s1534_s6] sm:$0xff] %v691_v22  ;;  %739 = vst [vmem:[%s1535_s7] sm:$0xff] %v723_v47  ;;  %v692_v58 = vadd.f32 %v1398_v44, %v560_v52  ;;  %v724_v59 = vadd.f32 %v1398_v44, %v624_v53  ;;  %v562_v60 = vpop.f32.mrb[3].mxu0  ;;  %v626_v15 = vpop.f32.mrb[3].mxu1 }
 0x10d   :  { %708 = vst [vmem:[%s1534_s6 + $0x8] sm:$0xff] %v692_v58  ;;  %740 = vst [vmem:[%s1535_s7 + $0x8] sm:$0xff] %v724_v59 }
 0x110   :  { %v565_v45 = vpop.f32.mrb[4].mxu0  ;;  %v629_v35 = vpop.f32.mrb[4].mxu1 }
 0x111   :  { %v693_v12 = vadd.f32 %v1398_v44, %v565_v45  ;;  %v725_v48 = vadd.f32 %v1398_v44, %v629_v35  ;;  %v567_v23 = vpop.f32.mrb[5].mxu0  ;;  %v631_v41 = vpop.f32.mrb[5].mxu1 }
 0x112   :  { %v568_v2 = vpop.f32.mrb[6].mxu0  ;;  %v632_v55 = vpop.f32.mrb[6].mxu1 }
 0x113   :  { %709 = vst [vmem:[%s1534_s6 + $0x10] sm:$0xff] %v693_v12  ;;  %741 = vst [vmem:[%s1535_s7 + $0x10] sm:$0xff] %v725_v48  ;;  %v694_v56 = vadd.f32 %v1398_v44, %v568_v2  ;;  %v726_v6 = vadd.f32 %v1398_v44, %v632_v55  ;;  %v570_v7 = vpop.f32.mrb[7].mxu0  ;;  %v634_v10 = vpop.f32.mrb[7].mxu1 }
 0x115   :  { %710 = vst [vmem:[%s1534_s6 + $0x18] sm:$0xff] %v694_v56  ;;  %742 = vst [vmem:[%s1535_s7 + $0x18] sm:$0xff] %v726_v6 }
 0x118   :  { %v573_v11 = vpop.f32.mrb[8].mxu0  ;;  %v637_v0 = vpop.f32.mrb[8].mxu1 }
 0x119   :  { %v695_v51 = vadd.f32 %v1398_v44, %v573_v11  ;;  %v727_v40 = vadd.f32 %v1398_v44, %v637_v0  ;;  %v575_v21 = vpop.f32.mrb[9].mxu0  ;;  %v639_v32 = vpop.f32.mrb[9].mxu1 }
 0x11a   :  { %v576_v33 = vpop.f32.mrb[10].mxu0  ;;  %v640_v46 = vpop.f32.mrb[10].mxu1 }
 0x11b   :  { %711 = vst [vmem:[%s1534_s6 + $0x20] sm:$0xff] %v695_v51  ;;  %743 = vst [vmem:[%s1535_s7 + $0x20] sm:$0xff] %v727_v40  ;;  %v696_v13 = vadd.f32 %v1398_v44, %v576_v33  ;;  %v728_v14 = vadd.f32 %v1398_v44, %v640_v46  ;;  %v578_v3 = vpop.f32.mrb[11].mxu0  ;;  %v642_v57 = vpop.f32.mrb[11].mxu1 }
 0x11d   :  { %712 = vst [vmem:[%s1534_s6 + $0x28] sm:$0xff] %v696_v13  ;;  %744 = vst [vmem:[%s1535_s7 + $0x28] sm:$0xff] %v728_v14 }
 0x120   :  { %v581_v1 = vpop.f32.mrb[12].mxu0  ;;  %v645_v20 = vpop.f32.mrb[12].mxu1 }
 0x121   :  { %v697_v18 = vadd.f32 %v1398_v44, %v581_v1  ;;  %v729_v31 = vadd.f32 %v1398_v44, %v645_v20  ;;  %v583_v19 = vpop.f32.mrb[13].mxu0  ;;  %v647_v61 = vpop.f32.mrb[13].mxu1 }
 0x122   :  { %v584_v63 = vpop.f32.mrb[14].mxu0  ;;  %v648_v36 = vpop.f32.mrb[14].mxu1 }
 0x123   :  { %713 = vst [vmem:[%s1534_s6 + $0x30] sm:$0xff] %v697_v18  ;;  %745 = vst [vmem:[%s1535_s7 + $0x30] sm:$0xff] %v729_v31  ;;  %v698_v24 = vadd.f32 %v1398_v44, %v584_v63  ;;  %v730_v30 = vadd.f32 %v1398_v44, %v648_v36  ;;  %v586_v34 = vpop.f32.mrb[15].mxu0  ;;  %v650_v38 = vpop.f32.mrb[15].mxu1 }
 0x125   :  { %714 = vst [vmem:[%s1534_s6 + $0x38] sm:$0xff] %v698_v24  ;;  %746 = vst [vmem:[%s1535_s7 + $0x38] sm:$0xff] %v730_v30 }
 0x128   :  { %v589_v29 = vpop.f32.mrb[16].mxu0  ;;  %v653_v50 = vpop.f32.mrb[16].mxu1 }
 0x129   :  { %v699_v54 = vadd.f32 %v1398_v44, %v589_v29  ;;  %v731_v27 = vadd.f32 %v1398_v44, %v653_v50  ;;  %v591_v16 = vpop.f32.mrb[17].mxu0  ;;  %v655_v9 = vpop.f32.mrb[17].mxu1 }
 0x12a   :  { %v592_v39 = vpop.f32.mrb[18].mxu0  ;;  %v656_v42 = vpop.f32.mrb[18].mxu1 }
 0x12b   :  { %715 = vst [vmem:[%s1534_s6 + $0x40] sm:$0xff] %v699_v54  ;;  %747 = vst [vmem:[%s1535_s7 + $0x40] sm:$0xff] %v731_v27  ;;  %v700_v28 = vadd.f32 %v1398_v44, %v592_v39  ;;  %v732_v62 = vadd.f32 %v1398_v44, %v656_v42  ;;  %v594_v43 = vpop.f32.mrb[19].mxu0  ;;  %v658_v5 = vpop.f32.mrb[19].mxu1 }
 0x12d   :  { %716 = vst [vmem:[%s1534_s6 + $0x48] sm:$0xff] %v700_v28  ;;  %748 = vst [vmem:[%s1535_s7 + $0x48] sm:$0xff] %v732_v62 }
 0x130   :  { %v597_v17 = vpop.f32.mrb[20].mxu0  ;;  %v661_v25 = vpop.f32.mrb[20].mxu1 }
 0x131   :  { %v701_v26 = vadd.f32 %v1398_v44, %v597_v17  ;;  %v733_v8 = vadd.f32 %v1398_v44, %v661_v25  ;;  %v599_v4 = vpop.f32.mrb[21].mxu0  ;;  %v663_v22 = vpop.f32.mrb[21].mxu1 }
 0x132   :  { %v600_v47 = vpop.f32.mrb[22].mxu0  ;;  %v664_v49 = vpop.f32.mrb[22].mxu1 }
 0x133   :  { %717 = vst [vmem:[%s1534_s6 + $0x50] sm:$0xff] %v701_v26  ;;  %749 = vst [vmem:[%s1535_s7 + $0x50] sm:$0xff] %v733_v8  ;;  %v702_v37 = vadd.f32 %v1398_v44, %v600_v47  ;;  %v734_v52 = vadd.f32 %v1398_v44, %v664_v49  ;;  %v602_v53 = vpop.f32.mrb[23].mxu0  ;;  %v666_v58 = vpop.f32.mrb[23].mxu1 }
 0x135   :  { %718 = vst [vmem:[%s1534_s6 + $0x58] sm:$0xff] %v702_v37  ;;  %750 = vst [vmem:[%s1535_s7 + $0x58] sm:$0xff] %v734_v52 }
 0x138   :  { %v605_v59 = vpop.f32.mrb[24].mxu0  ;;  %v669_v60 = vpop.f32.mrb[24].mxu1 }
 0x139   :  { %v703_v15 = vadd.f32 %v1398_v44, %v605_v59  ;;  %v735_v45 = vadd.f32 %v1398_v44, %v669_v60  ;;  %v607_v35 = vpop.f32.mrb[25].mxu0  ;;  %v671_v12 = vpop.f32.mrb[25].mxu1 }
 0x13a   :  { %v608_v48 = vpop.f32.mrb[26].mxu0  ;;  %v672_v23 = vpop.f32.mrb[26].mxu1 }
 0x13b   :  { %719 = vst [vmem:[%s1534_s6 + $0x60] sm:$0xff] %v703_v15  ;;  %751 = vst [vmem:[%s1535_s7 + $0x60] sm:$0xff] %v735_v45  ;;  %v704_v41 = vadd.f32 %v1398_v44, %v608_v48  ;;  %v736_v2 = vadd.f32 %v1398_v44, %v672_v23  ;;  %v610_v55 = vpop.f32.mrb[27].mxu0  ;;  %v674_v56 = vpop.f32.mrb[27].mxu1 }
 0x13d   :  { %720 = vst [vmem:[%s1534_s6 + $0x68] sm:$0xff] %v704_v41  ;;  %752 = vst [vmem:[%s1535_s7 + $0x68] sm:$0xff] %v736_v2 }
 0x140   :  { %v613_v6 = vpop.f32.mrb[28].mxu0  ;;  %v677_v7 = vpop.f32.mrb[28].mxu1 }
 0x141   :  { %v705_v10 = vadd.f32 %v1398_v44, %v613_v6  ;;  %v737_v11 = vadd.f32 %v1398_v44, %v677_v7  ;;  %v615_v0 = vpop.f32.mrb[29].mxu0  ;;  %v679_v51 = vpop.f32.mrb[29].mxu1 }
 0x142   :  { %v616_v40 = vpop.f32.mrb[30].mxu0  ;;  %v680_v21 = vpop.f32.mrb[30].mxu1 }
 0x143   :  { %721 = vst [vmem:[%s1534_s6 + $0x70] sm:$0xff] %v705_v10  ;;  %753 = vst [vmem:[%s1535_s7 + $0x70] sm:$0xff] %v737_v11  ;;  %v706_v32 = vadd.f32 %v1398_v44, %v616_v40  ;;  %v738_v33 = vadd.f32 %v1398_v44, %v680_v21  ;;  %v618_v46 = vpop.f32.mrb[31].mxu0  ;;  %v682_v13 = vpop.f32.mrb[31].mxu1 }
 0x145   :  { %722 = vst [vmem:[%s1534_s6 + $0x78] sm:$0xff] %v706_v32  ;;  %754 = vst [vmem:[%s1535_s7 + $0x78] sm:$0xff] %v738_v33 }

// kernel: _lambda_.7
= control target key start
LH: loop header
LB: loop body
LE: loop exit
PB: predicated region body
PF: predicated region fallthrough
CT: control target
= control target key end

     0   :  { %v53_v23 = vlaneseq  ;;  %v1076_v54 = vmov 0   ;;  %vm690_vm0 = vcmask 850944   ;;  %vm694_vm1 = vcmask 1043456   ;;  %s1398_s4 = inlined_call_operand.vmem [shape: bf16[1000,128], index: 4, kind: input, shape index: {}]   ;;  %s1399_s0 = inlined_call_operand.vmem [shape: bf16[8,1000], index: 0, kind: input, shape index: {}]   ;;  %s1400_s1 = inlined_call_operand.vmem [shape: bf16[8,1000], index: 1, kind: input, shape index: {}]   ;;  %s1401_s2 = inlined_call_operand.vmem [shape: f32[1,1000], index: 2, kind: input, shape index: {}]   ;;  %s1402_s3 = inlined_call_operand.vmem [shape: f32[1,1000], index: 3, kind: input, shape index: {}]   ;;  %s1403_s5 = inlined_call_operand.vmem [shape: f32[1,128], index: 5, kind: input, shape index: {}]   ;;  %s1404_s6 = inlined_call_operand.vmem [shape: f32[8,128], index: 6, kind: output, shape index: {0}]   ;;  %s1405_s7 = inlined_call_operand.vmem [shape: f32[8,128], index: 7, kind: output, shape index: {1}]  }
   0x1   :  { %v1013_v0 = vld [vmem:[%s1398_s4 + $0x40] sm:$0xff]   ;;  %v1017_v4 = vld [vmem:[%s1398_s4 + $0x48] sm:$0xff]   ;;  %v1021_v8 = vld [vmem:[%s1398_s4 + $0x50] sm:$0xff]  }
   0x2   :  { %v1014_v1 = vld [vmem:[%s1398_s4 + $0xc0] sm:$0xff]   ;;  %946 = vmatprep.subr.bf16.mxu0 %v1013_v0  ;;  %v1018_v5 = vld [vmem:[%s1398_s4 + $0xc8] sm:$0xff]   ;;  %v1022_v9 = vld [vmem:[%s1398_s4 + $0xd0] sm:$0xff]   ;;  %v1198_v28 = vshrl.u32 %v53_v23, 7 }
   0x3   :  { %v1015_v2 = vld [vmem:[%s1398_s4] sm:$0xff]   ;;  %968 = vmatprep.subr.bf16.mxu1 %v1014_v1  ;;  %v1019_v6 = vld [vmem:[%s1398_s4 + $0x8] sm:$0xff]   ;;  %v1023_v10 = vld [vmem:[%s1398_s4 + $0x10] sm:$0xff]  }
   0x4   :  { %v1016_v3 = vld [vmem:[%s1398_s4 + $0x80] sm:$0xff]   ;;  %947 = vmatpush3.bf16.msra.mxu0 %v1015_v2  ;;  %v1020_v7 = vld [vmem:[%s1398_s4 + $0x88] sm:$0xff]   ;;  %v1024_v11 = vld [vmem:[%s1398_s4 + $0x90] sm:$0xff]   ;;  %v59_v33 = vsub.s32 1, %v1198_v28  ;;  %v67_v35 = vsub.s32 3, %v1198_v28  ;;  %v55_v39 = vsub.s32 0, %v1198_v28 }
   0x5   :  { %969 = vmatpush3.bf16.msra.mxu1 %v1016_v3  ;;  %948 = vmatprep.subr.bf16.mxu0 %v1017_v4  ;;  %v1025_v12 = vld [vmem:[%s1398_s4 + $0x58] sm:$0xff]   ;;  %v1029_v16 = vld [vmem:[%s1398_s4 + $0x60] sm:$0xff]   ;;  %v1033_v20 = vld [vmem:[%s1398_s4 + $0x68] sm:$0xff]   ;;  %v63_v40 = vsub.s32 2, %v1198_v28  ;;  %v79_v41 = vsub.s32 6, %v1198_v28 }
   0x6   :  { %970 = vmatprep.subr.bf16.mxu1 %v1018_v5  ;;  %v1026_v13 = vld [vmem:[%s1398_s4 + $0xd8] sm:$0xff]   ;;  %v1030_v17 = vld [vmem:[%s1398_s4 + $0xe0] sm:$0xff]   ;;  %v1034_v21 = vld [vmem:[%s1398_s4 + $0xe8] sm:$0xff]  }
   0x7   :  { %v1027_v14 = vld [vmem:[%s1398_s4 + $0x18] sm:$0xff]   ;;  %v1031_v18 = vld [vmem:[%s1398_s4 + $0x20] sm:$0xff]   ;;  %v1035_v22 = vld [vmem:[%s1398_s4 + $0x28] sm:$0xff]  }
   0x8   :  { %949 = vmatpush3.bf16.msra.mxu0 %v1019_v6  ;;  %v1028_v15 = vld [vmem:[%s1398_s4 + $0x98] sm:$0xff]   ;;  %v1032_v19 = vld [vmem:[%s1398_s4 + $0xa0] sm:$0xff]   ;;  %v1036_v24 = vld [vmem:[%s1398_s4 + $0xa8] sm:$0xff]  }
   0x9   :  { %971 = vmatpush3.bf16.msra.mxu1 %v1020_v7  ;;  %950 = vmatprep.subr.bf16.mxu0 %v1021_v8  ;;  %v1037_v25 = vld [vmem:[%s1398_s4 + $0x70] sm:$0xff]   ;;  %v1041_v30 = vld [vmem:[%s1398_s4 + $0x78] sm:$0xff]   ;;  %v26_v36 = vld [vmem:[%s1399_s0] sm:$0xff] }
   0xa   :  { %972 = vmatprep.subr.bf16.mxu1 %v1022_v9  ;;  %v1038_v26 = vld [vmem:[%s1398_s4 + $0xf0] sm:$0xff]   ;;  %v1042_v31 = vld [vmem:[%s1398_s4 + $0xf8] sm:$0xff]   ;;  %v38_v37 = vld [vmem:[%s1400_s1] sm:$0xff]  ;;  %v30_v42 = vunpack.c.l.bf16 %v26_v36  ;;  %v31_v43 = vunpack.c.h.bf16 %v26_v36 }
   0xb   :  { %v1039_v27 = vld [vmem:[%s1398_s4 + $0x30] sm:$0xff]   ;;  %v1043_v32 = vld [vmem:[%s1398_s4 + $0x38] sm:$0xff]   ;;  %v1226_v38 = vld [vmem:[%s1401_s2] sm:$0xff]  ;;  %v42_v44 = vunpack.c.l.bf16 %v38_v37  ;;  %v43_v45 = vunpack.c.h.bf16 %v38_v37 }
   0xc   :  { %951 = vmatpush3.bf16.msra.mxu0 %v1023_v10  ;;  %v1040_v29 = vld [vmem:[%s1398_s4 + $0xb0] sm:$0xff]   ;;  %v1044_v34 = vld [vmem:[%s1398_s4 + $0xb8] sm:$0xff]   ;;  %v1234_v46 = vld [vmem:[%s1402_s3] sm:$0xff]  ;;  %v60_v49 = vrot.slane %v1226_v38, %v59_v33  ;;  %v68_v57 = vrot.slane %v1226_v38, %v67_v35  ;;  %v56_v5 = vrot.slane %v1226_v38, %v55_v39  ;;  %v64_v9 = vrot.slane %v1226_v38, %v63_v40 }
   0xd   :  { %973 = vmatpush3.bf16.msra.mxu1 %v1024_v11  ;;  %952 = vmatprep.subr.bf16.mxu0 %v1025_v12  ;;  %v27_v47 = vld [vmem:[%s1399_s0 + $0x8] sm:$0xff]  ;;  %v109_v50 = vrot.slane %v1234_v46, %v59_v33  ;;  %v1045_v53 = vld [vmem:[%s1398_s4 + $0x140] sm:$0xff]   ;;  %v117_v58 = vrot.slane %v1234_v46, %v67_v35  ;;  %v105_v6 = vrot.slane %v1234_v46, %v55_v39  ;;  %v1051_v35 = vld [vmem:[%s1398_s4 + $0x150] sm:$0xff]  }
   0xe   :  { %974 = vmatprep.subr.bf16.mxu1 %v1026_v13  ;;  %v39_v48 = vld [vmem:[%s1400_s1 + $0x8] sm:$0xff]  ;;  %v32_v51 = vunpack.c.l.bf16 %v27_v47  ;;  %v33_v52 = vunpack.c.h.bf16 %v27_v47  ;;  %v94_v59 = vmul.f32 %v60_v49, %v31_v43  ;;  %v167_v62 = vmul.f32 %v60_v49, %v43_v45  ;;  %v1052_v36 = vld [vmem:[%s1398_s4 + $0x110] sm:$0xff]   ;;  %v1054_v39 = vld [vmem:[%s1398_s4 + $0x158] sm:$0xff]  }
   0xf   :  { %v44_v55 = vunpack.c.l.bf16 %v39_v48  ;;  %v45_v56 = vunpack.c.h.bf16 %v39_v48  ;;  %v143_v60 = vmul.f32 %v109_v50, %v43_v45  ;;  %v159_v61 = vmul.f32 %v109_v50, %v31_v43  ;;  %v1049_v33 = vld [vmem:[%s1398_s4 + $0x108] sm:$0xff]   ;;  %v1053_v37 = vld [vmem:[%s1398_s4 + $0x190] sm:$0xff]   ;;  %v1058_v50 = vld [vmem:[%s1398_s4 + $0x120] sm:$0xff]  }
  0x10   :  { %953 = vmatpush3.bf16.msra.mxu0 %v1027_v14  ;;  %v96_v63 = vmul.f32 %v68_v57, %v33_v52  ;;  %v161_v1 = vmul.f32 %v117_v58, %v33_v52  ;;  %v113_v10 = vrot.slane %v1234_v46, %v63_v40  ;;  %v93_v12 = vmul.f32 %v56_v5, %v30_v42  ;;  %v28_v48 = vld [vmem:[%s1399_s0 + $0x10] sm:$0xff] }
  0x11   :  { %975 = vmatpush3.bf16.msra.mxu1 %v1028_v15  ;;  %954 = vmatprep.subr.bf16.mxu0 %v1029_v16  ;;  %v145_v0 = vmul.f32 %v117_v58, %v45_v56  ;;  %v169_v2 = vmul.f32 %v68_v57, %v45_v56  ;;  %v151_v3 = vsub.f32 %v94_v59, %v143_v60  ;;  %v75_v40 = vsub.s32 5, %v1198_v28  ;;  %v40_v49 = vld [vmem:[%s1400_s1 + $0x10] sm:$0xff]  ;;  %v1060_v57 = vld [vmem:[%s1398_s4 + $0x168] sm:$0xff]  }
  0x12   :  { %976 = vmatprep.subr.bf16.mxu1 %v1030_v17  ;;  %v175_v4 = vadd.f32 %v167_v62, %v159_v61  ;;  %v142_v13 = vmul.f32 %v105_v6, %v42_v44  ;;  %v158_v14 = vmul.f32 %v105_v6, %v30_v42  ;;  %v166_v16 = vmul.f32 %v56_v5, %v42_v44  ;;  %v1056_v42 = vld [vmem:[%s1398_s4 + $0x198] sm:$0xff]   ;;  %v1057_v44 = vld [vmem:[%s1398_s4 + $0x160] sm:$0xff]   ;;  %v1063_v6 = vld [vmem:[%s1398_s4 + $0x170] sm:$0xff]  }
  0x13   :  { %v153_v7 = vsub.f32 %v96_v63, %v145_v0  ;;  %v177_v8 = vadd.f32 %v169_v2, %v161_v1  ;;  %v95_v17 = vmul.f32 %v64_v9, %v32_v51  ;;  %v71_v43 = vsub.s32 4, %v1198_v28  ;;  %v1061_v63 = vld [vmem:[%s1398_s4 + $0x128] sm:$0xff]  }
  0x14   :  { %955 = vmatpush3.bf16.msra.mxu0 %v1031_v18  ;;  %v183_v11 = vpack.c.bf16 %v175_v4, %v151_v3  ;;  %v144_v18 = vmul.f32 %v113_v10, %v44_v55  ;;  %v76_v45 = vrot.slane %v1226_v38, %v75_v40  ;;  %v125_v47 = vrot.slane %v1234_v46, %v75_v40  ;;  %v1062_v2 = vld [vmem:[%s1398_s4 + $0x1a8] sm:$0xff]   ;;  %v1069_v40 = vld [vmem:[%s1398_s4 + $0x1c0] sm:$0xff]  }
  0x15   :  { %977 = vmatpush3.bf16.msra.mxu1 %v1032_v19  ;;  %956 = vmatprep.subr.bf16.mxu0 %v1033_v20  ;;  %v185_v15 = vpack.c.bf16 %v177_v8, %v153_v7  ;;  %v150_v19 = vsub.f32 %v93_v12, %v142_v13  ;;  %v160_v20 = vmul.f32 %v113_v10, %v32_v51  ;;  %v35_v51 = vunpack.c.h.bf16 %v28_v48  ;;  %v29_v8 = vld [vmem:[%s1399_s0 + $0x18] sm:$0xff] }
  0x16   :  { %978 = vmatprep.subr.bf16.mxu1 %v1034_v21  ;;  %730 = vmatprep.mubr.bf16.mxu0 %v183_v11  ;;  %v168_v21 = vmul.f32 %v64_v9, %v44_v55  ;;  %v152_v23 = vsub.f32 %v95_v17, %v144_v18  ;;  %v47_v52 = vunpack.c.h.bf16 %v40_v49  ;;  %v72_v55 = vrot.slane %v1226_v38, %v71_v43  ;;  %v41_v9 = vld [vmem:[%s1400_s1 + $0x18] sm:$0xff] }
  0x17   :  { %771 = vmatprep.mubr.bf16.mxu1 %v185_v15  ;;  %v83_v56 = vsub.s32 7, %v1198_v28  ;;  %v34_v58 = vunpack.c.l.bf16 %v28_v48  ;;  %v98_v59 = vmul.f32 %v76_v45, %v35_v51  ;;  %v163_v61 = vmul.f32 %v125_v47, %v35_v51 }
  0x18   :  { %957 = vmatpush3.bf16.msra.mxu0 %v1035_v22  ;;  %v174_v22 = vadd.f32 %v166_v16, %v158_v14  ;;  %v147_v60 = vmul.f32 %v125_v47, %v47_v52  ;;  %v171_v62 = vmul.f32 %v76_v45, %v47_v52  ;;  %v46_v0 = vunpack.c.l.bf16 %v40_v49  ;;  %v1064_v16 = vld [vmem:[%s1398_s4 + $0x130] sm:$0xff]   ;;  %v1074_v45 = vld [vmem:[%s1398_s4 + $0x1e8] sm:$0xff]  }
  0x19   :  { %979 = vmatpush3.bf16.msra.mxu1 %v1036_v24  ;;  %958 = vmatprep.subr.bf16.mxu0 %v1037_v25  ;;  %v1046_v24 = vld [vmem:[%s1398_s4 + $0x100] sm:$0xff]   ;;  %v176_v25 = vadd.f32 %v168_v21, %v160_v20  ;;  %v121_v28 = vrot.slane %v1234_v46, %v71_v43  ;;  %v84_v4 = vrot.slane %v1226_v38, %v83_v56  ;;  %v37_v10 = vunpack.c.h.bf16 %v29_v8  ;;  %v1065_v20 = vld [vmem:[%s1398_s4 + $0x1b0] sm:$0xff]   ;;  %v1066_v21 = vld [vmem:[%s1398_s4 + $0x178] sm:$0xff]  }
  0x1a   :  { %980 = vmatprep.subr.bf16.mxu1 %v1038_v26  ;;  %v1047_v26 = vld [vmem:[%s1398_s4 + $0x180] sm:$0xff]   ;;  %v155_v1 = vsub.f32 %v98_v59, %v147_v60  ;;  %v179_v3 = vadd.f32 %v171_v62, %v163_v61  ;;  %v133_v5 = vrot.slane %v1234_v46, %v83_v56  ;;  %v97_v7 = vmul.f32 %v72_v55, %v34_v58  ;;  %v1072_v43 = vld [vmem:[%s1398_s4 + $0x1d8] sm:$0xff]   ;;  %v1075_v47 = vld [vmem:[%s1398_s4 + $0x1f0] ss:$0 sps:$4 sm:$0xff]  }
  0x1b   :  { %v36_v11 = vunpack.c.l.bf16 %v29_v8  ;;  %v146_v12 = vmul.f32 %v121_v28, %v46_v0  ;;  %v162_v13 = vmul.f32 %v121_v28, %v34_v58  ;;  %v170_v14 = vmul.f32 %v72_v55, %v46_v0 }
  0x1c   :  { %959 = vmatpush3.bf16.msra.mxu0 %v1039_v27  ;;  %v182_v27 = vpack.c.bf16 %v174_v22, %v150_v19  ;;  %v48_v15 = vunpack.c.l.bf16 %v41_v9  ;;  %v100_v17 = vmul.f32 %v84_v4, %v37_v10  ;;  %v165_v19 = vmul.f32 %v133_v5, %v37_v10 }
  0x1d   :  { %981 = vmatpush3.bf16.msra.mxu1 %v1040_v29  ;;  %960 = vmatprep.subr.bf16.mxu0 %v1041_v30  ;;  %v1048_v29 = vld [vmem:[%s1398_s4 + $0x148] sm:$0xff]   ;;  %v1264_v30 = vrot.slane %v1226_v38, %v79_v41  ;;  %v187_v38 = vpack.c.bf16 %v179_v3, %v155_v1  ;;  %v696_v48 = vsel %vm694_vm1, %v1075_v47, 0 }
  0x1e   :  { %982 = vmatprep.subr.bf16.mxu1 %v1042_v31  ;;  %v1267_v31 = vrot.slane %v1234_v46, %v79_v41  ;;  %v1055_v41 = vld [vmem:[%s1398_s4 + $0x118] sm:$0xff]   ;;  %v49_v46 = vunpack.c.h.bf16 %v41_v9 }
  0x20   :  { %961 = vmatpush3.bf16.msra.mxu0 %v1043_v32  ;;  %v184_v32 = vpack.c.bf16 %v176_v25, %v152_v23  ;;  %v149_v18 = vmul.f32 %v133_v5, %v49_v46  ;;  %v173_v22 = vmul.f32 %v84_v4, %v49_v46  ;;  %v99_v23 = vmul.f32 %v1264_v30, %v36_v11 }
  0x21   :  { %983 = vmatpush3.bf16.msra.mxu1 %v1044_v34  ;;  %990 = vmatprep.subr.bf16.mxu0 %v1045_v53  ;;  %v1050_v34 = vld [vmem:[%s1398_s4 + $0x188] sm:$0xff]   ;;  %v1059_v53 = vld [vmem:[%s1398_s4 + $0x1a0] sm:$0xff]  }
  0x22   :  { %821 = vmatprep.subr.bf16.mxu1 %v1076_v54  ;;  %v157_v25 = vsub.f32 %v100_v17, %v149_v18 }
  0x23   :  { %731 = vmatmul.mubr.bf16.vlgmr.msra.gmra.mrb[0].mxu0 %v182_v27  ;;  %v172_v27 = vmul.f32 %v1264_v30, %v48_v15 }
  0x24   :  { %772 = vmatmul.mubr.bf16.vlgmr.msra.gmra.mrb[0].mxu1 %v184_v32  ;;  %991 = vmatpush3.bf16.msra.mxu0 %v1046_v24  ;;  %v148_v24 = vmul.f32 %v1267_v31, %v48_v15  ;;  %v178_v32 = vadd.f32 %v170_v14, %v162_v13 }
  0x25   :  { %822 = vmatpush1.bf16.msra.mxu1 %v1047_v26  ;;  %992 = vmatprep.subr.bf16.mxu0 %v1048_v29  ;;  %v164_v26 = vmul.f32 %v1267_v31, %v36_v11  ;;  %v154_v29 = vsub.f32 %v97_v7, %v146_v12  ;;  %v945_v7 = vld [vmem:[%s1403_s5] ss:$0 sm:$0xff] }
  0x26   :  { %823 = vmatprep.subr.bf16.mxu1 %v1076_v54  ;;  %812 = vmatprep.mubr.bf16.mxu0 %v187_v38 }
  0x28   :  { %993 = vmatpush3.bf16.msra.mxu0 %v1049_v33  ;;  %v181_v33 = vadd.f32 %v173_v22, %v165_v19 }
  0x29   :  { %824 = vmatpush1.bf16.msra.mxu1 %v1050_v34  ;;  %994 = vmatprep.subr.bf16.mxu0 %v1051_v35  ;;  %v156_v34 = vsub.f32 %v99_v23, %v148_v24  ;;  %v1067_v35 = vld [vmem:[%s1398_s4 + $0x138] sm:$0xff]  }
  0x2a   :  { %825 = vmatprep.subr.bf16.mxu1 %v1076_v54  ;;  %v189_v31 = vpack.c.bf16 %v181_v33, %v157_v25 }
  0x2c   :  { %995 = vmatpush3.bf16.msra.mxu0 %v1052_v36  ;;  %v180_v36 = vadd.f32 %v172_v27, %v164_v26  ;;  %944 = vmatprep.mubr.msk.bf16.mxu1 %vm690_vm0, %v189_v31 }
  0x2d   :  { %826 = vmatpush1.bf16.msra.mxu1 %v1053_v37  ;;  %996 = vmatprep.subr.bf16.mxu0 %v1054_v39  ;;  %v1068_v37 = vld [vmem:[%s1398_s4 + $0x1b8] sm:$0xff]   ;;  %v186_v39 = vpack.c.bf16 %v178_v32, %v154_v29 }
  0x2e   :  { %827 = vmatprep.subr.bf16.mxu1 %v1076_v54  ;;  %v188_v30 = vpack.c.bf16 %v180_v36, %v156_v34 }
  0x30   :  { %997 = vmatpush3.bf16.msra.mxu0 %v1055_v41  ;;  %v1070_v41 = vld [vmem:[%s1398_s4 + $0x1c8] sm:$0xff]  }
  0x31   :  { %828 = vmatpush1.bf16.msra.mxu1 %v1056_v42  ;;  %998 = vmatprep.subr.bf16.mxu0 %v1057_v44  ;;  %v1071_v42 = vld [vmem:[%s1398_s4 + $0x1d0] sm:$0xff]   ;;  %v1073_v44 = vld [vmem:[%s1398_s4 + $0x1e0] sm:$0xff]  }
  0x32   :  { %829 = vmatprep.subr.bf16.mxu1 %v1076_v54 }
  0x34   :  { %999 = vmatpush3.bf16.msra.mxu0 %v1058_v50 }
  0x35   :  { %830 = vmatpush1.bf16.msra.mxu1 %v1059_v53  ;;  %1000 = vmatprep.subr.bf16.mxu0 %v1060_v57 }
  0x36   :  { %831 = vmatprep.subr.bf16.mxu1 %v1076_v54 }
  0x38   :  { %1001 = vmatpush3.bf16.msra.mxu0 %v1061_v63 }
  0x39   :  { %832 = vmatpush1.bf16.msra.mxu1 %v1062_v2  ;;  %1002 = vmatprep.subr.bf16.mxu0 %v1063_v6 }
  0x3a   :  { %833 = vmatprep.subr.bf16.mxu1 %v1076_v54 }
  0x3c   :  { %1003 = vmatpush3.bf16.msra.mxu0 %v1064_v16 }
  0x3d   :  { %834 = vmatpush1.bf16.msra.mxu1 %v1065_v20  ;;  %1004 = vmatprep.subr.bf16.mxu0 %v1066_v21 }
  0x3e   :  { %835 = vmatprep.subr.bf16.mxu1 %v1076_v54 }
  0x40   :  { %1005 = vmatpush3.bf16.msra.mxu0 %v1067_v35 }
  0x41   :  { %836 = vmatpush1.bf16.msra.mxu1 %v1068_v37 }
  0x42   :  { %837 = vmatprep.subr.bf16.mxu1 %v1076_v54 }
  0x43   :  { %813 = vmatmul.mubr.bf16.vlgmr.msra.gmra.mrb[4].mxu0 %v186_v39 }
  0x45   :  { %838 = vmatpush1.bf16.msra.mxu1 %v1069_v40 }
  0x46   :  { %839 = vmatprep.subr.bf16.mxu1 %v1076_v54 }
  0x49   :  { %840 = vmatpush1.bf16.msra.mxu1 %v1070_v41 }
  0x4a   :  { %841 = vmatprep.subr.bf16.mxu1 %v1076_v54 }
  0x4d   :  { %842 = vmatpush1.bf16.msra.mxu1 %v1071_v42 }
  0x4e   :  { %843 = vmatprep.subr.bf16.mxu1 %v1076_v54 }
  0x51   :  { %844 = vmatpush1.bf16.msra.mxu1 %v1072_v43 }
  0x52   :  { %845 = vmatprep.subr.bf16.mxu1 %v1076_v54 }
  0x55   :  { %846 = vmatpush1.bf16.msra.mxu1 %v1073_v44 }
  0x56   :  { %847 = vmatprep.subr.bf16.mxu1 %v1076_v54 }
  0x59   :  { %848 = vmatpush1.bf16.msra.mxu1 %v1074_v45 }
  0x5a   :  { %849 = vmatprep.subr.bf16.mxu1 %v1076_v54 }
  0x5d   :  { %850 = vmatpush1.bf16.msra.mxu1 %v696_v48 }
  0x60   :  { %854 = vmatmul.mubr.bf16.vlgmr.msra.gmra.mrb[4].mxu1 %v188_v30 }
  0xf6   :  { %v962_v49 = vpop.f32.mrb[0].mxu0 }
  0xf7   :  { %v984_v50 = vpop.f32.mrb[0].mxu1  ;;  %v963_v51 = vpop.f32.mrb[1].mxu0 }
  0xf8   :  { %v964_v52 = vadd.f32 %v963_v51, %v962_v49  ;;  %v985_v53 = vpop.f32.mrb[1].mxu1  ;;  %v965_v55 = vpop.f32.mrb[2].mxu0 }
  0xf9   :  { %v986_v56 = vadd.f32 %v985_v53, %v984_v50  ;;  %v987_v57 = vpop.f32.mrb[2].mxu1  ;;  %v966_v58 = vpop.f32.mrb[3].mxu0 }
  0xfa   :  { %v967_v59 = vadd.f32 %v966_v58, %v965_v55  ;;  %v988_v60 = vpop.f32.mrb[3].mxu1 }
  0xfb   :  { %v774_v61 = vadd.f32 %v986_v56, %v964_v52  ;;  %v989_v62 = vadd.f32 %v988_v60, %v987_v57 }
  0xfd   :  { %v777_v63 = vadd.f32 %v989_v62, %v967_v59 }
 0x116   :  { %v1006_v0 = vpop.f32.mrb[4].mxu0 }
 0x117   :  { %v1007_v1 = vpop.f32.mrb[5].mxu0 }
 0x118   :  { %v1008_v54 = vadd.f32 %v1007_v1, %v1006_v0  ;;  %v1009_v28 = vpop.f32.mrb[6].mxu0 }
 0x119   :  { %v1010_v2 = vpop.f32.mrb[7].mxu0 }
 0x11a   :  { %v1011_v3 = vadd.f32 %v1010_v2, %v1009_v28  ;;  %v815_v4 = vadd.f32 %v1008_v54, %v774_v61 }
 0x11c   :  { %v818_v5 = vadd.f32 %v1011_v3, %v777_v63 }
 0x133   :  { %v855_v6 = vpop.f32.mrb[4].mxu1 }
 0x134   :  { %v856_v8 = vadd.f32 %v855_v6, %v815_v4  ;;  %v857_v9 = vpop.f32.mrb[5].mxu1 }
 0x135   :  { %v858_v38 = vpop.f32.mrb[6].mxu1 }
 0x136   :  { %v869_v10 = vadd.f32 %v945_v7, %v856_v8  ;;  %v859_v46 = vadd.f32 %v858_v38, %v818_v5  ;;  %v860_v11 = vpop.f32.mrb[7].mxu1 }
 0x138   :  { %870 = vst [vmem:[%s1404_s6] sm:$0xff] %v869_v10  ;;  %v871_v12 = vadd.f32 %v945_v7, %v859_v46 }
 0x13a   :  { %872 = vst [vmem:[%s1405_s7] sm:$0xff] %v871_v12 }

// kernel: _lambda_.6
= control target key start
LH: loop header
LB: loop body
LE: loop exit
PB: predicated region body
PF: predicated region fallthrough
CT: control target
= control target key end

     0   :  { %v40_v34 = vlaneseq  ;;  %s3302_s4 = inlined_call_operand.vmem [shape: bf16[512,1024], index: 4, kind: input, shape index: {}]   ;;  %s3303_s0 = inlined_call_operand.vmem [shape: bf16[8,512], index: 0, kind: input, shape index: {}]   ;;  %s3304_s1 = inlined_call_operand.vmem [shape: bf16[8,512], index: 1, kind: input, shape index: {}]   ;;  %s3305_s2 = inlined_call_operand.vmem [shape: f32[1,512], index: 2, kind: input, shape index: {}]   ;;  %s3306_s3 = inlined_call_operand.vmem [shape: f32[1,512], index: 3, kind: input, shape index: {}]   ;;  %s3307_s5 = inlined_call_operand.vmem [shape: f32[1,1024], index: 5, kind: input, shape index: {}]   ;;  %s3308_s6 = inlined_call_operand.vmem [shape: f32[8,1024], index: 6, kind: output, shape index: {0}]   ;;  %s3309_s7 = inlined_call_operand.vmem [shape: f32[8,1024], index: 7, kind: output, shape index: {1}]  }
   0x1   :  { %v109_v0 = vld [vmem:[%s3302_s4] sm:$0xff]  ;;  %v110_v2 = vld [vmem:[%s3302_s4 + $0x8] sm:$0xff] }
   0x2   :  { %v113_v1 = vld [vmem:[%s3302_s4 + $0x20] sm:$0xff]  ;;  %v114_v4 = vld [vmem:[%s3302_s4 + $0x28] sm:$0xff]  ;;  %v2455_v43 = vshrl.u32 %v40_v34, 7 }
   0x3   :  { %v2072_v3 = vcombine.high %v109_v0, %v113_v1  ;;  %v2071_v5 = vcombine.low %v109_v0, %v113_v1  ;;  %v117_v6 = vld [vmem:[%s3302_s4 + $0x40] sm:$0xff]  ;;  %v2074_v8 = vcombine.high %v110_v2, %v114_v4  ;;  %v2073_v9 = vcombine.low %v110_v2, %v114_v4  ;;  %v118_v11 = vld [vmem:[%s3302_s4 + $0x48] sm:$0xff] }
   0x4   :  { %v121_v7 = vld [vmem:[%s3302_s4 + $0x60] sm:$0xff]  ;;  %v122_v12 = vld [vmem:[%s3302_s4 + $0x68] sm:$0xff]  ;;  %v2470_v52 = vsub.s32 1, %v2455_v43 }
   0x5   :  { %v2080_v10 = vcombine.high %v117_v6, %v121_v7  ;;  %v125_v13 = vld [vmem:[%s3302_s4 + $0x80] sm:$0xff]  ;;  %1645 = vmatprep.subr.bf16.mxu0 %v2072_v3  ;;  %v2082_v14 = vcombine.high %v118_v11, %v122_v12  ;;  %v126_v16 = vld [vmem:[%s3302_s4 + $0x88] sm:$0xff]  ;;  %1731 = vmatprep.subr.bf16.mxu1 %v2074_v8  ;;  %v2079_v18 = vcombine.low %v117_v6, %v121_v7 }
   0x6   :  { %v129_v15 = vld [vmem:[%s3302_s4 + $0xa0] sm:$0xff]  ;;  %v130_v17 = vld [vmem:[%s3302_s4 + $0xa8] sm:$0xff]  ;;  %1646 = vmatpush1.bf16.msra.mxu0 %v2071_v5  ;;  %1732 = vmatpush1.bf16.msra.mxu1 %v2073_v9  ;;  %v2081_v19 = vcombine.low %v118_v11, %v122_v12 }
   0x7   :  { %1647 = vmatprep.subr.bf16.mxu0 %v2080_v10  ;;  %v2088_v20 = vcombine.high %v125_v13, %v129_v15  ;;  %1733 = vmatprep.subr.bf16.mxu1 %v2082_v14  ;;  %v2090_v21 = vcombine.high %v126_v16, %v130_v17  ;;  %v133_v22 = vld [vmem:[%s3302_s4 + $0xc0] sm:$0xff]  ;;  %v134_v24 = vld [vmem:[%s3302_s4 + $0xc8] sm:$0xff]  ;;  %v2087_v26 = vcombine.low %v125_v13, %v129_v15 }
   0x8   :  { %v137_v23 = vld [vmem:[%s3302_s4 + $0xe0] sm:$0xff]  ;;  %v138_v25 = vld [vmem:[%s3302_s4 + $0xe8] sm:$0xff]  ;;  %v2089_v27 = vcombine.low %v126_v16, %v130_v17 }
   0x9   :  { %v2096_v28 = vcombine.high %v133_v22, %v137_v23  ;;  %v2098_v29 = vcombine.high %v134_v24, %v138_v25  ;;  %v141_v30 = vld [vmem:[%s3302_s4 + $0x100] sm:$0xff]  ;;  %v142_v32 = vld [vmem:[%s3302_s4 + $0x108] sm:$0xff]  ;;  %v2095_v35 = vcombine.low %v133_v22, %v137_v23  ;;  %v2097_v36 = vcombine.low %v134_v24, %v138_v25 }
   0xa   :  { %1648 = vmatpush1.bf16.msra.mxu0 %v2079_v18  ;;  %1734 = vmatpush1.bf16.msra.mxu1 %v2081_v19  ;;  %v145_v31 = vld [vmem:[%s3302_s4 + $0x120] sm:$0xff]  ;;  %v146_v33 = vld [vmem:[%s3302_s4 + $0x128] sm:$0xff] }
   0xb   :  { %1649 = vmatprep.subr.bf16.mxu0 %v2088_v20  ;;  %1735 = vmatprep.subr.bf16.mxu1 %v2090_v21  ;;  %v2104_v37 = vcombine.high %v141_v30, %v145_v31  ;;  %v2106_v38 = vcombine.high %v142_v32, %v146_v33  ;;  %v149_v39 = vld [vmem:[%s3302_s4 + $0x140] sm:$0xff]  ;;  %v150_v41 = vld [vmem:[%s3302_s4 + $0x148] sm:$0xff]  ;;  %v2103_v44 = vcombine.low %v141_v30, %v145_v31 }
   0xc   :  { %v153_v40 = vld [vmem:[%s3302_s4 + $0x160] sm:$0xff]  ;;  %v154_v42 = vld [vmem:[%s3302_s4 + $0x168] sm:$0xff]  ;;  %v2105_v45 = vcombine.low %v142_v32, %v146_v33 }
   0xd   :  { %v2112_v46 = vcombine.high %v149_v39, %v153_v40  ;;  %v2114_v47 = vcombine.high %v150_v41, %v154_v42  ;;  %v157_v48 = vld [vmem:[%s3302_s4 + $0x180] sm:$0xff]  ;;  %v158_v50 = vld [vmem:[%s3302_s4 + $0x188] sm:$0xff]  ;;  %v2111_v53 = vcombine.low %v149_v39, %v153_v40  ;;  %v2113_v55 = vcombine.low %v150_v41, %v154_v42 }
   0xe   :  { %1650 = vmatpush1.bf16.msra.mxu0 %v2087_v26  ;;  %1736 = vmatpush1.bf16.msra.mxu1 %v2089_v27  ;;  %v161_v49 = vld [vmem:[%s3302_s4 + $0x1a0] sm:$0xff]  ;;  %v162_v51 = vld [vmem:[%s3302_s4 + $0x1a8] sm:$0xff] }
   0xf   :  { %1651 = vmatprep.subr.bf16.mxu0 %v2096_v28  ;;  %1737 = vmatprep.subr.bf16.mxu1 %v2098_v29  ;;  %v165_v54 = vld [vmem:[%s3302_s4 + $0x1c0] sm:$0xff]  ;;  %v2120_v56 = vcombine.high %v157_v48, %v161_v49  ;;  %v2122_v60 = vcombine.high %v158_v50, %v162_v51  ;;  %v166_v1 = vld [vmem:[%s3302_s4 + $0x1c8] sm:$0xff]  ;;  %v2119_v5 = vcombine.low %v157_v48, %v161_v49 }
  0x10   :  { %v169_v57 = vld [vmem:[%s3302_s4 + $0x1e0] sm:$0xff]  ;;  %v170_v2 = vld [vmem:[%s3302_s4 + $0x1e8] sm:$0xff]  ;;  %v2121_v6 = vcombine.low %v158_v50, %v162_v51 }
  0x11   :  { %v2481_v58 = vld [vmem:[%s3303_s0] sm:$0xff]  ;;  %v2128_v7 = vcombine.high %v165_v54, %v169_v57  ;;  %v2130_v11 = vcombine.high %v166_v1, %v170_v2  ;;  %v174_v15 = vld [vmem:[%s3302_s4 + $0x208] sm:$0xff]  ;;  %v2127_v18 = vcombine.low %v165_v54, %v169_v57  ;;  %v2129_v20 = vcombine.low %v166_v1, %v170_v2 }
  0x12   :  { %1652 = vmatpush1.bf16.msra.mxu0 %v2095_v35  ;;  %1738 = vmatpush1.bf16.msra.mxu1 %v2097_v36  ;;  %v2486_v59 = vld [vmem:[%s3304_s1] sm:$0xff]  ;;  %v28_v61 = vunpack.c.h.bf16 %v2481_v58  ;;  %v178_v16 = vld [vmem:[%s3302_s4 + $0x228] sm:$0xff]  ;;  %v2575_v54 = vsub.s32 2, %v2455_v43 }
  0x13   :  { %1653 = vmatprep.subr.bf16.mxu0 %v2104_v37  ;;  %1739 = vmatprep.subr.bf16.mxu1 %v2106_v38  ;;  %v34_v62 = vunpack.c.h.bf16 %v2486_v59  ;;  %v2493_v63 = vld [vmem:[%s3305_s2] sm:$0xf]  ;;  %v2138_v22 = vcombine.high %v174_v15, %v178_v16  ;;  %v182_v26 = vld [vmem:[%s3302_s4 + $0x248] sm:$0xff]  ;;  %v2137_v29 = vcombine.low %v174_v15, %v178_v16 }
  0x14   :  { %v2498_v0 = vld [vmem:[%s3306_s3] sm:$0xf]  ;;  %v47_v3 = vrot.slane %v2493_v63, %v2470_v52  ;;  %v186_v27 = vld [vmem:[%s3302_s4 + $0x268] sm:$0xff] }
  0x15   :  { %v72_v4 = vrot.slane %v2498_v0, %v2470_v52  ;;  %v173_v12 = vld [vmem:[%s3302_s4 + $0x200] sm:$0xff]  ;;  %v2146_v31 = vcombine.high %v182_v26, %v186_v27  ;;  %v190_v34 = vld [vmem:[%s3302_s4 + $0x288] sm:$0xff]  ;;  %v2145_v37 = vcombine.low %v182_v26, %v186_v27 }
  0x16   :  { %1654 = vmatpush1.bf16.msra.mxu0 %v2103_v44  ;;  %1740 = vmatpush1.bf16.msra.mxu1 %v2105_v45  ;;  %v61_v8 = vmul.f32 %v47_v3, %v28_v61  ;;  %v177_v13 = vld [vmem:[%s3302_s4 + $0x220] sm:$0xff]  ;;  %v98_v14 = vmul.f32 %v47_v3, %v34_v62  ;;  %v194_v35 = vld [vmem:[%s3302_s4 + $0x2a8] sm:$0xff] }
  0x17   :  { %1655 = vmatprep.subr.bf16.mxu0 %v2112_v46  ;;  %1741 = vmatprep.subr.bf16.mxu1 %v2114_v47  ;;  %v86_v9 = vmul.f32 %v72_v4, %v34_v62  ;;  %v94_v10 = vmul.f32 %v72_v4, %v28_v61  ;;  %v2136_v21 = vcombine.high %v173_v12, %v177_v13  ;;  %v181_v23 = vld [vmem:[%s3302_s4 + $0x240] sm:$0xff]  ;;  %v198_v42 = vld [vmem:[%s3302_s4 + $0x2c8] sm:$0xff] }
  0x18   :  { %v185_v24 = vld [vmem:[%s3302_s4 + $0x260] sm:$0xff]  ;;  %v2135_v28 = vcombine.low %v173_v12, %v177_v13  ;;  %v2154_v39 = vcombine.high %v190_v34, %v194_v35  ;;  %v202_v44 = vld [vmem:[%s3302_s4 + $0x2e8] sm:$0xff]  ;;  %v2153_v46 = vcombine.low %v190_v34, %v194_v35 }
  0x19   :  { %v90_v17 = vsub.f32 %v61_v8, %v86_v9  ;;  %v102_v19 = vadd.f32 %v98_v14, %v94_v10  ;;  %v2144_v30 = vcombine.high %v181_v23, %v185_v24  ;;  %v189_v32 = vld [vmem:[%s3302_s4 + $0x280] sm:$0xff]  ;;  %v2143_v36 = vcombine.low %v181_v23, %v185_v24  ;;  %v206_v51 = vld [vmem:[%s3302_s4 + $0x308] sm:$0xff] }
  0x1a   :  { %1656 = vmatpush1.bf16.msra.mxu0 %v2111_v53  ;;  %1742 = vmatpush1.bf16.msra.mxu1 %v2113_v55  ;;  %v193_v33 = vld [vmem:[%s3302_s4 + $0x2a0] sm:$0xff]  ;;  %v2162_v48 = vcombine.high %v198_v42, %v202_v44  ;;  %v210_v53 = vld [vmem:[%s3302_s4 + $0x328] sm:$0xff]  ;;  %v51_v8 = vrot.slane %v2493_v63, %v2575_v54  ;;  %v76_v9 = vrot.slane %v2498_v0, %v2575_v54  ;;  %v33_v24 = vunpack.c.l.bf16 %v2486_v59 }
  0x1b   :  { %1657 = vmatprep.subr.bf16.mxu0 %v2120_v56  ;;  %1743 = vmatprep.subr.bf16.mxu1 %v2122_v60  ;;  %v2528_v25 = vpack.c.bf16 %v102_v19, %v90_v17  ;;  %v2152_v38 = vcombine.high %v189_v32, %v193_v33  ;;  %v197_v40 = vld [vmem:[%s3302_s4 + $0x2c0] sm:$0xff]  ;;  %v2151_v45 = vcombine.low %v189_v32, %v193_v33  ;;  %v2580_v56 = vld [vmem:[%s3303_s0 + $0x8] sm:$0xff] }
  0x1c   :  { %v201_v41 = vld [vmem:[%s3302_s4 + $0x2e0] sm:$0xff]  ;;  %v2585_v57 = vld [vmem:[%s3304_s1 + $0x8] sm:$0xff]  ;;  %v2161_v60 = vcombine.low %v198_v42, %v202_v44  ;;  %v2170_v2 = vcombine.high %v206_v51, %v210_v53  ;;  %v29_v3 = vunpack.c.l.bf16 %v2580_v56  ;;  %v30_v59 = vunpack.c.h.bf16 %v2580_v56 }
  0x1d   :  { %1677 = vmatprep.mubr.bf16.mxu0 %v2528_v25  ;;  %1763 = vmatprep.mubr.bf16.mxu1 %v2528_v25  ;;  %v2160_v47 = vcombine.high %v197_v40, %v201_v41  ;;  %v205_v49 = vld [vmem:[%s3302_s4 + $0x300] sm:$0xff]  ;;  %v2159_v55 = vcombine.low %v197_v40, %v201_v41  ;;  %v214_v4 = vld [vmem:[%s3302_s4 + $0x348] sm:$0xff] }
  0x1e   :  { %1658 = vmatpush1.bf16.msra.mxu0 %v2119_v5  ;;  %1744 = vmatpush1.bf16.msra.mxu1 %v2121_v6  ;;  %v209_v50 = vld [vmem:[%s3302_s4 + $0x320] sm:$0xff]  ;;  %v218_v5 = vld [vmem:[%s3302_s4 + $0x368] sm:$0xff]  ;;  %v2601_v6 = vsub.s32 0, %v2455_v43  ;;  %v62_v14 = vmul.f32 %v51_v8, %v29_v3  ;;  %v95_v16 = vmul.f32 %v76_v9, %v29_v3 }
  0x1f   :  { %1659 = vmatprep.subr.bf16.mxu0 %v2128_v7  ;;  %1745 = vmatprep.subr.bf16.mxu1 %v2130_v11  ;;  %v2168_v61 = vcombine.high %v205_v49, %v209_v50  ;;  %v213_v62 = vld [vmem:[%s3302_s4 + $0x340] sm:$0xff]  ;;  %v35_v7 = vunpack.c.l.bf16 %v2585_v57  ;;  %v2167_v10 = vcombine.low %v205_v49, %v209_v50  ;;  %v2169_v11 = vcombine.low %v206_v51, %v210_v53  ;;  %v222_v19 = vld [vmem:[%s3302_s4 + $0x388] sm:$0xff] }
  0x20   :  { %v217_v1 = vld [vmem:[%s3302_s4 + $0x360] sm:$0xff]  ;;  %v2178_v17 = vcombine.high %v214_v4, %v218_v5  ;;  %v43_v26 = vrot.slane %v2493_v63, %v2601_v6  ;;  %v68_v27 = vrot.slane %v2498_v0, %v2601_v6  ;;  %v230_v35 = vld [vmem:[%s3302_s4 + $0x3c8] sm:$0xff] }
  0x21   :  { %v2176_v12 = vcombine.high %v213_v62, %v217_v1  ;;  %v221_v13 = vld [vmem:[%s3302_s4 + $0x380] sm:$0xff]  ;;  %v87_v15 = vmul.f32 %v76_v9, %v35_v7  ;;  %v99_v23 = vmul.f32 %v51_v8, %v35_v7  ;;  %v238_v56 = vld [vmem:[%s3302_s4 + $0x408] sm:$0xff] }
  0x22   :  { %1660 = vmatpush1.bf16.msra.mxu0 %v2127_v18  ;;  %1746 = vmatpush1.bf16.msra.mxu1 %v2129_v20  ;;  %v225_v18 = vld [vmem:[%s3302_s4 + $0x3a0] sm:$0xff]  ;;  %v226_v20 = vld [vmem:[%s3302_s4 + $0x3a8] sm:$0xff]  ;;  %v85_v42 = vmul.f32 %v68_v27, %v33_v24 }
  0x23   :  { %1661 = vmatprep.subr.bf16.mxu0 %v2136_v21  ;;  %1747 = vmatprep.subr.bf16.mxu1 %v2138_v22  ;;  %v27_v21 = vunpack.c.l.bf16 %v2481_v58  ;;  %v2622_v22 = vsub.s32 3, %v2455_v43  ;;  %v2184_v58 = vcombine.high %v221_v13, %v225_v18  ;;  %v2186_v32 = vcombine.high %v222_v19, %v226_v20  ;;  %v229_v33 = vld [vmem:[%s3302_s4 + $0x3c0] sm:$0xff] }
  0x24   :  { %v233_v34 = vld [vmem:[%s3302_s4 + $0x3e0] sm:$0xff] }
  0x25   :  { %v60_v41 = vmul.f32 %v43_v26, %v27_v21  ;;  %v93_v44 = vmul.f32 %v68_v27, %v27_v21  ;;  %v261_v27 = vld [vmem:[%s3302_s4 + $0x4c0] sm:$0xff] }
  0x26   :  { %1662 = vmatpush1.bf16.msra.mxu0 %v2135_v28  ;;  %1748 = vmatpush1.bf16.msra.mxu1 %v2137_v29  ;;  %v91_v28 = vsub.f32 %v62_v14, %v87_v15  ;;  %v2175_v29 = vcombine.low %v213_v62, %v217_v1  ;;  %v2191_v62 = vcombine.low %v229_v33, %v233_v34 }
  0x27   :  { %1663 = vmatprep.subr.bf16.mxu0 %v2144_v30  ;;  %1749 = vmatprep.subr.bf16.mxu1 %v2146_v31  ;;  %v103_v30 = vadd.f32 %v99_v23, %v95_v16  ;;  %v2177_v31 = vcombine.low %v214_v4, %v218_v5  ;;  %v245_v4 = vld [vmem:[%s3302_s4 + $0x440] sm:$0xff] }
  0x28   :  { %v249_v5 = vld [vmem:[%s3302_s4 + $0x460] sm:$0xff] }
  0x29   :  { %v2647_v40 = vpack.c.bf16 %v103_v30, %v91_v28  ;;  %v2208_v14 = vcombine.high %v245_v4, %v249_v5  ;;  %v253_v16 = vld [vmem:[%s3302_s4 + $0x480] sm:$0xff]  ;;  %v2207_v21 = vcombine.low %v245_v4, %v249_v5  ;;  %v266_v30 = vld [vmem:[%s3302_s4 + $0x4e8] sm:$0xff] }
  0x2a   :  { %1664 = vmatpush1.bf16.msra.mxu0 %v2143_v36  ;;  %1750 = vmatpush1.bf16.msra.mxu1 %v2145_v37  ;;  %v234_v36 = vld [vmem:[%s3302_s4 + $0x3e8] sm:$0xff]  ;;  %v36_v37 = vunpack.c.h.bf16 %v2585_v57  ;;  %v265_v28 = vld [vmem:[%s3302_s4 + $0x4e0] sm:$0xff] }
  0x2b   :  { %1665 = vmatprep.subr.bf16.mxu0 %v2152_v38  ;;  %1751 = vmatprep.subr.bf16.mxu1 %v2154_v39  ;;  %v55_v38 = vrot.slane %v2493_v63, %v2622_v22  ;;  %v80_v39 = vrot.slane %v2498_v0, %v2622_v22  ;;  %v2194_v49 = vcombine.high %v230_v35, %v234_v36  ;;  %v237_v63 = vld [vmem:[%s3302_s4 + $0x400] sm:$0xff]  ;;  %v242_v57 = vld [vmem:[%s3302_s4 + $0x428] sm:$0xff] }
  0x2c   :  { %v241_v0 = vld [vmem:[%s3302_s4 + $0x420] sm:$0xff]  ;;  %v2193_v1 = vcombine.low %v230_v35, %v234_v36  ;;  %v2202_v3 = vcombine.high %v238_v56, %v242_v57  ;;  %v270_v35 = vld [vmem:[%s3302_s4 + $0x508] sm:$0xff] }
  0x2d   :  { %v63_v50 = vmul.f32 %v55_v38, %v30_v59  ;;  %v88_v51 = vmul.f32 %v80_v39, %v36_v37  ;;  %v96_v53 = vmul.f32 %v80_v39, %v30_v59  ;;  %v269_v59 = vld [vmem:[%s3302_s4 + $0x500] sm:$0xff]  ;;  %v274_v36 = vld [vmem:[%s3302_s4 + $0x528] sm:$0xff] }
  0x2e   :  { %1666 = vmatpush1.bf16.msra.mxu0 %v2151_v45  ;;  %1752 = vmatpush1.bf16.msra.mxu1 %v2153_v46  ;;  %v97_v45 = vmul.f32 %v43_v26, %v33_v24  ;;  %v2183_v46 = vcombine.low %v221_v13, %v225_v18  ;;  %v2201_v13 = vcombine.low %v238_v56, %v242_v57 }
  0x2f   :  { %1667 = vmatprep.subr.bf16.mxu0 %v2160_v47  ;;  %1753 = vmatprep.subr.bf16.mxu1 %v2162_v48  ;;  %v2185_v47 = vcombine.low %v222_v19, %v226_v20  ;;  %v2192_v48 = vcombine.high %v229_v33, %v233_v34  ;;  %v92_v7 = vsub.f32 %v63_v50, %v88_v51  ;;  %v254_v19 = vld [vmem:[%s3302_s4 + $0x488] sm:$0xff]  ;;  %v273_v34 = vld [vmem:[%s3302_s4 + $0x520] sm:$0xff] }
  0x30   :  { %v258_v20 = vld [vmem:[%s3302_s4 + $0x4a8] sm:$0xff]  ;;  %v2232_v39 = vcombine.high %v269_v59, %v273_v34  ;;  %v289_v50 = vld [vmem:[%s3302_s4 + $0x5a0] sm:$0xff] }
  0x31   :  { %v2218_v26 = vcombine.high %v254_v19, %v258_v20  ;;  %v286_v51 = vld [vmem:[%s3302_s4 + $0x588] sm:$0xff] }
  0x32   :  { %1668 = vmatpush1.bf16.msra.mxu0 %v2159_v55  ;;  %1754 = vmatpush1.bf16.msra.mxu1 %v2161_v60  ;;  %v100_v55 = vmul.f32 %v55_v38, %v36_v37  ;;  %v89_v60 = vsub.f32 %v60_v41, %v85_v42  ;;  %v2223_v37 = vcombine.low %v261_v27, %v265_v28  ;;  %v277_v42 = vld [vmem:[%s3302_s4 + $0x540] sm:$0xff] }
  0x33   :  { %1669 = vmatprep.subr.bf16.mxu0 %v2168_v61  ;;  %1755 = vmatprep.subr.bf16.mxu1 %v2170_v2  ;;  %v101_v61 = vadd.f32 %v97_v45, %v93_v44  ;;  %v2200_v2 = vcombine.high %v237_v63, %v241_v0  ;;  %v2234_v41 = vcombine.high %v270_v35, %v274_v36  ;;  %v281_v44 = vld [vmem:[%s3302_s4 + $0x560] sm:$0xff]  ;;  %v278_v45 = vld [vmem:[%s3302_s4 + $0x548] sm:$0xff] }
  0x34   :  { %v104_v8 = vadd.f32 %v100_v55, %v96_v53  ;;  %v290_v53 = vld [vmem:[%s3302_s4 + $0x5a8] sm:$0xff]  ;;  %v2239_v55 = vcombine.low %v277_v42, %v281_v44 }
  0x35   :  { %v2667_v9 = vpack.c.bf16 %v101_v61, %v89_v60  ;;  %v2250_v60 = vcombine.high %v286_v51, %v290_v53  ;;  %v293_v61 = vld [vmem:[%s3302_s4 + $0x5c0] sm:$0xff]  ;;  %v2249_v4 = vcombine.low %v286_v51, %v290_v53  ;;  %v342_v53 = vld [vmem:[%s3302_s4 + $0x748] sm:$0xff] }
  0x36   :  { %1670 = vmatpush1.bf16.msra.mxu0 %v2167_v10  ;;  %1756 = vmatpush1.bf16.msra.mxu1 %v2169_v11  ;;  %v246_v10 = vld [vmem:[%s3302_s4 + $0x448] sm:$0xff]  ;;  %v2681_v18 = vpack.c.bf16 %v104_v8, %v92_v7  ;;  %v301_v8 = vld [vmem:[%s3302_s4 + $0x600] sm:$0xff] }
  0x37   :  { %1671 = vmatprep.subr.bf16.mxu0 %v2176_v12  ;;  %1757 = vmatprep.subr.bf16.mxu1 %v2178_v17  ;;  %v250_v11 = vld [vmem:[%s3302_s4 + $0x468] sm:$0xff]  ;;  %v2199_v12 = vcombine.low %v237_v63, %v241_v0  ;;  %v257_v17 = vld [vmem:[%s3302_s4 + $0x4a0] sm:$0xff] }
  0x38   :  { %v2210_v15 = vcombine.high %v246_v10, %v250_v11  ;;  %v2209_v23 = vcombine.low %v246_v10, %v250_v11  ;;  %v2216_v24 = vcombine.high %v253_v16, %v257_v17  ;;  %v285_v0 = vld [vmem:[%s3302_s4 + $0x580] sm:$0xff]  ;;  %v302_v11 = vld [vmem:[%s3302_s4 + $0x608] sm:$0xff] }
  0x39   :  { %v2248_v57 = vcombine.high %v285_v0, %v289_v50  ;;  %v305_v10 = vld [vmem:[%s3302_s4 + $0x620] sm:$0xff] }
  0x3a   :  { %1672 = vmatpush1.bf16.msra.mxu0 %v2175_v29  ;;  %1758 = vmatpush1.bf16.msra.mxu1 %v2177_v31  ;;  %v262_v29 = vld [vmem:[%s3302_s4 + $0x4c8] sm:$0xff]  ;;  %v2215_v31 = vcombine.low %v253_v16, %v257_v17  ;;  %v309_v17 = vld [vmem:[%s3302_s4 + $0x640] sm:$0xff] }
  0x3b   :  { %1673 = vmatprep.subr.bf16.mxu0 %v2184_v58  ;;  %1759 = vmatprep.subr.bf16.mxu1 %v2186_v32  ;;  %v2217_v58 = vcombine.low %v254_v19, %v258_v20  ;;  %v2224_v32 = vcombine.high %v261_v27, %v265_v28  ;;  %v2226_v33 = vcombine.high %v262_v29, %v266_v30  ;;  %v313_v19 = vld [vmem:[%s3302_s4 + $0x660] sm:$0xff]  ;;  %v310_v20 = vld [vmem:[%s3302_s4 + $0x648] sm:$0xff] }
  0x3c   :  { %v2225_v38 = vcombine.low %v262_v29, %v266_v30  ;;  %v317_v28 = vld [vmem:[%s3302_s4 + $0x680] sm:$0xff]  ;;  %v318_v30 = vld [vmem:[%s3302_s4 + $0x688] sm:$0xff] }
  0x3d   :  { %v321_v29 = vld [vmem:[%s3302_s4 + $0x6a0] sm:$0xff] }
  0x3e   :  { %1674 = vmatpush1.bf16.msra.mxu0 %v2183_v46  ;;  %1760 = vmatpush1.bf16.msra.mxu1 %v2185_v47  ;;  %v282_v46 = vld [vmem:[%s3302_s4 + $0x568] sm:$0xff]  ;;  %v2231_v47 = vcombine.low %v269_v59, %v273_v34  ;;  %v325_v34 = vld [vmem:[%s3302_s4 + $0x6c0] sm:$0xff] }
  0x3f   :  { %1675 = vmatprep.subr.bf16.mxu0 %v2192_v48  ;;  %1761 = vmatprep.subr.bf16.mxu1 %v2194_v49  ;;  %v2233_v48 = vcombine.low %v270_v35, %v274_v36  ;;  %v2240_v49 = vcombine.high %v277_v42, %v281_v44  ;;  %v2242_v63 = vcombine.high %v278_v45, %v282_v46  ;;  %v329_v35 = vld [vmem:[%s3302_s4 + $0x6e0] sm:$0xff]  ;;  %v326_v36 = vld [vmem:[%s3302_s4 + $0x6c8] sm:$0xff] }
  0x40   :  { %v2241_v56 = vcombine.low %v278_v45, %v282_v46  ;;  %v333_v44 = vld [vmem:[%s3302_s4 + $0x700] sm:$0xff]  ;;  %v334_v46 = vld [vmem:[%s3302_s4 + $0x708] sm:$0xff] }
  0x41   :  { %v337_v45 = vld [vmem:[%s3302_s4 + $0x720] sm:$0xff] }
  0x42   :  { %1676 = vmatpush1.bf16.msra.mxu0 %v2191_v62  ;;  %1762 = vmatpush1.bf16.msra.mxu1 %v2193_v1  ;;  %v297_v62 = vld [vmem:[%s3302_s4 + $0x5e0] sm:$0xff]  ;;  %v294_v1 = vld [vmem:[%s3302_s4 + $0x5c8] sm:$0xff] }
  0x43   :  { %1688 = vmatprep.subr.bf16.mxu0 %v2200_v2  ;;  %1774 = vmatprep.subr.bf16.mxu1 %v2202_v3  ;;  %v298_v2 = vld [vmem:[%s3302_s4 + $0x5e8] sm:$0xff]  ;;  %v2247_v3 = vcombine.low %v285_v0, %v289_v50  ;;  %v2256_v5 = vcombine.high %v293_v61, %v297_v62  ;;  %v341_v50 = vld [vmem:[%s3302_s4 + $0x740] sm:$0xff] }
  0x44   :  { %v2258_v7 = vcombine.high %v294_v1, %v298_v2  ;;  %v345_v51 = vld [vmem:[%s3302_s4 + $0x760] sm:$0xff] }
  0x45   :  { %1678 = vmatmul.mubr.bf16.vlgmr.msra.gmra.mrb[0].mxu0 %v2667_v9  ;;  %1764 = vmatmul.mubr.bf16.vlgmr.msra.gmra.mrb[0].mxu1 %v2667_v9 }
  0x46   :  { %1689 = vmatpush1.bf16.msra.mxu0 %v2199_v12  ;;  %1775 = vmatpush1.bf16.msra.mxu1 %v2201_v13  ;;  %v306_v12 = vld [vmem:[%s3302_s4 + $0x628] sm:$0xff]  ;;  %v2255_v13 = vcombine.low %v293_v61, %v297_v62  ;;  %v349_v62 = vld [vmem:[%s3302_s4 + $0x780] sm:$0xff] }
  0x47   :  { %1690 = vmatprep.subr.bf16.mxu0 %v2208_v14  ;;  %1776 = vmatprep.subr.bf16.mxu1 %v2210_v15  ;;  %v2257_v14 = vcombine.low %v294_v1, %v298_v2  ;;  %v2264_v15 = vcombine.high %v301_v8, %v305_v10  ;;  %v2266_v16 = vcombine.high %v302_v11, %v306_v12  ;;  %v353_v1 = vld [vmem:[%s3302_s4 + $0x7a0] sm:$0xff]  ;;  %v350_v2 = vld [vmem:[%s3302_s4 + $0x788] sm:$0xff] }
  0x48   :  { %1720 = vmatprep.mubr.bf16.mxu0 %v2681_v18  ;;  %1806 = vmatprep.mubr.bf16.mxu1 %v2681_v18 }
  0x4a   :  { %1691 = vmatpush1.bf16.msra.mxu0 %v2207_v21  ;;  %1777 = vmatpush1.bf16.msra.mxu1 %v2209_v23  ;;  %v314_v21 = vld [vmem:[%s3302_s4 + $0x668] sm:$0xff]  ;;  %v2263_v23 = vcombine.low %v301_v8, %v305_v10  ;;  %v357_v10 = vld [vmem:[%s3302_s4 + $0x7c0] sm:$0xff] }
  0x4b   :  { %1692 = vmatprep.subr.bf16.mxu0 %v2216_v24  ;;  %1778 = vmatprep.subr.bf16.mxu1 %v2218_v26  ;;  %v2265_v24 = vcombine.low %v302_v11, %v306_v12  ;;  %v2272_v26 = vcombine.high %v309_v17, %v313_v19  ;;  %v2274_v27 = vcombine.high %v310_v20, %v314_v21  ;;  %v361_v11 = vld [vmem:[%s3302_s4 + $0x7e0] sm:$0xff]  ;;  %v358_v12 = vld [vmem:[%s3302_s4 + $0x7c8] sm:$0xff] }
  0x4e   :  { %1693 = vmatpush1.bf16.msra.mxu0 %v2215_v31  ;;  %1779 = vmatpush1.bf16.msra.mxu1 %v2217_v58  ;;  %v322_v31 = vld [vmem:[%s3302_s4 + $0x6a8] sm:$0xff]  ;;  %v2271_v58 = vcombine.low %v309_v17, %v313_v19  ;;  %v111_v19 = vld [vmem:[%s3302_s4 + $0x10] sm:$0xff] }
  0x4f   :  { %1694 = vmatprep.subr.bf16.mxu0 %v2224_v32  ;;  %1780 = vmatprep.subr.bf16.mxu1 %v2226_v33  ;;  %v2273_v32 = vcombine.low %v310_v20, %v314_v21  ;;  %v2280_v33 = vcombine.high %v317_v28, %v321_v29  ;;  %v2282_v59 = vcombine.high %v318_v30, %v322_v31  ;;  %v115_v20 = vld [vmem:[%s3302_s4 + $0x30] sm:$0xff]  ;;  %v112_v21 = vld [vmem:[%s3302_s4 + $0x18] sm:$0xff] }
  0x52   :  { %1695 = vmatpush1.bf16.msra.mxu0 %v2223_v37  ;;  %1781 = vmatpush1.bf16.msra.mxu1 %v2225_v38  ;;  %v330_v37 = vld [vmem:[%s3302_s4 + $0x6e8] sm:$0xff]  ;;  %v2279_v38 = vcombine.low %v317_v28, %v321_v29  ;;  %v119_v29 = vld [vmem:[%s3302_s4 + $0x50] sm:$0xff] }
  0x53   :  { %1696 = vmatprep.subr.bf16.mxu0 %v2232_v39  ;;  %1782 = vmatprep.subr.bf16.mxu1 %v2234_v41  ;;  %v2281_v39 = vcombine.low %v318_v30, %v322_v31  ;;  %v2288_v41 = vcombine.high %v325_v34, %v329_v35  ;;  %v2290_v42 = vcombine.high %v326_v36, %v330_v37  ;;  %v123_v30 = vld [vmem:[%s3302_s4 + $0x70] sm:$0xff]  ;;  %v120_v31 = vld [vmem:[%s3302_s4 + $0x58] sm:$0xff] }
  0x56   :  { %1697 = vmatpush1.bf16.msra.mxu0 %v2231_v47  ;;  %1783 = vmatpush1.bf16.msra.mxu1 %v2233_v48  ;;  %v338_v47 = vld [vmem:[%s3302_s4 + $0x728] sm:$0xff]  ;;  %v2287_v48 = vcombine.low %v325_v34, %v329_v35  ;;  %v127_v35 = vld [vmem:[%s3302_s4 + $0x90] sm:$0xff] }
  0x57   :  { %1698 = vmatprep.subr.bf16.mxu0 %v2240_v49  ;;  %1784 = vmatprep.subr.bf16.mxu1 %v2242_v63  ;;  %v2289_v49 = vcombine.low %v326_v36, %v330_v37  ;;  %v2296_v63 = vcombine.high %v333_v44, %v337_v45  ;;  %v2298_v0 = vcombine.high %v334_v46, %v338_v47  ;;  %v131_v36 = vld [vmem:[%s3302_s4 + $0xb0] sm:$0xff]  ;;  %v128_v37 = vld [vmem:[%s3302_s4 + $0x98] sm:$0xff] }
  0x5a   :  { %1699 = vmatpush1.bf16.msra.mxu0 %v2239_v55  ;;  %1785 = vmatpush1.bf16.msra.mxu1 %v2241_v56  ;;  %v346_v55 = vld [vmem:[%s3302_s4 + $0x768] sm:$0xff]  ;;  %v2295_v56 = vcombine.low %v333_v44, %v337_v45  ;;  %v135_v45 = vld [vmem:[%s3302_s4 + $0xd0] sm:$0xff] }
  0x5b   :  { %1700 = vmatprep.subr.bf16.mxu0 %v2248_v57  ;;  %1786 = vmatprep.subr.bf16.mxu1 %v2250_v60  ;;  %v2297_v57 = vcombine.low %v334_v46, %v338_v47  ;;  %v2304_v60 = vcombine.high %v341_v50, %v345_v51  ;;  %v2306_v61 = vcombine.high %v342_v53, %v346_v55  ;;  %v139_v46 = vld [vmem:[%s3302_s4 + $0xf0] sm:$0xff]  ;;  %v136_v47 = vld [vmem:[%s3302_s4 + $0xd8] sm:$0xff] }
  0x5e   :  { %1701 = vmatpush1.bf16.msra.mxu0 %v2247_v3  ;;  %1787 = vmatpush1.bf16.msra.mxu1 %v2249_v4  ;;  %v354_v3 = vld [vmem:[%s3302_s4 + $0x7a8] sm:$0xff]  ;;  %v2303_v4 = vcombine.low %v341_v50, %v345_v51  ;;  %v143_v51 = vld [vmem:[%s3302_s4 + $0x110] sm:$0xff] }
  0x5f   :  { %1702 = vmatprep.subr.bf16.mxu0 %v2256_v5  ;;  %1788 = vmatprep.subr.bf16.mxu1 %v2258_v7  ;;  %v2305_v5 = vcombine.low %v342_v53, %v346_v55  ;;  %v2312_v7 = vcombine.high %v349_v62, %v353_v1  ;;  %v2314_v8 = vcombine.high %v350_v2, %v354_v3  ;;  %v147_v53 = vld [vmem:[%s3302_s4 + $0x130] sm:$0xff]  ;;  %v148_v55 = vld [vmem:[%s3302_s4 + $0x138] sm:$0xff] }
  0x62   :  { %1703 = vmatpush1.bf16.msra.mxu0 %v2255_v13  ;;  %1789 = vmatpush1.bf16.msra.mxu1 %v2257_v14  ;;  %v362_v13 = vld [vmem:[%s3302_s4 + $0x7e8] sm:$0xff]  ;;  %v2311_v14 = vcombine.low %v349_v62, %v353_v1  ;;  %v151_v62 = vld [vmem:[%s3302_s4 + $0x150] sm:$0xff] }
  0x63   :  { %1704 = vmatprep.subr.bf16.mxu0 %v2264_v15  ;;  %1790 = vmatprep.subr.bf16.mxu1 %v2266_v16  ;;  %v2313_v15 = vcombine.low %v350_v2, %v354_v3  ;;  %v2320_v16 = vcombine.high %v357_v10, %v361_v11  ;;  %v2322_v17 = vcombine.high %v358_v12, %v362_v13  ;;  %v155_v1 = vld [vmem:[%s3302_s4 + $0x170] sm:$0xff]  ;;  %v152_v2 = vld [vmem:[%s3302_s4 + $0x158] sm:$0xff] }
  0x64   :  { %v156_v3 = vld [vmem:[%s3302_s4 + $0x178] sm:$0xff] }
  0x66   :  { %1705 = vmatpush1.bf16.msra.mxu0 %v2263_v23  ;;  %1791 = vmatpush1.bf16.msra.mxu1 %v2265_v24  ;;  %v116_v23 = vld [vmem:[%s3302_s4 + $0x38] sm:$0xff]  ;;  %v2319_v24 = vcombine.low %v357_v10, %v361_v11  ;;  %v159_v10 = vld [vmem:[%s3302_s4 + $0x190] sm:$0xff] }
  0x67   :  { %1706 = vmatprep.subr.bf16.mxu0 %v2272_v26  ;;  %1792 = vmatprep.subr.bf16.mxu1 %v2274_v27  ;;  %v2321_v26 = vcombine.low %v358_v12, %v362_v13  ;;  %v2076_v27 = vcombine.high %v111_v19, %v115_v20  ;;  %v2078_v28 = vcombine.high %v112_v21, %v116_v23  ;;  %v163_v11 = vld [vmem:[%s3302_s4 + $0x1b0] sm:$0xff]  ;;  %v160_v12 = vld [vmem:[%s3302_s4 + $0x198] sm:$0xff] }
  0x68   :  { %v164_v13 = vld [vmem:[%s3302_s4 + $0x1b8] sm:$0xff] }
  0x6a   :  { %1707 = vmatpush1.bf16.msra.mxu0 %v2271_v58  ;;  %1793 = vmatpush1.bf16.msra.mxu1 %v2273_v32  ;;  %v124_v58 = vld [vmem:[%s3302_s4 + $0x78] sm:$0xff]  ;;  %v2075_v32 = vcombine.low %v111_v19, %v115_v20  ;;  %v167_v19 = vld [vmem:[%s3302_s4 + $0x1d0] sm:$0xff] }
  0x6b   :  { %1708 = vmatprep.subr.bf16.mxu0 %v2280_v33  ;;  %1794 = vmatprep.subr.bf16.mxu1 %v2282_v59  ;;  %v2077_v33 = vcombine.low %v112_v21, %v116_v23  ;;  %v2084_v59 = vcombine.high %v119_v29, %v123_v30  ;;  %v2086_v34 = vcombine.high %v120_v31, %v124_v58  ;;  %v171_v20 = vld [vmem:[%s3302_s4 + $0x1f0] sm:$0xff]  ;;  %v168_v21 = vld [vmem:[%s3302_s4 + $0x1d8] sm:$0xff] }
  0x6c   :  { %v172_v23 = vld [vmem:[%s3302_s4 + $0x1f8] sm:$0xff] }
  0x6e   :  { %1709 = vmatpush1.bf16.msra.mxu0 %v2279_v38  ;;  %1795 = vmatpush1.bf16.msra.mxu1 %v2281_v39  ;;  %v132_v38 = vld [vmem:[%s3302_s4 + $0xb8] sm:$0xff]  ;;  %v2083_v39 = vcombine.low %v119_v29, %v123_v30  ;;  %v175_v29 = vld [vmem:[%s3302_s4 + $0x210] sm:$0xff] }
  0x6f   :  { %1710 = vmatprep.subr.bf16.mxu0 %v2288_v41  ;;  %1796 = vmatprep.subr.bf16.mxu1 %v2290_v42  ;;  %v2085_v41 = vcombine.low %v120_v31, %v124_v58  ;;  %v2092_v42 = vcombine.high %v127_v35, %v131_v36  ;;  %v2094_v44 = vcombine.high %v128_v37, %v132_v38  ;;  %v179_v30 = vld [vmem:[%s3302_s4 + $0x230] sm:$0xff]  ;;  %v176_v31 = vld [vmem:[%s3302_s4 + $0x218] sm:$0xff] }
  0x70   :  { %v180_v58 = vld [vmem:[%s3302_s4 + $0x238] sm:$0xff] }
  0x72   :  { %1711 = vmatpush1.bf16.msra.mxu0 %v2287_v48  ;;  %1797 = vmatpush1.bf16.msra.mxu1 %v2289_v49  ;;  %v140_v48 = vld [vmem:[%s3302_s4 + $0xf8] sm:$0xff]  ;;  %v2091_v49 = vcombine.low %v127_v35, %v131_v36  ;;  %v183_v35 = vld [vmem:[%s3302_s4 + $0x250] sm:$0xff] }
  0x73   :  { %1712 = vmatprep.subr.bf16.mxu0 %v2296_v63  ;;  %1798 = vmatprep.subr.bf16.mxu1 %v2298_v0  ;;  %v2093_v63 = vcombine.low %v128_v37, %v132_v38  ;;  %v2100_v0 = vcombine.high %v135_v45, %v139_v46  ;;  %v2102_v50 = vcombine.high %v136_v47, %v140_v48  ;;  %v187_v36 = vld [vmem:[%s3302_s4 + $0x270] sm:$0xff]  ;;  %v184_v37 = vld [vmem:[%s3302_s4 + $0x258] sm:$0xff] }
  0x74   :  { %v188_v38 = vld [vmem:[%s3302_s4 + $0x278] sm:$0xff] }
  0x76   :  { %1713 = vmatpush1.bf16.msra.mxu0 %v2295_v56  ;;  %1799 = vmatpush1.bf16.msra.mxu1 %v2297_v57  ;;  %v2099_v56 = vcombine.low %v135_v45, %v139_v46  ;;  %v2101_v57 = vcombine.low %v136_v47, %v140_v48  ;;  %v191_v45 = vld [vmem:[%s3302_s4 + $0x290] sm:$0xff]  ;;  %v192_v47 = vld [vmem:[%s3302_s4 + $0x298] sm:$0xff] }
  0x77   :  { %1714 = vmatprep.subr.bf16.mxu0 %v2304_v60  ;;  %1800 = vmatprep.subr.bf16.mxu1 %v2306_v61  ;;  %v2108_v60 = vcombine.high %v143_v51, %v147_v53  ;;  %v195_v46 = vld [vmem:[%s3302_s4 + $0x2b0] sm:$0xff]  ;;  %v196_v48 = vld [vmem:[%s3302_s4 + $0x2b8] sm:$0xff] }
  0x7a   :  { %1715 = vmatpush1.bf16.msra.mxu0 %v2303_v4  ;;  %1801 = vmatpush1.bf16.msra.mxu1 %v2305_v5  ;;  %v2107_v4 = vcombine.low %v143_v51, %v147_v53  ;;  %v199_v51 = vld [vmem:[%s3302_s4 + $0x2d0] sm:$0xff] }
  0x7b   :  { %1716 = vmatprep.subr.bf16.mxu0 %v2312_v7  ;;  %1802 = vmatprep.subr.bf16.mxu1 %v2314_v8  ;;  %v2116_v7 = vcombine.high %v151_v62, %v155_v1  ;;  %v2118_v8 = vcombine.high %v152_v2, %v156_v3  ;;  %v203_v53 = vld [vmem:[%s3302_s4 + $0x2f0] sm:$0xff] }
  0x7e   :  { %1717 = vmatpush1.bf16.msra.mxu0 %v2311_v14  ;;  %1803 = vmatpush1.bf16.msra.mxu1 %v2313_v15  ;;  %v2115_v14 = vcombine.low %v151_v62, %v155_v1  ;;  %v2117_v15 = vcombine.low %v152_v2, %v156_v3  ;;  %v207_v62 = vld [vmem:[%s3302_s4 + $0x310] sm:$0xff]  ;;  %v208_v2 = vld [vmem:[%s3302_s4 + $0x318] sm:$0xff] }
  0x7f   :  { %1718 = vmatprep.subr.bf16.mxu0 %v2320_v16  ;;  %1804 = vmatprep.subr.bf16.mxu1 %v2322_v17  ;;  %v2124_v16 = vcombine.high %v159_v10, %v163_v11  ;;  %v2126_v17 = vcombine.high %v160_v12, %v164_v13  ;;  %v211_v1 = vld [vmem:[%s3302_s4 + $0x330] sm:$0xff]  ;;  %v212_v3 = vld [vmem:[%s3302_s4 + $0x338] sm:$0xff] }
  0x82   :  { %1719 = vmatpush1.bf16.msra.mxu0 %v2319_v24  ;;  %1805 = vmatpush1.bf16.msra.mxu1 %v2321_v26  ;;  %v2123_v24 = vcombine.low %v159_v10, %v163_v11  ;;  %v2125_v26 = vcombine.low %v160_v12, %v164_v13  ;;  %v215_v10 = vld [vmem:[%s3302_s4 + $0x350] sm:$0xff]  ;;  %v216_v12 = vld [vmem:[%s3302_s4 + $0x358] sm:$0xff] }
  0x83   :  { %1817 = vmatprep.subr.bf16.mxu0 %v2076_v27  ;;  %1903 = vmatprep.subr.bf16.mxu1 %v2078_v28  ;;  %v2132_v27 = vcombine.high %v167_v19, %v171_v20  ;;  %v2134_v28 = vcombine.high %v168_v21, %v172_v23  ;;  %v219_v11 = vld [vmem:[%s3302_s4 + $0x370] sm:$0xff]  ;;  %v220_v13 = vld [vmem:[%s3302_s4 + $0x378] sm:$0xff] }
  0x85   :  { %1721 = vmatmul.mubr.bf16.vlgmr.msra.gmra.mrb[0].mxu0 %v2647_v40  ;;  %1807 = vmatmul.mubr.bf16.vlgmr.msra.gmra.mrb[0].mxu1 %v2647_v40 }
  0x86   :  { %1818 = vmatpush1.bf16.msra.mxu0 %v2075_v32  ;;  %1904 = vmatpush1.bf16.msra.mxu1 %v2077_v33  ;;  %v2131_v32 = vcombine.low %v167_v19, %v171_v20  ;;  %v2133_v33 = vcombine.low %v168_v21, %v172_v23  ;;  %v223_v19 = vld [vmem:[%s3302_s4 + $0x390] sm:$0xff]  ;;  %v224_v21 = vld [vmem:[%s3302_s4 + $0x398] sm:$0xff] }
  0x87   :  { %1819 = vmatprep.subr.bf16.mxu0 %v2084_v59  ;;  %1905 = vmatprep.subr.bf16.mxu1 %v2086_v34  ;;  %v2140_v59 = vcombine.high %v175_v29, %v179_v30  ;;  %v2142_v34 = vcombine.high %v176_v31, %v180_v58  ;;  %v227_v20 = vld [vmem:[%s3302_s4 + $0x3b0] sm:$0xff]  ;;  %v228_v23 = vld [vmem:[%s3302_s4 + $0x3b8] sm:$0xff] }
  0x88   :  { %1849 = vmatprep.mubr.bf16.mxu0 %v2528_v25  ;;  %1935 = vmatprep.mubr.bf16.mxu1 %v2528_v25  ;;  %v144_v25 = vld [vmem:[%s3302_s4 + $0x118] sm:$0xff] }
  0x89   :  { %v2110_v61 = vcombine.high %v144_v25, %v148_v55  ;;  %v2109_v5 = vcombine.low %v144_v25, %v148_v55  ;;  %v200_v25 = vld [vmem:[%s3302_s4 + $0x2d8] sm:$0xff] }
  0x8a   :  { %1820 = vmatpush1.bf16.msra.mxu0 %v2083_v39  ;;  %1906 = vmatpush1.bf16.msra.mxu1 %v2085_v41  ;;  %v2139_v39 = vcombine.low %v175_v29, %v179_v30  ;;  %v2141_v41 = vcombine.low %v176_v31, %v180_v58  ;;  %v204_v55 = vld [vmem:[%s3302_s4 + $0x2f8] sm:$0xff]  ;;  %v231_v29 = vld [vmem:[%s3302_s4 + $0x3d0] sm:$0xff] }
  0x8b   :  { %1821 = vmatprep.subr.bf16.mxu0 %v2092_v42  ;;  %1907 = vmatprep.subr.bf16.mxu1 %v2094_v44  ;;  %v2148_v42 = vcombine.high %v183_v35, %v187_v36  ;;  %v2150_v44 = vcombine.high %v184_v37, %v188_v38  ;;  %v235_v30 = vld [vmem:[%s3302_s4 + $0x3f0] sm:$0xff]  ;;  %v232_v31 = vld [vmem:[%s3302_s4 + $0x3d8] sm:$0xff] }
  0x8c   :  { %v236_v58 = vld [vmem:[%s3302_s4 + $0x3f8] sm:$0xff] }
  0x8e   :  { %1822 = vmatpush1.bf16.msra.mxu0 %v2091_v49  ;;  %1908 = vmatpush1.bf16.msra.mxu1 %v2093_v63  ;;  %v2147_v49 = vcombine.low %v183_v35, %v187_v36  ;;  %v2149_v63 = vcombine.low %v184_v37, %v188_v38  ;;  %v239_v35 = vld [vmem:[%s3302_s4 + $0x410] sm:$0xff]  ;;  %v240_v37 = vld [vmem:[%s3302_s4 + $0x418] sm:$0xff] }
  0x8f   :  { %1823 = vmatprep.subr.bf16.mxu0 %v2100_v0  ;;  %1909 = vmatprep.subr.bf16.mxu1 %v2102_v50  ;;  %v2156_v0 = vcombine.high %v191_v45, %v195_v46  ;;  %v2158_v50 = vcombine.high %v192_v47, %v196_v48  ;;  %v243_v36 = vld [vmem:[%s3302_s4 + $0x430] sm:$0xff]  ;;  %v244_v38 = vld [vmem:[%s3302_s4 + $0x438] sm:$0xff] }
  0x92   :  { %1824 = vmatpush1.bf16.msra.mxu0 %v2099_v56  ;;  %1910 = vmatpush1.bf16.msra.mxu1 %v2101_v57  ;;  %v2155_v56 = vcombine.low %v191_v45, %v195_v46  ;;  %v2157_v57 = vcombine.low %v192_v47, %v196_v48  ;;  %v247_v45 = vld [vmem:[%s3302_s4 + $0x450] sm:$0xff]  ;;  %v248_v47 = vld [vmem:[%s3302_s4 + $0x458] sm:$0xff] }
  0x93   :  { %1825 = vmatprep.subr.bf16.mxu0 %v2108_v60  ;;  %1911 = vmatprep.subr.bf16.mxu1 %v2110_v61  ;;  %v2164_v60 = vcombine.high %v199_v51, %v203_v53  ;;  %v2166_v61 = vcombine.high %v200_v25, %v204_v55  ;;  %v251_v46 = vld [vmem:[%s3302_s4 + $0x470] sm:$0xff]  ;;  %v252_v48 = vld [vmem:[%s3302_s4 + $0x478] sm:$0xff] }
  0x96   :  { %1826 = vmatpush1.bf16.msra.mxu0 %v2107_v4  ;;  %1912 = vmatpush1.bf16.msra.mxu1 %v2109_v5  ;;  %v2163_v4 = vcombine.low %v199_v51, %v203_v53  ;;  %v2165_v5 = vcombine.low %v200_v25, %v204_v55  ;;  %v255_v51 = vld [vmem:[%s3302_s4 + $0x490] sm:$0xff]  ;;  %v256_v25 = vld [vmem:[%s3302_s4 + $0x498] sm:$0xff] }
  0x97   :  { %1827 = vmatprep.subr.bf16.mxu0 %v2116_v7  ;;  %1913 = vmatprep.subr.bf16.mxu1 %v2118_v8  ;;  %v2172_v7 = vcombine.high %v207_v62, %v211_v1  ;;  %v2174_v8 = vcombine.high %v208_v2, %v212_v3  ;;  %v259_v53 = vld [vmem:[%s3302_s4 + $0x4b0] sm:$0xff]  ;;  %v260_v55 = vld [vmem:[%s3302_s4 + $0x4b8] sm:$0xff] }
  0x9a   :  { %1828 = vmatpush1.bf16.msra.mxu0 %v2115_v14  ;;  %1914 = vmatpush1.bf16.msra.mxu1 %v2117_v15  ;;  %v2171_v14 = vcombine.low %v207_v62, %v211_v1  ;;  %v2173_v15 = vcombine.low %v208_v2, %v212_v3  ;;  %v263_v62 = vld [vmem:[%s3302_s4 + $0x4d0] sm:$0xff]  ;;  %v268_v2 = vld [vmem:[%s3302_s4 + $0x4f8] sm:$0xff]  ;;  %v2219_v3 = vcombine.low %v255_v51, %v259_v53 }
  0x9b   :  { %1829 = vmatprep.subr.bf16.mxu0 %v2124_v16  ;;  %1915 = vmatprep.subr.bf16.mxu1 %v2126_v17  ;;  %v2180_v16 = vcombine.high %v215_v10, %v219_v11  ;;  %v2182_v17 = vcombine.high %v216_v12, %v220_v13  ;;  %v267_v1 = vld [vmem:[%s3302_s4 + $0x4f0] sm:$0xff] }
  0x9e   :  { %1830 = vmatpush1.bf16.msra.mxu0 %v2123_v24  ;;  %1916 = vmatpush1.bf16.msra.mxu1 %v2125_v26  ;;  %v2179_v24 = vcombine.low %v215_v10, %v219_v11  ;;  %v2181_v26 = vcombine.low %v216_v12, %v220_v13  ;;  %v275_v10 = vld [vmem:[%s3302_s4 + $0x530] sm:$0xff]  ;;  %v276_v11 = vld [vmem:[%s3302_s4 + $0x538] sm:$0xff]  ;;  %v2227_v12 = vcombine.low %v263_v62, %v267_v1 }
  0x9f   :  { %1831 = vmatprep.subr.bf16.mxu0 %v2132_v27  ;;  %1917 = vmatprep.subr.bf16.mxu1 %v2134_v28  ;;  %v2188_v27 = vcombine.high %v223_v19, %v227_v20  ;;  %v2190_v28 = vcombine.high %v224_v21, %v228_v23 }
  0xa2   :  { %1832 = vmatpush1.bf16.msra.mxu0 %v2131_v32  ;;  %1918 = vmatpush1.bf16.msra.mxu1 %v2133_v33  ;;  %v2187_v32 = vcombine.low %v223_v19, %v227_v20  ;;  %v2189_v33 = vcombine.low %v224_v21, %v228_v23  ;;  %v280_v19 = vld [vmem:[%s3302_s4 + $0x558] sm:$0xff] }
  0xa3   :  { %1833 = vmatprep.subr.bf16.mxu0 %v2140_v59  ;;  %1919 = vmatprep.subr.bf16.mxu1 %v2142_v34  ;;  %v2196_v59 = vcombine.high %v231_v29, %v235_v30  ;;  %v2198_v34 = vcombine.high %v232_v31, %v236_v58  ;;  %v284_v20 = vld [vmem:[%s3302_s4 + $0x578] sm:$0xff] }
  0xa6   :  { %1834 = vmatpush1.bf16.msra.mxu0 %v2139_v39  ;;  %1920 = vmatpush1.bf16.msra.mxu1 %v2141_v41  ;;  %v2195_v39 = vcombine.low %v231_v29, %v235_v30  ;;  %v2197_v41 = vcombine.low %v232_v31, %v236_v58  ;;  %v288_v29 = vld [vmem:[%s3302_s4 + $0x598] sm:$0xff]  ;;  %v2245_v58 = vcombine.low %v280_v19, %v284_v20 }
  0xa7   :  { %1835 = vmatprep.subr.bf16.mxu0 %v2148_v42  ;;  %1921 = vmatprep.subr.bf16.mxu1 %v2150_v44  ;;  %v2204_v42 = vcombine.high %v239_v35, %v243_v36  ;;  %v2206_v44 = vcombine.high %v240_v37, %v244_v38  ;;  %v292_v30 = vld [vmem:[%s3302_s4 + $0x5b8] sm:$0xff] }
  0xaa   :  { %1836 = vmatpush1.bf16.msra.mxu0 %v2147_v49  ;;  %1922 = vmatpush1.bf16.msra.mxu1 %v2149_v63  ;;  %v2203_v49 = vcombine.low %v239_v35, %v243_v36  ;;  %v2205_v63 = vcombine.low %v240_v37, %v244_v38  ;;  %v296_v35 = vld [vmem:[%s3302_s4 + $0x5d8] sm:$0xff]  ;;  %v2253_v38 = vcombine.low %v288_v29, %v292_v30 }
  0xab   :  { %1837 = vmatprep.subr.bf16.mxu0 %v2156_v0  ;;  %1923 = vmatprep.subr.bf16.mxu1 %v2158_v50  ;;  %v2212_v0 = vcombine.high %v247_v45, %v251_v46  ;;  %v2214_v50 = vcombine.high %v248_v47, %v252_v48  ;;  %v300_v36 = vld [vmem:[%s3302_s4 + $0x5f8] sm:$0xff] }
  0xae   :  { %1838 = vmatpush1.bf16.msra.mxu0 %v2155_v56  ;;  %1924 = vmatpush1.bf16.msra.mxu1 %v2157_v57  ;;  %v2211_v56 = vcombine.low %v247_v45, %v251_v46  ;;  %v2213_v57 = vcombine.low %v248_v47, %v252_v48  ;;  %v304_v45 = vld [vmem:[%s3302_s4 + $0x618] sm:$0xff]  ;;  %v2261_v48 = vcombine.low %v296_v35, %v300_v36 }
  0xaf   :  { %1839 = vmatprep.subr.bf16.mxu0 %v2164_v60  ;;  %1925 = vmatprep.subr.bf16.mxu1 %v2166_v61  ;;  %v2220_v60 = vcombine.high %v255_v51, %v259_v53  ;;  %v2222_v61 = vcombine.high %v256_v25, %v260_v55  ;;  %v308_v46 = vld [vmem:[%s3302_s4 + $0x638] sm:$0xff] }
  0xb0   :  { %v312_v51 = vld [vmem:[%s3302_s4 + $0x658] sm:$0xff] }
  0xb1   :  { %v316_v53 = vld [vmem:[%s3302_s4 + $0x678] sm:$0xff] }
  0xb2   :  { %1840 = vmatpush1.bf16.msra.mxu0 %v2163_v4  ;;  %1926 = vmatpush1.bf16.msra.mxu1 %v2165_v5  ;;  %v2221_v4 = vcombine.low %v256_v25, %v260_v55  ;;  %v2228_v5 = vcombine.high %v263_v62, %v267_v1  ;;  %v2269_v55 = vcombine.low %v304_v45, %v308_v46  ;;  %v320_v62 = vld [vmem:[%s3302_s4 + $0x698] sm:$0xff] }
  0xb3   :  { %1841 = vmatprep.subr.bf16.mxu0 %v2172_v7  ;;  %1927 = vmatprep.subr.bf16.mxu1 %v2174_v8  ;;  %v271_v8 = vld [vmem:[%s3302_s4 + $0x510] sm:$0xff]  ;;  %v324_v1 = vld [vmem:[%s3302_s4 + $0x6b8] sm:$0xff] }
  0xb4   :  { %v2235_v21 = vcombine.low %v271_v8, %v275_v10 }
  0xb6   :  { %1842 = vmatpush1.bf16.msra.mxu0 %v2171_v14  ;;  %1928 = vmatpush1.bf16.msra.mxu1 %v2173_v15  ;;  %v2236_v14 = vcombine.high %v271_v8, %v275_v10  ;;  %v328_v8 = vld [vmem:[%s3302_s4 + $0x6d8] sm:$0xff] }
  0xb7   :  { %1843 = vmatprep.subr.bf16.mxu0 %v2180_v16  ;;  %1929 = vmatprep.subr.bf16.mxu1 %v2182_v17  ;;  %v279_v16 = vld [vmem:[%s3302_s4 + $0x550] sm:$0xff]  ;;  %v332_v10 = vld [vmem:[%s3302_s4 + $0x6f8] sm:$0xff] }
  0xb8   :  { %v283_v17 = vld [vmem:[%s3302_s4 + $0x570] sm:$0xff] }
  0xb9   :  { %v2243_v31 = vcombine.low %v279_v16, %v283_v17 }
  0xba   :  { %1844 = vmatpush1.bf16.msra.mxu0 %v2179_v24  ;;  %1930 = vmatpush1.bf16.msra.mxu1 %v2181_v26  ;;  %v2244_v24 = vcombine.high %v279_v16, %v283_v17  ;;  %v2246_v26 = vcombine.high %v280_v19, %v284_v20  ;;  %v336_v16 = vld [vmem:[%s3302_s4 + $0x718] sm:$0xff]  ;;  %v2293_v20 = vcombine.low %v328_v8, %v332_v10 }
  0xbb   :  { %1845 = vmatprep.subr.bf16.mxu0 %v2188_v27  ;;  %1931 = vmatprep.subr.bf16.mxu1 %v2190_v28  ;;  %v287_v27 = vld [vmem:[%s3302_s4 + $0x590] sm:$0xff]  ;;  %v340_v17 = vld [vmem:[%s3302_s4 + $0x738] sm:$0xff] }
  0xbc   :  { %v291_v28 = vld [vmem:[%s3302_s4 + $0x5b0] sm:$0xff] }
  0xbd   :  { %v2251_v37 = vcombine.low %v287_v27, %v291_v28 }
  0xbe   :  { %1846 = vmatpush1.bf16.msra.mxu0 %v2187_v32  ;;  %1932 = vmatpush1.bf16.msra.mxu1 %v2189_v33  ;;  %v2252_v32 = vcombine.high %v287_v27, %v291_v28  ;;  %v2254_v33 = vcombine.high %v288_v29, %v292_v30  ;;  %v344_v27 = vld [vmem:[%s3302_s4 + $0x758] sm:$0xff]  ;;  %v2301_v30 = vcombine.low %v336_v16, %v340_v17 }
  0xbf   :  { %1847 = vmatprep.subr.bf16.mxu0 %v2196_v59  ;;  %1933 = vmatprep.subr.bf16.mxu1 %v2198_v34  ;;  %v295_v59 = vld [vmem:[%s3302_s4 + $0x5d0] sm:$0xff]  ;;  %v348_v28 = vld [vmem:[%s3302_s4 + $0x778] sm:$0xff] }
  0xc0   :  { %v299_v34 = vld [vmem:[%s3302_s4 + $0x5f0] sm:$0xff] }
  0xc1   :  { %v2259_v47 = vcombine.low %v295_v59, %v299_v34 }
  0xc2   :  { %1848 = vmatpush1.bf16.msra.mxu0 %v2195_v39  ;;  %1934 = vmatpush1.bf16.msra.mxu1 %v2197_v41  ;;  %v2260_v39 = vcombine.high %v295_v59, %v299_v34  ;;  %v2262_v41 = vcombine.high %v296_v35, %v300_v36  ;;  %v352_v59 = vld [vmem:[%s3302_s4 + $0x798] sm:$0xff]  ;;  %v2309_v36 = vcombine.low %v344_v27, %v348_v28 }
  0xc3   :  { %1860 = vmatprep.subr.bf16.mxu0 %v2204_v42  ;;  %1946 = vmatprep.subr.bf16.mxu1 %v2206_v44  ;;  %v303_v42 = vld [vmem:[%s3302_s4 + $0x610] sm:$0xff]  ;;  %v356_v34 = vld [vmem:[%s3302_s4 + $0x7b8] sm:$0xff] }
  0xc4   :  { %v307_v44 = vld [vmem:[%s3302_s4 + $0x630] sm:$0xff] }
  0xc5   :  { %1850 = vmatmul.mubr.bf16.vlgmr.msra.gmra.mrb[4].mxu0 %v2667_v9  ;;  %1936 = vmatmul.mubr.bf16.vlgmr.msra.gmra.mrb[4].mxu1 %v2667_v9  ;;  %v264_v9 = vld [vmem:[%s3302_s4 + $0x4d8] sm:$0xff]  ;;  %v2267_v25 = vcombine.low %v303_v42, %v307_v44 }
  0xc6   :  { %1861 = vmatpush1.bf16.msra.mxu0 %v2203_v49  ;;  %1947 = vmatpush1.bf16.msra.mxu1 %v2205_v63  ;;  %v2230_v7 = vcombine.high %v264_v9, %v268_v2  ;;  %v2229_v13 = vcombine.low %v264_v9, %v268_v2  ;;  %v2268_v49 = vcombine.high %v303_v42, %v307_v44  ;;  %v360_v42 = vld [vmem:[%s3302_s4 + $0x7d8] sm:$0xff] }
  0xc7   :  { %1862 = vmatprep.subr.bf16.mxu0 %v2212_v0  ;;  %1948 = vmatprep.subr.bf16.mxu1 %v2214_v50  ;;  %v2270_v63 = vcombine.high %v304_v45, %v308_v46  ;;  %v311_v0 = vld [vmem:[%s3302_s4 + $0x650] sm:$0xff]  ;;  %v2277_v2 = vcombine.low %v312_v51, %v316_v53  ;;  %v364_v44 = vld [vmem:[%s3302_s4 + $0x7f8] sm:$0xff]  ;;  %v2317_v46 = vcombine.low %v352_v59, %v356_v34 }
  0xc8   :  { %1892 = vmatprep.mubr.bf16.mxu0 %v2681_v18  ;;  %1978 = vmatprep.mubr.bf16.mxu1 %v2681_v18  ;;  %v272_v18 = vld [vmem:[%s3302_s4 + $0x518] sm:$0xff]  ;;  %v315_v50 = vld [vmem:[%s3302_s4 + $0x670] sm:$0xff] }
  0xc9   :  { %v2238_v15 = vcombine.high %v272_v18, %v276_v11  ;;  %v2237_v23 = vcombine.low %v272_v18, %v276_v11  ;;  %v2275_v9 = vcombine.low %v311_v0, %v315_v50  ;;  %v2285_v11 = vcombine.low %v320_v62, %v324_v1 }
  0xca   :  { %1863 = vmatpush1.bf16.msra.mxu0 %v2211_v56  ;;  %1949 = vmatpush1.bf16.msra.mxu1 %v2213_v57  ;;  %v2276_v56 = vcombine.high %v311_v0, %v315_v50  ;;  %v2278_v57 = vcombine.high %v312_v51, %v316_v53  ;;  %v1989_v0 = vld [vmem:[%s3307_s5] sm:$0xff] }
  0xcb   :  { %1864 = vmatprep.subr.bf16.mxu0 %v2220_v60  ;;  %1950 = vmatprep.subr.bf16.mxu1 %v2222_v61  ;;  %v319_v60 = vld [vmem:[%s3302_s4 + $0x690] sm:$0xff]  ;;  %v1994_v50 = vrot.slane %v1989_v0, %v2601_v6  ;;  %v2002_v51 = vrot.slane %v1989_v0, %v2575_v54  ;;  %v1998_v53 = vrot.slane %v1989_v0, %v2470_v52 }
  0xcc   :  { %v323_v61 = vld [vmem:[%s3302_s4 + $0x6b0] sm:$0xff] }
  0xcd   :  { %v2283_v18 = vcombine.low %v319_v60, %v323_v61 }
  0xce   :  { %1865 = vmatpush1.bf16.msra.mxu0 %v2219_v3  ;;  %1951 = vmatpush1.bf16.msra.mxu1 %v2221_v4  ;;  %v2284_v3 = vcombine.high %v319_v60, %v323_v61  ;;  %v2286_v4 = vcombine.high %v320_v62, %v324_v1 }
  0xcf   :  { %1866 = vmatprep.subr.bf16.mxu0 %v2228_v5  ;;  %1952 = vmatprep.subr.bf16.mxu1 %v2230_v7  ;;  %v327_v5 = vld [vmem:[%s3302_s4 + $0x6d0] sm:$0xff] }
  0xd0   :  { %v331_v7 = vld [vmem:[%s3302_s4 + $0x6f0] sm:$0xff] }
  0xd1   :  { %v2291_v19 = vcombine.low %v327_v5, %v331_v7 }
  0xd2   :  { %1867 = vmatpush1.bf16.msra.mxu0 %v2227_v12  ;;  %1953 = vmatpush1.bf16.msra.mxu1 %v2229_v13  ;;  %v2292_v12 = vcombine.high %v327_v5, %v331_v7  ;;  %v2294_v13 = vcombine.high %v328_v8, %v332_v10  ;;  %v2009_v5 = vsub.s32 4, %v2455_v43  ;;  %v2017_v7 = vsub.s32 6, %v2455_v43 }
  0xd3   :  { %1868 = vmatprep.subr.bf16.mxu0 %v2236_v14  ;;  %1954 = vmatprep.subr.bf16.mxu1 %v2238_v15  ;;  %v335_v14 = vld [vmem:[%s3302_s4 + $0x710] sm:$0xff]  ;;  %v2013_v8 = vsub.s32 5, %v2455_v43  ;;  %v2021_v10 = vsub.s32 7, %v2455_v43 }
  0xd4   :  { %v339_v15 = vld [vmem:[%s3302_s4 + $0x730] sm:$0xff] }
  0xd5   :  { %v2299_v29 = vcombine.low %v335_v14, %v339_v15 }
  0xd6   :  { %1869 = vmatpush1.bf16.msra.mxu0 %v2235_v21  ;;  %1955 = vmatpush1.bf16.msra.mxu1 %v2237_v23  ;;  %v2300_v21 = vcombine.high %v335_v14, %v339_v15  ;;  %v2302_v23 = vcombine.high %v336_v16, %v340_v17 }
  0xd7   :  { %1870 = vmatprep.subr.bf16.mxu0 %v2244_v24  ;;  %1956 = vmatprep.subr.bf16.mxu1 %v2246_v26  ;;  %v343_v24 = vld [vmem:[%s3302_s4 + $0x750] sm:$0xff] }
  0xd8   :  { %v347_v26 = vld [vmem:[%s3302_s4 + $0x770] sm:$0xff] }
  0xd9   :  { %v2307_v35 = vcombine.low %v343_v24, %v347_v26 }
  0xda   :  { %1871 = vmatpush1.bf16.msra.mxu0 %v2243_v31  ;;  %1957 = vmatpush1.bf16.msra.mxu1 %v2245_v58  ;;  %v2308_v31 = vcombine.high %v343_v24, %v347_v26  ;;  %v2310_v58 = vcombine.high %v344_v27, %v348_v28 }
  0xdb   :  { %1872 = vmatprep.subr.bf16.mxu0 %v2252_v32  ;;  %1958 = vmatprep.subr.bf16.mxu1 %v2254_v33  ;;  %v351_v32 = vld [vmem:[%s3302_s4 + $0x790] sm:$0xff] }
  0xdc   :  { %v355_v33 = vld [vmem:[%s3302_s4 + $0x7b0] sm:$0xff] }
  0xdd   :  { %v2315_v45 = vcombine.low %v351_v32, %v355_v33 }
  0xde   :  { %1873 = vmatpush1.bf16.msra.mxu0 %v2251_v37  ;;  %1959 = vmatpush1.bf16.msra.mxu1 %v2253_v38  ;;  %v2316_v37 = vcombine.high %v351_v32, %v355_v33  ;;  %v2318_v38 = vcombine.high %v352_v59, %v356_v34 }
  0xdf   :  { %1874 = vmatprep.subr.bf16.mxu0 %v2260_v39  ;;  %1960 = vmatprep.subr.bf16.mxu1 %v2262_v41  ;;  %v359_v39 = vld [vmem:[%s3302_s4 + $0x7d0] sm:$0xff] }
  0xe0   :  { %v363_v41 = vld [vmem:[%s3302_s4 + $0x7f0] sm:$0xff] }
  0xe2   :  { %1875 = vmatpush1.bf16.msra.mxu0 %v2259_v47  ;;  %1961 = vmatpush1.bf16.msra.mxu1 %v2261_v48  ;;  %v2324_v47 = vcombine.high %v359_v39, %v363_v41  ;;  %v2326_v48 = vcombine.high %v360_v42, %v364_v44 }
  0xe3   :  { %1876 = vmatprep.subr.bf16.mxu0 %v2268_v49  ;;  %1962 = vmatprep.subr.bf16.mxu1 %v2270_v63  ;;  %v2323_v49 = vcombine.low %v359_v39, %v363_v41  ;;  %v2325_v63 = vcombine.low %v360_v42, %v364_v44 }
  0xe6   :  { %1877 = vmatpush1.bf16.msra.mxu0 %v2267_v25  ;;  %1963 = vmatpush1.bf16.msra.mxu1 %v2269_v55  ;;  %v2006_v25 = vrot.slane %v1989_v0, %v2622_v22 }
  0xe7   :  { %1878 = vmatprep.subr.bf16.mxu0 %v2276_v56  ;;  %1964 = vmatprep.subr.bf16.mxu1 %v2278_v57 }
  0xea   :  { %1879 = vmatpush1.bf16.msra.mxu0 %v2275_v9  ;;  %1965 = vmatpush1.bf16.msra.mxu1 %v2277_v2 }
  0xeb   :  { %1880 = vmatprep.subr.bf16.mxu0 %v2284_v3  ;;  %1966 = vmatprep.subr.bf16.mxu1 %v2286_v4 }
  0xee   :  { %1881 = vmatpush1.bf16.msra.mxu0 %v2283_v18  ;;  %1967 = vmatpush1.bf16.msra.mxu1 %v2285_v11  ;;  %v2010_v18 = vrot.slane %v1989_v0, %v2009_v5  ;;  %v2018_v11 = vrot.slane %v1989_v0, %v2017_v7 }
  0xef   :  { %1882 = vmatprep.subr.bf16.mxu0 %v2292_v12  ;;  %1968 = vmatprep.subr.bf16.mxu1 %v2294_v13  ;;  %v2014_v12 = vrot.slane %v1989_v0, %v2013_v8  ;;  %v2022_v13 = vrot.slane %v1989_v0, %v2021_v10 }
  0xf2   :  { %1883 = vmatpush1.bf16.msra.mxu0 %v2291_v19  ;;  %1969 = vmatpush1.bf16.msra.mxu1 %v2293_v20 }
  0xf3   :  { %1884 = vmatprep.subr.bf16.mxu0 %v2300_v21  ;;  %1970 = vmatprep.subr.bf16.mxu1 %v2302_v23 }
  0xf6   :  { %1885 = vmatpush1.bf16.msra.mxu0 %v2299_v29  ;;  %1971 = vmatpush1.bf16.msra.mxu1 %v2301_v30 }
  0xf7   :  { %1886 = vmatprep.subr.bf16.mxu0 %v2308_v31  ;;  %1972 = vmatprep.subr.bf16.mxu1 %v2310_v58 }
  0xfa   :  { %1887 = vmatpush1.bf16.msra.mxu0 %v2307_v35  ;;  %1973 = vmatpush1.bf16.msra.mxu1 %v2309_v36 }
  0xfb   :  { %1888 = vmatprep.subr.bf16.mxu0 %v2316_v37  ;;  %1974 = vmatprep.subr.bf16.mxu1 %v2318_v38 }
  0xfe   :  { %1889 = vmatpush1.bf16.msra.mxu0 %v2315_v45  ;;  %1975 = vmatpush1.bf16.msra.mxu1 %v2317_v46 }
  0xff   :  { %1890 = vmatprep.subr.bf16.mxu0 %v2324_v47  ;;  %1976 = vmatprep.subr.bf16.mxu1 %v2326_v48 }
 0x102   :  { %1891 = vmatpush1.bf16.msra.mxu0 %v2323_v49  ;;  %1977 = vmatpush1.bf16.msra.mxu1 %v2325_v63 }
 0x105   :  { %1893 = vmatmul.mubr.bf16.vlgmr.msra.gmra.mrb[4].mxu0 %v2647_v40  ;;  %1979 = vmatmul.mubr.bf16.vlgmr.msra.gmra.mrb[4].mxu1 %v2647_v40 }
 0x158   :  { %v1722_v55 = vpop.f32.mrb[0].mxu0  ;;  %v1808_v57 = vpop.f32.mrb[0].mxu1 }
 0x159   :  { %v2031_v56 = vadd.f32 %v1994_v50, %v1722_v55  ;;  %v1724_v60 = vpop.f32.mrb[1].mxu0  ;;  %v2033_v61 = vadd.f32 %v2002_v51, %v1808_v57  ;;  %v1810_v1 = vpop.f32.mrb[1].mxu1 }
 0x15a   :  { %v2032_v62 = vadd.f32 %v1998_v53, %v1724_v60  ;;  %v1726_v40 = vpop.f32.mrb[2].mxu0  ;;  %v2034_v9 = vadd.f32 %v2006_v25, %v1810_v1  ;;  %v1812_v2 = vpop.f32.mrb[2].mxu1 }
 0x15b   :  { %2039 = vst [vmem:[%s3308_s6] sm:$0xff] %v2031_v56  ;;  %v2047_v6 = vadd.f32 %v1994_v50, %v1726_v40  ;;  %v1728_v54 = vpop.f32.mrb[3].mxu0  ;;  %2041 = vst [vmem:[%s3308_s6 + $0x10] sm:$0xff] %v2033_v61  ;;  %v2049_v52 = vadd.f32 %v2002_v51, %v1812_v2  ;;  %v1814_v3 = vpop.f32.mrb[3].mxu1 }
 0x15c   :  { %2040 = vst [vmem:[%s3308_s6 + $0x8] sm:$0xff] %v2032_v62  ;;  %v2048_v22 = vadd.f32 %v1998_v53, %v1728_v54  ;;  %2042 = vst [vmem:[%s3308_s6 + $0x18] sm:$0xff] %v2034_v9  ;;  %v2050_v4 = vadd.f32 %v2006_v25, %v1814_v3 }
 0x15d   :  { %2055 = vst [vmem:[%s3309_s7] sm:$0xff] %v2047_v6  ;;  %2057 = vst [vmem:[%s3309_s7 + $0x10] sm:$0xff] %v2049_v52 }
 0x15e   :  { %2056 = vst [vmem:[%s3309_s7 + $0x8] sm:$0xff] %v2048_v22  ;;  %2058 = vst [vmem:[%s3309_s7 + $0x18] sm:$0xff] %v2050_v4 }
 0x1d8   :  { %v1894_v14 = vpop.f32.mrb[4].mxu0  ;;  %v1980_v16 = vpop.f32.mrb[4].mxu1 }
 0x1d9   :  { %v2035_v15 = vadd.f32 %v2010_v18, %v1894_v14  ;;  %v1896_v17 = vpop.f32.mrb[5].mxu0  ;;  %v2037_v19 = vadd.f32 %v2018_v11, %v1980_v16  ;;  %v1982_v21 = vpop.f32.mrb[5].mxu1 }
 0x1da   :  { %v2036_v20 = vadd.f32 %v2014_v12, %v1896_v17  ;;  %v1898_v23 = vpop.f32.mrb[6].mxu0  ;;  %v2038_v24 = vadd.f32 %v2022_v13, %v1982_v21  ;;  %v1984_v27 = vpop.f32.mrb[6].mxu1 }
 0x1db   :  { %2043 = vst [vmem:[%s3308_s6 + $0x20] sm:$0xff] %v2035_v15  ;;  %v2051_v26 = vadd.f32 %v2010_v18, %v1898_v23  ;;  %v1900_v43 = vpop.f32.mrb[7].mxu0  ;;  %2045 = vst [vmem:[%s3308_s6 + $0x30] sm:$0xff] %v2037_v19  ;;  %v2053_v28 = vadd.f32 %v2018_v11, %v1984_v27  ;;  %v1986_v30 = vpop.f32.mrb[7].mxu1 }
 0x1dc   :  { %2044 = vst [vmem:[%s3308_s6 + $0x28] sm:$0xff] %v2036_v20  ;;  %v2052_v29 = vadd.f32 %v2014_v12, %v1900_v43  ;;  %2046 = vst [vmem:[%s3308_s6 + $0x38] sm:$0xff] %v2038_v24  ;;  %v2054_v31 = vadd.f32 %v2022_v13, %v1986_v30 }
 0x1dd   :  { %2059 = vst [vmem:[%s3309_s7 + $0x20] sm:$0xff] %v2051_v26  ;;  %2061 = vst [vmem:[%s3309_s7 + $0x30] sm:$0xff] %v2053_v28 }
 0x1de   :  { %2060 = vst [vmem:[%s3309_s7 + $0x28] sm:$0xff] %v2052_v29  ;;  %2062 = vst [vmem:[%s3309_s7 + $0x38] sm:$0xff] %v2054_v31 }

</bundles_post_ra>
